<compile_context>
chip_gen: v6e
topology: v6e:2x2x1
jax: 0.10.0
libtpu: 0.0.40
codegen_flags: <defaults>
</compile_context>

<pallas_src>
import functools

import jax
import jax.numpy as jnp
import numpy as np
from jax.experimental import pallas as pl
from jax.experimental.pallas import tpu as pltpu


def _bdot(a, b, ca, cb):
  """Batched (leading dim 0) dot_general contracting a[ca] with b[cb], f32 acc."""
  return jax.lax.dot_general(
      a, b, (((ca,), (cb,)), ((0,), (0,))),
      preferred_element_type=jnp.float32)


def cross_view_attention_kernel(*refs, num_heads, num_views, eps=1e-5):
  """Grid step = (batch tile b, head h); accumulates projected head outputs."""
  v_refs = refs[:num_views]
  wqkv_ref, bqkv_ref, wp_ref, misc_ref = refs[num_views:num_views + 4]
  out_ref = refs[num_views + 4]
  x_scr, acc_scr = refs[num_views + 5:num_views + 7]

  h = pl.program_id(1)
  tb, ch, seq = x_scr.shape                 # seq = num_views * N
  n_tok = seq // num_views
  hd = ch // num_heads
  in_dtype = x_scr.dtype
  # bf16 exp (EUP) only when the model itself is bf16 (v6e/v7x); f32 otherwise.
  exp_dtype = jnp.bfloat16 if in_dtype == jnp.bfloat16 else jnp.float32

  # ---- once per batch tile: concat views along the token (lane) axis, zero acc
  @pl.when(h == 0)
  def _init():
    if num_views > 1:
      x_scr[...] = jnp.concatenate([r[...] for r in v_refs], axis=2)
    else:
      x_scr[...] = v_refs[0][...]
    acc_scr[...] = jnp.zeros_like(acc_scr)

  x = x_scr[...]                                            # (TB, C, L)

  # ---- per-head fused QKV projection (attn scale already folded into Q rows)
  w3 = jnp.broadcast_to(wqkv_ref[0], (tb, 3 * hd, ch))      # (TB, 3hd, C)
  qkv = _bdot(w3, x, 2, 1)                                  # (TB, 3hd, L) f32
  qkv = (qkv + bqkv_ref[0].astype(jnp.float32)).astype(in_dtype)
  q = qkv[:, 0:hd, :]                                       # tile-aligned slices
  k = qkv[:, hd:2 * hd, :]
  v = qkv[:, 2 * hd:3 * hd, :]

  # ---- scores + online-free softmax (normalisation deferred)
  q_t = jnp.swapaxes(q, 1, 2)                               # (TB, L, hd), tiny
  s = _bdot(q_t, k, 2, 1)                                   # (TB, L, L) f32
  s = s - jnp.max(s, axis=-1, keepdims=True)
  p = jnp.exp(s.astype(exp_dtype))                          # (TB, L, L)

  # softmax row-sum on the MXU (ones-vector matmul) -> (TB, 1, L), tokens on lanes
  ones_row = jnp.ones((tb, 1, seq), dtype=exp_dtype)
  denom = _bdot(ones_row, p, 2, 2)                          # (TB, 1, L) f32
  o = _bdot(v.astype(exp_dtype), p, 2, 2)                   # (TB, hd, L) f32
  o = o * pl.reciprocal(denom, approx=False)                # exact, tiny

  # ---- distributed output projection: acc += Wp[:, head] @ o_head   (MXU)
  wp_h = jnp.broadcast_to(wp_ref[0], (tb, ch, hd))          # (TB, C, hd)
  acc_scr[...] += _bdot(wp_h, o.astype(in_dtype), 2, 1)     # (TB, C, L)

  # ---- finalize once per batch tile: bias + LayerNorm + mean over views
  @pl.when(h == num_heads - 1)
  def _finalize():
    misc = misc_ref[...].astype(jnp.float32)                # (C, 3)
    y = acc_scr[...] + misc[:, 0:1]                         # + proj bias
    # LayerNorm over channels (sublanes); mean/var reductions via MXU matmuls.
    ones_c = jnp.full((tb, 1, ch), 1.0 / ch, dtype=jnp.float32)
    mu = _bdot(ones_c, y, 2, 1)                             # (TB, 1, L)
    yc = y - mu
    var = _bdot(ones_c, yc * yc, 2, 1)                      # (TB, 1, L)
    y = yc * jax.lax.rsqrt(var + eps)
    y = y * misc[:, 1:2] + misc[:, 2:3]                     # gamma, beta
    # Mean over views: static lane-block sum (N is a multiple of 128 here).
    vsum = y[:, :, 0:n_tok]
    for vi in range(1, num_views):
      vsum = vsum + y[:, :, vi * n_tok:(vi + 1) * n_tok]
    out_ref[...] = (vsum * (1.0 / num_views)).astype(out_ref.dtype)


def cross_view_attention(features_list, params, num_heads):
  """JAX wrapper reproducing CrossViewAttention.forward (eval mode)."""
  V = len(features_list)
  B, C, H, W = features_list[0].shape
  N = H * W
  L = V * N
  hd = C // num_heads
  scale = hd ** -0.5
  dtype = features_list[0].dtype
  esize = jnp.dtype(dtype).itemsize

  wq, bq, wk, bk, wv, bv, wp, bp, gamma, beta = params

  # Per-head fused QKV weight blocks (torch Linear weight is (out, in));
  # the 1/sqrt(head_dim) scale is folded into the Q rows / bias.
  def qkv_block(h):
    sl = slice(h * hd, (h + 1) * hd)
    return jnp.concatenate([wq[sl] * scale, wk[sl], wv[sl]], axis=0)      # (3hd, C)
  wqkv_heads = jnp.stack([qkv_block(h) for h in range(num_heads)], 0).astype(dtype)

  def qkv_bias(h):
    sl = slice(h * hd, (h + 1) * hd)
    return jnp.concatenate([bq[sl] * scale, bk[sl], bv[sl]], axis=0)
  bqkv_heads = jnp.stack([qkv_bias(h) for h in range(num_heads)],
                         0).reshape(num_heads, 3 * hd, 1).astype(dtype)   # (H, 3hd, 1)

  # Per-head output-projection blocks: y += wp[:, h*hd:(h+1)*hd] @ o_head.
  wp_heads = jnp.stack([wp[:, h * hd:(h + 1) * hd] for h in range(num_heads)],
                       0).astype(dtype)                                   # (H, C, hd)
  # Per-channel columns: [proj bias | ln gamma | ln beta].
  misc = jnp.stack([bp, gamma, beta], axis=1).astype(dtype)               # (C, 3)

  # (B, C, H, W) -> (B, C, N): metadata-only reshape; layout stays channels-first.
  views = [f.reshape(B, C, N) for f in features_list]

  # VMEM-aware batch-tile selection; keep >= 2 batch steps so both v7x
  # TensorCores get work on the "parallel" axis.
  score_budget = 32 * 1024 * 1024
  TB = 1
  for cand in (8, 4, 2, 1):
    if B % cand:
      continue
    if B >= 2 and cand > B // 2:
      continue
    if 2 * cand * L * L * 4 <= score_budget:
      TB = cand
      break

  vmem_est = (2 * TB * L * L * 4                   # score + prob (f32 worst case)
              + TB * C * L * (esize + 4)           # x scratch + f32 accumulator
              + 2 * (V + 1) * TB * C * N * esize   # double-buffered views + out
              + (8 << 20))                         # margin (qkv/o temps, weights)
  vmem_limit = int(min(max(vmem_est, 16 << 20), 60 << 20))

  kernel = functools.partial(cross_view_attention_kernel,
                             num_heads=num_heads, num_views=V)
  view_spec = pl.BlockSpec((TB, C, N), lambda b, h: (b, 0, 0))
  in_specs = ([view_spec] * V + [
      pl.BlockSpec((1, 3 * hd, C), lambda b, h: (h, 0, 0)),   # per-head QKV weight
      pl.BlockSpec((1, 3 * hd, 1), lambda b, h: (h, 0, 0)),   # per-head QKV bias
      pl.BlockSpec((1, C, hd), lambda b, h: (h, 0, 0)),       # per-head proj weight
      pl.BlockSpec((C, 3), lambda b, h: (0, 0)),              # [bp | gamma | beta]
  ])

  out = pl.pallas_call(
      kernel,
      out_shape=jax.ShapeDtypeStruct((B, C, N), dtype),
      grid_spec=pltpu.PrefetchScalarGridSpec(
          num_scalar_prefetch=0,
          grid=(B // TB, num_heads),                # heads innermost (accumulator)
          in_specs=in_specs,
          out_specs=pl.BlockSpec((TB, C, N), lambda b, h: (b, 0, 0)),
          scratch_shapes=[pltpu.VMEM((TB, C, L), dtype),       # concat'd input x
                          pltpu.VMEM((TB, C, L), jnp.float32)  # proj accumulator
                          ]),
      compiler_params=pltpu.CompilerParams(
          dimension_semantics=("parallel", "arbitrary"),
          vmem_limit_bytes=vmem_limit),
  )(*views, wqkv_heads, bqkv_heads, wp_heads, misc)

  # (B, C, N) -> (B, C, H, W): metadata-only reshape (matches the module).
  return out.reshape(B, C, H, W)


def cross_view_attention_reference(features_list, params, num_heads):
  """Pure-JAX reference mirroring the PyTorch forward (eval mode)."""
  wq, bq, wk, bk, wv, bv, wp, bp, gamma, beta = params
  V = len(features_list)
  B, C, H, W = features_list[0].shape
  N = H * W
  L = V * N
  head_dim = C // num_heads
  scale = head_dim ** -0.5

  x = jnp.concatenate(
      [f.reshape(B, C, N).transpose(0, 2, 1) for f in features_list], axis=1)

  lin = lambda t, w, b: jnp.einsum('blc,dc->bld', t, w) + b
  q, k, v = lin(x, wq, bq), lin(x, wk, bk), lin(x, wv, bv)
  split = lambda t: t.reshape(B, L, num_heads, head_dim).transpose(0, 2, 1, 3)
  q, k, v = split(q), split(k), split(v)

  attn = jnp.einsum('bhld,bhmd->bhlm', q, k) * scale
  attn = jax.nn.softmax(attn, axis=-1)
  o = jnp.einsum('bhlm,bhmd->bhld', attn, v)
  o = o.transpose(0, 2, 1, 3).reshape(B, L, C)

  y = jnp.einsum('blc,dc->bld', o, wp) + bp
  mu = y.mean(-1, keepdims=True)
  var = ((y - mu) ** 2).mean(-1, keepdims=True)
  y = (y - mu) / jnp.sqrt(var + 1e-5) * gamma + beta
  y = y.reshape(B, V, N, C).mean(axis=1)
  return y.reshape(B, H, W, C).transpose(0, 3, 1, 2)


if __name__ == "__main__":
  key = jax.random.PRNGKey(0)
  dim, num_heads = 32, 4
  B, H, W, V = 2, 16, 16, 2      # N = 256 (lane-dense output), L = 512

  keys = jax.random.split(key, 12)
  feats = [jax.random.normal(keys[i], (B, dim, H, W), jnp.float32)
           for i in range(V)]

  def make_linear(kw, kb):
    w = jax.random.normal(kw, (dim, dim), jnp.float32) * (1.0 / np.sqrt(dim))
    b = jax.random.normal(kb, (dim,), jnp.float32) * 0.02
    return w, b

  wq, bq = make_linear(keys[2], keys[3])
  wk, bk = make_linear(keys[4], keys[5])
  wv, bv = make_linear(keys[6], keys[7])
  wp, bp = make_linear(keys[8], keys[9])
  gamma = jnp.ones((dim,), jnp.float32)
  beta = jnp.zeros((dim,), jnp.float32)
  params = (wq, bq, wk, bk, wv, bv, wp, bp, gamma, beta)

  out = cross_view_attention(feats, params, num_heads)
  out = jax.block_until_ready(out)
  assert out.shape == (B, dim, H, W)

  ref = cross_view_attention_reference(feats, params, num_heads)
  np.testing.assert_allclose(np.asarray(out), np.asarray(ref),
                             rtol=2e-3, atol=2e-3)
  print("KERNEL_OK")
</pallas_src>

<mosaic_0001>
module attributes {stable_mosaic.version = 11 : i64} {
  func.func @cross_view_attention_kernel(%arg0: i32, %arg1: i32, %arg2: memref<1x32x256xf32, #tpu.memory_space<vmem>>, %arg3: memref<1x32x256xf32, #tpu.memory_space<vmem>>, %arg4: memref<1x24x32xf32, #tpu.memory_space<vmem>>, %arg5: memref<1x24x1xf32, #tpu.memory_space<vmem>>, %arg6: memref<1x32x8xf32, #tpu.memory_space<vmem>>, %arg7: memref<32x3xf32, #tpu.memory_space<vmem>>, %arg8: memref<1x32x256xf32, #tpu.memory_space<vmem>>, %arg9: memref<1x32x512xf32, #tpu.memory_space<vmem>>, %arg10: memref<1x32x512xf32, #tpu.memory_space<vmem>>) attributes {dimension_semantics = [#tpu.dimension_semantics<parallel>, #tpu.dimension_semantics<arbitrary>], iteration_bounds = array<i64: 2, 4>, scalar_prefetch = 0 : i64, scratch_operands = 2 : i64, tpu.core_type = #tpu.core_type<tc>, window_params = [{transform_indices = @transform_0, window_bounds = array<i64: 1, 32, 256>}, {transform_indices = @transform_1, window_bounds = array<i64: 1, 32, 256>}, {transform_indices = @transform_2, window_bounds = array<i64: 1, 24, 32>}, {transform_indices = @transform_3, window_bounds = array<i64: 1, 24, 1>}, {transform_indices = @transform_4, window_bounds = array<i64: 1, 32, 8>}, {pipeline_mode = #tpu.pipeline_mode<synchronous>, transform_indices = @transform_5, window_bounds = array<i64: 32, 3>}, {transform_indices = @transform_6, window_bounds = array<i64: 1, 32, 256>}]} {
    %c0_i32 = arith.constant 0 : i32
    %0 = arith.cmpi eq, %arg1, %c0_i32 : i32
    %1 = arith.extui %0 : i1 to i32
    %c0_i32_0 = arith.constant 0 : i32
    %2 = arith.cmpi ne, %1, %c0_i32_0 : i32
    scf.if %2 {
      %c0_25 = arith.constant 0 : index
      %c0_26 = arith.constant 0 : index
      %c0_27 = arith.constant 0 : index
      %39 = vector.load %arg2[%c0_25, %c0_26, %c0_27] : memref<1x32x256xf32, #tpu.memory_space<vmem>>, vector<1x32x256xf32>
      %c0_28 = arith.constant 0 : index
      %c0_29 = arith.constant 0 : index
      %c0_30 = arith.constant 0 : index
      %40 = vector.load %arg3[%c0_28, %c0_29, %c0_30] : memref<1x32x256xf32, #tpu.memory_space<vmem>>, vector<1x32x256xf32>
      %41 = tpu.concatenate %39, %40 in 2 : vector<1x32x256xf32>, vector<1x32x256xf32> -> vector<1x32x512xf32>
      %c0_31 = arith.constant 0 : index
      %c0_32 = arith.constant 0 : index
      %c0_33 = arith.constant 0 : index
      %42 = vector.load %arg9[%c0_31, %c0_32, %c0_33] : memref<1x32x512xf32, #tpu.memory_space<vmem>>, vector<1x32x512xf32>
      tpu.vector_store %arg9[%c0_31, %c0_32, %c0_33], %41 {strides = array<i32>} : memref<1x32x512xf32, #tpu.memory_space<vmem>>, vector<1x32x512xf32>,
      %cst_34 = arith.constant 0.000000e+00 : f32
      %43 = vector.broadcast %cst_34 : f32 to vector<1x32x512xf32>
      %c0_35 = arith.constant 0 : index
      %c0_36 = arith.constant 0 : index
      %c0_37 = arith.constant 0 : index
      %44 = vector.load %arg10[%c0_35, %c0_36, %c0_37] : memref<1x32x512xf32, #tpu.memory_space<vmem>>, vector<1x32x512xf32>
      tpu.vector_store %arg10[%c0_35, %c0_36, %c0_37], %43 {strides = array<i32>} : memref<1x32x512xf32, #tpu.memory_space<vmem>>, vector<1x32x512xf32>,
    } else {
    }
    %c0 = arith.constant 0 : index
    %c0_1 = arith.constant 0 : index
    %c0_2 = arith.constant 0 : index
    %3 = vector.load %arg9[%c0, %c0_1, %c0_2] : memref<1x32x512xf32, #tpu.memory_space<vmem>>, vector<1x32x512xf32>
    %c0_3 = arith.constant 0 : index
    %c0_4 = arith.constant 0 : index
    %c0_5 = arith.constant 0 : index
    %4 = vector.load %arg4[%c0_3, %c0_4, %c0_5] : memref<1x24x32xf32, #tpu.memory_space<vmem>>, vector<1x24x32xf32>
    %5 = vector.shape_cast %4 : vector<1x24x32xf32> to vector<24x32xf32>
    %6 = vector.shape_cast %5 : vector<24x32xf32> to vector<1x24x32xf32>
    %cst = arith.constant dense<0.000000e+00> : vector<1x24x512xf32>
    %7 = tpu.matmul %6, %3, %cst {dimension_numbers = #tpu.dot_dimension_numbers<[2], [1], [1], [2], [0, 0, 0, 1, 1, 2], [0], [0]>} : vector<1x24x32xf32>, vector<1x32x512xf32>, vector<1x24x512xf32> -> vector<1x24x512xf32>
    %c0_6 = arith.constant 0 : index
    %c0_7 = arith.constant 0 : index
    %c0_8 = arith.constant 0 : index
    %8 = vector.load %arg5[%c0_6, %c0_7, %c0_8] : memref<1x24x1xf32, #tpu.memory_space<vmem>>, vector<1x24x1xf32>
    %9 = vector.shape_cast %8 : vector<1x24x1xf32> to vector<24x1xf32>
    %10 = vector.shape_cast %9 : vector<24x1xf32> to vector<1x24x1xf32>
    %11 = vector.broadcast %10 : vector<1x24x1xf32> to vector<1x24x512xf32>
    %12 = arith.addf %7, %11 : vector<1x24x512xf32>
    %13 = vector.extract_strided_slice %12 {offsets = [0, 0, 0], sizes = [1, 8, 512], strides = [1, 1, 1]} : vector<1x24x512xf32> to vector<1x8x512xf32>
    %14 = vector.extract_strided_slice %12 {offsets = [0, 8, 0], sizes = [1, 8, 512], strides = [1, 1, 1]} : vector<1x24x512xf32> to vector<1x8x512xf32>
    %15 = vector.extract_strided_slice %12 {offsets = [0, 16, 0], sizes = [1, 8, 512], strides = [1, 1, 1]} : vector<1x24x512xf32> to vector<1x8x512xf32>
    %16 = tpu.transpose %13, [0, 2, 1] : vector<1x8x512xf32> -> vector<1x512x8xf32>
    %cst_9 = arith.constant dense<0.000000e+00> : vector<1x512x512xf32>
    %17 = tpu.matmul %16, %14, %cst_9 {dimension_numbers = #tpu.dot_dimension_numbers<[2], [1], [1], [2], [0, 0, 0, 1, 1, 2], [0], [0]>} : vector<1x512x8xf32>, vector<1x8x512xf32>, vector<1x512x512xf32> -> vector<1x512x512xf32>
    %cst_10 = arith.constant dense<0xFF800000> : vector<1x512xf32>
    %18 = vector.multi_reduction <maximumf>, %17, %cst_10 [2] : vector<1x512x512xf32> to vector<1x512xf32>
    %19 = vector.shape_cast %18 : vector<1x512xf32> to vector<1x512x1xf32>
    %20 = vector.broadcast %19 : vector<1x512x1xf32> to vector<1x512x512xf32>
    %21 = arith.subf %17, %20 : vector<1x512x512xf32>
    %22 = math.exp %21 : vector<1x512x512xf32>
    %cst_11 = arith.constant 1.000000e+00 : f32
    %23 = vector.broadcast %cst_11 : f32 to vector<1x1x512xf32>
    %cst_12 = arith.constant dense<0.000000e+00> : vector<1x1x512xf32>
    %24 = tpu.matmul %23, %22, %cst_12 {dimension_numbers = #tpu.dot_dimension_numbers<[2], [2], [1], [1], [0, 0, 0, 1, 1, 1], [0], [0]>} : vector<1x1x512xf32>, vector<1x512x512xf32>, vector<1x1x512xf32> -> vector<1x1x512xf32>
    %cst_13 = arith.constant dense<0.000000e+00> : vector<1x8x512xf32>
    %25 = tpu.matmul %15, %22, %cst_13 {dimension_numbers = #tpu.dot_dimension_numbers<[2], [2], [1], [1], [0, 0, 0, 1, 1, 1], [0], [0]>} : vector<1x8x512xf32>, vector<1x512x512xf32>, vector<1x8x512xf32> -> vector<1x8x512xf32>
    %26 = tpu.reciprocal %24 : vector<1x1x512xf32> -> vector<1x1x512xf32>
    %27 = vector.broadcast %26 : vector<1x1x512xf32> to vector<1x8x512xf32>
    %28 = arith.mulf %25, %27 : vector<1x8x512xf32>
    %c0_14 = arith.constant 0 : index
    %c0_15 = arith.constant 0 : index
    %c0_16 = arith.constant 0 : index
    %29 = vector.load %arg6[%c0_14, %c0_15, %c0_16] : memref<1x32x8xf32, #tpu.memory_space<vmem>>, vector<1x32x8xf32>
    %30 = vector.shape_cast %29 : vector<1x32x8xf32> to vector<32x8xf32>
    %31 = vector.shape_cast %30 : vector<32x8xf32> to vector<1x32x8xf32>
    %c0_17 = arith.constant 0 : index
    %c0_18 = arith.constant 0 : index
    %c0_19 = arith.constant 0 : index
    %32 = vector.load %arg10[%c0_17, %c0_18, %c0_19] : memref<1x32x512xf32, #tpu.memory_space<vmem>>, vector<1x32x512xf32>
    %cst_20 = arith.constant dense<0.000000e+00> : vector<1x32x512xf32>
    %33 = tpu.matmul %31, %28, %cst_20 {dimension_numbers = #tpu.dot_dimension_numbers<[2], [1], [1], [2], [0, 0, 0, 1, 1, 2], [0], [0]>} : vector<1x32x8xf32>, vector<1x8x512xf32>, vector<1x32x512xf32> -> vector<1x32x512xf32>
    %34 = arith.addf %32, %33 : vector<1x32x512xf32>
    %c0_21 = arith.constant 0 : index
    %c0_22 = arith.constant 0 : index
    %c0_23 = arith.constant 0 : index
    %35 = vector.load %arg10[%c0_21, %c0_22, %c0_23] : memref<1x32x512xf32, #tpu.memory_space<vmem>>, vector<1x32x512xf32>
    tpu.vector_store %arg10[%c0_21, %c0_22, %c0_23], %34 {strides = array<i32>} : memref<1x32x512xf32, #tpu.memory_space<vmem>>, vector<1x32x512xf32>,
    %c3_i32 = arith.constant 3 : i32
    %36 = arith.cmpi eq, %arg1, %c3_i32 : i32
    %37 = arith.extui %36 : i1 to i32
    %c0_i32_24 = arith.constant 0 : i32
    %38 = arith.cmpi ne, %37, %c0_i32_24 : i32
    scf.if %38 {
      %c0_25 = arith.constant 0 : index
      %c0_26 = arith.constant 0 : index
      %39 = vector.load %arg7[%c0_25, %c0_26] : memref<32x3xf32, #tpu.memory_space<vmem>>, vector<32x3xf32>
      %c0_27 = arith.constant 0 : index
      %c0_28 = arith.constant 0 : index
      %c0_29 = arith.constant 0 : index
      %40 = vector.load %arg10[%c0_27, %c0_28, %c0_29] : memref<1x32x512xf32, #tpu.memory_space<vmem>>, vector<1x32x512xf32>
      %41 = vector.extract_strided_slice %39 {offsets = [0, 0], sizes = [32, 1], strides = [1, 1]} : vector<32x3xf32> to vector<32x1xf32>
      %42 = vector.shape_cast %41 : vector<32x1xf32> to vector<1x32x1xf32>
      %43 = vector.broadcast %42 : vector<1x32x1xf32> to vector<1x32x512xf32>
      %44 = arith.addf %40, %43 : vector<1x32x512xf32>
      %cst_30 = arith.constant 3.125000e-02 : f32
      %45 = vector.broadcast %cst_30 : f32 to vector<1x1x32xf32>
      %cst_31 = arith.constant dense<0.000000e+00> : vector<1x1x512xf32>
      %46 = tpu.matmul %45, %44, %cst_31 {dimension_numbers = #tpu.dot_dimension_numbers<[2], [1], [1], [2], [0, 0, 0, 1, 1, 2], [0], [0]>} : vector<1x1x32xf32>, vector<1x32x512xf32>, vector<1x1x512xf32> -> vector<1x1x512xf32>
      %47 = vector.broadcast %46 : vector<1x1x512xf32> to vector<1x32x512xf32>
      %48 = arith.subf %44, %47 : vector<1x32x512xf32>
      %49 = arith.mulf %48, %48 : vector<1x32x512xf32>
      %cst_32 = arith.constant dense<0.000000e+00> : vector<1x1x512xf32>
      %50 = tpu.matmul %45, %49, %cst_32 {dimension_numbers = #tpu.dot_dimension_numbers<[2], [1], [1], [2], [0, 0, 0, 1, 1, 2], [0], [0]>} : vector<1x1x32xf32>, vector<1x32x512xf32>, vector<1x1x512xf32> -> vector<1x1x512xf32>
      %cst_33 = arith.constant 9.99999974E-6 : f32
      %51 = vector.broadcast %cst_33 : f32 to vector<1x1x512xf32>
      %52 = arith.addf %50, %51 : vector<1x1x512xf32>
      %53 = math.rsqrt %52 : vector<1x1x512xf32>
      %54 = vector.broadcast %53 : vector<1x1x512xf32> to vector<1x32x512xf32>
      %55 = arith.mulf %48, %54 : vector<1x32x512xf32>
      %56 = vector.extract_strided_slice %39 {offsets = [0, 1], sizes = [32, 1], strides = [1, 1]} : vector<32x3xf32> to vector<32x1xf32>
      %57 = vector.shape_cast %56 : vector<32x1xf32> to vector<1x32x1xf32>
      %58 = vector.broadcast %57 : vector<1x32x1xf32> to vector<1x32x512xf32>
      %59 = arith.mulf %55, %58 : vector<1x32x512xf32>
      %60 = vector.extract_strided_slice %39 {offsets = [0, 2], sizes = [32, 1], strides = [1, 1]} : vector<32x3xf32> to vector<32x1xf32>
      %61 = vector.shape_cast %60 : vector<32x1xf32> to vector<1x32x1xf32>
      %62 = vector.broadcast %61 : vector<1x32x1xf32> to vector<1x32x512xf32>
      %63 = arith.addf %59, %62 : vector<1x32x512xf32>
      %64 = vector.extract_strided_slice %63 {offsets = [0, 0, 0], sizes = [1, 32, 256], strides = [1, 1, 1]} : vector<1x32x512xf32> to vector<1x32x256xf32>
      %65 = vector.extract_strided_slice %63 {offsets = [0, 0, 256], sizes = [1, 32, 256], strides = [1, 1, 1]} : vector<1x32x512xf32> to vector<1x32x256xf32>
      %66 = arith.addf %64, %65 : vector<1x32x256xf32>
      %cst_34 = arith.constant 5.000000e-01 : f32
      %67 = vector.broadcast %cst_34 : f32 to vector<1x32x256xf32>
      %68 = arith.mulf %66, %67 : vector<1x32x256xf32>
      %c0_35 = arith.constant 0 : index
      %c0_36 = arith.constant 0 : index
      %c0_37 = arith.constant 0 : index
      %69 = vector.load %arg8[%c0_35, %c0_36, %c0_37] : memref<1x32x256xf32, #tpu.memory_space<vmem>>, vector<1x32x256xf32>
      tpu.vector_store %arg8[%c0_35, %c0_36, %c0_37], %68 {strides = array<i32>} : memref<1x32x256xf32, #tpu.memory_space<vmem>>, vector<1x32x256xf32>,
    } else {
    }
    return
  }
  func.func @transform_0(%arg0: i32, %arg1: i32) -> (i32, i32, i32) {
    %c0_i32 = arith.constant 0 : i32
    %c0_i32_0 = arith.constant 0 : i32
    %c0_i32_1 = arith.constant 0 : i32
    return %arg0, %c0_i32, %c0_i32_0 : i32, i32, i32
  }
  func.func @transform_1(%arg0: i32, %arg1: i32) -> (i32, i32, i32) {
    %c0_i32 = arith.constant 0 : i32
    %c0_i32_0 = arith.constant 0 : i32
    %c0_i32_1 = arith.constant 0 : i32
    return %arg0, %c0_i32, %c0_i32_0 : i32, i32, i32
  }
  func.func @transform_2(%arg0: i32, %arg1: i32) -> (i32, i32, i32) {
    %c0_i32 = arith.constant 0 : i32
    %c0_i32_0 = arith.constant 0 : i32
    %c0_i32_1 = arith.constant 0 : i32
    return %arg1, %c0_i32, %c0_i32_0 : i32, i32, i32
  }
  func.func @transform_3(%arg0: i32, %arg1: i32) -> (i32, i32, i32) {
    %c0_i32 = arith.constant 0 : i32
    %c0_i32_0 = arith.constant 0 : i32
    %c0_i32_1 = arith.constant 0 : i32
    return %arg1, %c0_i32, %c0_i32_0 : i32, i32, i32
  }
  func.func @transform_4(%arg0: i32, %arg1: i32) -> (i32, i32, i32) {
    %c0_i32 = arith.constant 0 : i32
    %c0_i32_0 = arith.constant 0 : i32
    %c0_i32_1 = arith.constant 0 : i32
    return %arg1, %c0_i32, %c0_i32_0 : i32, i32, i32
  }
  func.func @transform_5(%arg0: i32, %arg1: i32) -> (i32, i32) {
    %c0_i32 = arith.constant 0 : i32
    %c0_i32_0 = arith.constant 0 : i32
    %c0_i32_1 = arith.constant 0 : i32
    return %c0_i32, %c0_i32_0 : i32, i32
  }
  func.func @transform_6(%arg0: i32, %arg1: i32) -> (i32, i32, i32) {
    %c0_i32 = arith.constant 0 : i32
    %c0_i32_0 = arith.constant 0 : i32
    %c0_i32_1 = arith.constant 0 : i32
    return %arg0, %c0_i32, %c0_i32_0 : i32, i32, i32
  }
}

</mosaic_0001>

<bundles_post_ra>
// kernel: tpu_custom_call.1
= control target key start
LH: loop header
LB: loop body
LE: loop exit
PB: predicated region body
PF: predicated region fallthrough
CT: control target
= control target key end

     0   :  { %s8498_s0 = inlined_call_operand.vmem [shape: f32[2,32,256], index: 0, kind: input, shape index: {}]   ;;  %s8499_s1 = inlined_call_operand.vmem [shape: f32[2,32,256], index: 1, kind: input, shape index: {}]   ;;  %s8500_s2 = inlined_call_operand.hbm [shape: f32[4,24,32], index: 2, kind: input, shape index: {}]   ;;  %s8501_s3 = inlined_call_operand.vmem [shape: f32[4,24,1], index: 3, kind: input, shape index: {}]   ;;  %s8502_s4 = inlined_call_operand.vmem [shape: f32[4,32,8], index: 4, kind: input, shape index: {}]   ;;  %s8503_s5 = inlined_call_operand.vmem [shape: f32[32,3], index: 5, kind: input, shape index: {}]   ;;  %s8504_s6 = inlined_call_operand.hbm [shape: f32[2,32,256], index: 6, kind: output, shape index: {}]  }
   0x1   :  { %8949 = sst [smem:[#allocation234_spill]] %s8500_s2 }
   0x2   :  { %11 = vsyncpa [#allocation5], 0 }
   0x3   :  { %13 = vsyncpa [#allocation5 + $0x1], 0 }
   0x4   :  { %14 = vsyncpa [#allocation6], 0 }
   0x5   :  { %16 = vsyncpa [#allocation6 + $0x1], 0  ;;  %s5458_s21 = smov 0   ;;  %s5460_s22 = smov 0  }
   0x6   :  { %s5462_s23 = smov 0   ;;  %s5464_s24 = smov 0  }
   0x7   :  { %s5466_s25 = smov 0   ;;  %s5468_s26 = smov 0  }
   0x8   :  { %s5470_s27 = smov 0   ;;  %s5472_s28 = smov 0  }
   0x9   :  { %s5474_s29 = smov 0   ;;  %s5476_s30 = smov 0  }
   0xa   :  { %s5478_s7 = smov 0  }
   0xb LB: > { %8950 = sst [smem:[#allocation10_spill]] %s5374_s23  ;;  %s4433_s8 = sadd.s32 4294967295, %s5406_s7   ;;  %s5406_s7 = sphi %s5478_s7, %s22_s7   ;;  %s5402_s30 = sphi %s5476_s30, %s9878_s30   ;;  %s5398_s29 = sphi %s5474_s29, %s9877_s29   ;;  %s5394_s28 = sphi %s5472_s28, %s9876_s28   ;;  %s5390_s27 = sphi %s5470_s27, %s9875_s27   ;;  %s5386_s26 = sphi %s5468_s26, %s9874_s26   ;;  %s5382_s25 = sphi %s5466_s25, %s9873_s25   ;;  %s5378_s24 = sphi %s5464_s24, %s9872_s24   ;;  %s5374_s23 = sphi %s5462_s23, %s9871_s23   ;;  %s5370_s22 = sphi %s5460_s22, %s9880_s22   ;;  %s5366_s21 = sphi %s5458_s21, %s9879_s21  }
   0xc   : > { %8951 = sst [smem:[#allocation11_spill]] %s5382_s25  ;;  %s4434_s9 = sadd.s32 4294967294, %s5406_s7  }
   0xd   : > { %8952 = sst [smem:[#allocation12_spill]] %s5386_s26  ;;  %s31_s10 = sadd.s32 1, %s5398_s29 }
   0xe   : > { %8953 = sst [smem:[#allocation13_spill]] %s5398_s29  ;;  %s34_s11 = sadd.s32 1, %s5402_s30 }
   0xf   : > { %8954 = sst [smem:[#allocation14_spill]] %s5402_s30  ;;  %p32_p0 = scmp.ge.s32.totalorder %s31_s10, 4 }
  0x10   : > { %s93_s12 = sadd.s32 1, %s5386_s26  ;;  %p100_p1 = scmp.ne.s32.totalorder %s5386_s26, %s5382_s25 }
  0x11   : > { %p101_p2 = scmp.eq.s32.totalorder %s5406_s7, 0  ;;  %s9882_s10 = smov (%p32_p0, %s31_s10), 0 }
  0x12   : > { %8955 = sst [smem:[#allocation15_spill]] %s9882_s10  ;;  %s9884_s11 = smov (!%p32_p0, %s34_s11), %s5402_s30 }
  0x13   : > { %s90_s13 = ssub.s32 %s5398_s29, %s9882_s10  ;;  %p5524_p3 = por %p101_p2, %p100_p1 }
  0x14   : > { %p36_p4 = scmp.ge.s32.totalorder %s9884_s11, 2  ;;  %p91_p5 = scmp.eq.s32.totalorder %s90_s13, 0 }
  0x15   : > { %p106_p6 = scmp.ne.s32.totalorder %s5382_s25, %s5378_s24  ;;  %p107_p7 = scmp.eq.s32.totalorder %s4433_s8, 0 }
  0x16   : > { %s9886_s11 = smov (%p36_p4, %s9884_s11), 0  ;;  %s192_s18 = sadd.s32 1, %s5374_s23 }
  0x17   : > { %8957 = sst [smem:[#allocation16_spill]] %s9886_s11  ;;  %p5534_p8 = por %p107_p7, %p106_p6 }
  0x18   : > { %s5532_s15 = scalar_select %p91_p5, %s5386_s26, %s93_s12  }
  0x19   : > { %s189_s17 = ssub.s32 %s5402_s30, %s9886_s11  ;;  %p202_p10 = scmp.ne.s32.totalorder %s5374_s23, %s5370_s22 }
  0x1a   : > { %8958 = sst [smem:[#allocation17_spill]] %s5532_s15  ;;  %p190_p9 = scmp.eq.s32.totalorder %s189_s17, 0 }
  0x1b   : > { %p203_p11 = scmp.eq.s32.totalorder %s4433_s8, 7  ;;  %p208_p13 = scmp.ne.s32.totalorder %s5370_s22, %s5366_s21 }
  0x1c   : > { %s5544_s19 = scalar_select %p190_p9, %s5374_s23, %s192_s18  }
  0x1d   : > { %p5546_p12 = por %p203_p11, %p202_p10  ;;  %p209_p0 = scmp.eq.s32.totalorder %s4434_s9, 7 }
  0x1e   : > { %8960 = sst [smem:[#allocation18_spill]] %s5544_s19  ;;  %p4620_p1 = scmp.lt.s32.totalorder %s5406_s7, 8 }
  0x1f   : > { %s248_s24 = sand.u32 1, %s5386_s26   ;;  %p5554_p2 = por %p209_p0, %p208_p13 }
  0x20   : > { %s4604_s13 = smul.u32 24, %s248_s24  ;;  %p5560_p4 = pnand %p4620_p1, %p5524_p3 }
  0x21   : > { %s4605_s8 = smul.u32 384, %s5398_s29  ;;  %s8964_s2 = sld [smem:[#allocation234_spill]] }
  0x22   : > { %s252_s30 = scalar_lea.vmem [#allocation4], %s4604_s13  ;;  %s249_s15 = scalar_lea.sflag [#allocation5], %s248_s24 }
  0x23   : > { %s259_s9 = sshll.u32 %s252_s30, 4  ;;  %p5260_p5 = pneg %p5560_p4  ;;  %s260_s9 = int_to_ptr.vmem [resolvable:$true] %s259_s9 }
  0x24   : > { %s5271_s26 = scalar_lea.vmem %s260_s9, 384  ;;  %s5408_s14 = smov [#allocation4]  }
  0x25   : > { %p5272_p6 = scmp.ne.s32.totalorder %s260_s9, %s5271_s26  ;;  %s5276_s19 = sshll.u32 %s5408_s14, 4  ;;  %s5277_s19 = int_to_ptr.vmem [resolvable:$false] %s5276_s19 }
  0x26   : > { %s5278_s23 = scalar_lea.vmem %s5277_s19, 768  ;;  %p5279_p3 = scmp.lt.s32.totalorder %s260_s9, %s5277_s19 }
  0x27   : > { %s258_s10 = scalar_lea.hbm %s8964_s2, %s4605_s8  ;;  %p5274_p7 = pnand %p5272_p6, %p5260_p5 }
  0x28   : > { %p5280_p10 = scmp.lt.s32.totalorder %s5278_s23, %s5271_s26 }
  0x29   : > { %p5275_p9 = pneg %p5274_p7 }
  0x2a   : > { %p5281_p11 = por %p5280_p10, %p5279_p3 }
  0x2c   : > { %p5282_p13 = pnand %p5281_p11, %p5275_p9 }
  0x2e   : > { %5285 = shalt.err (!%p5282_p13)
}
  0x2f   : > { %s5409_s11 = smov 128   ;;  %s5410_s30 = smov 8  }
  0x30   : > { %4615 = dma.hbm_to_vmem [thread:$0]  (!%p5560_p4), %s258_s10, 384, %s260_s9, %s249_s15, %s5409_s11, %s5409_s11, %s5410_s30  }
  0x31   : > { %p4438_p0 = scmp.ge.s32.totalorder %s5406_s7, 1  ;;  %p283_p1 = scmp.lt.s32.totalorder %s5406_s7, 9 }
  0x33   : > { %p284_p5 = pnand %p4438_p0, %p283_p1 }
  0x35   : > { %287 = sbr.rel (%p284_p5) target bundleno = 2383 (0x94f), region = 44 }
  0x3a   : > { %s289_s24 = sand.u32 1, %s5382_s25  }
  0x3b   : > { %s4606_s13 = smul.u32 24, %s289_s24  ;;  %s290_s19 = scalar_lea.sflag [#allocation5], %s289_s24 }
  0x3d   : > { %s5575_s23 = scalar_lea.vmem [#allocation4], %s4606_s13 }
  0x3e   : > { %5357 = dma.done.wait (%p5534_p8), %s290_s19, 384  }
  0x3f   : > { %5359 = vsyncadd (%p5534_p8), %s290_s19, 4294966912  ;;  %s8510_s26 = sand.u32 1, %s5370_s22   ;;  %p342_p4 = scmp.lt.s32.totalorder %s5394_s28, 1 }
  0x40   : > { %s4439_s10 = sshll.u32 %s8510_s26, 6  ;;  %p352_p6 = scmp.lt.s32.totalorder %s5390_s27, 3 }
  0x41   : > { %s343_s15 = scalar_select %p342_p4, %s5394_s28, 1 }
  0x42   : > { %s353_s17 = scalar_select %p352_p6, %s5390_s27, 3 }
  0x43   : > { %s4600_s8 = sshll.u32 %s343_s15, 6  ;;  %s5608_s18 = scalar_lea.vmem [#allocation7], %s4439_s10 }
  0x44   : > { %s5591_s14 = scalar_lea.vmem %s8498_s0, %s4600_s8  ;;  %s5596_s30 = scalar_lea.vmem %s8499_s1, %s4600_s8 }
  0x45   : > { %s4607_s24 = smul.u32 24, %s353_s17  ;;  %s4602_s13 = sshll.u32 %s353_s17, 5 }
  0x46   : > { %s5601_s26 = scalar_lea.vmem %s8502_s4, %s4602_s13  ;;  %p4447_p8 = scmp.ne.s32.totalorder %s5390_s27, 0 }
  0x47   : > { %s5606_s15 = scalar_lea.vmem %s8501_s3, %s4607_s24 }
  0x48   : > { %365 = sbr.rel (%p4447_p8) target bundleno = 94 (0x5e), region = 52 }
  0x4d   : > { %v366_v0 = vld [vmem:[%s5591_s14] sm:$0xff]  ;;  %v367_v1 = vld [vmem:[%s5591_s14 + $0x8] sm:$0xff]  ;;  %v368_v4 = vld [vmem:[%s5591_s14 + $0x10] sm:$0xff]  ;;  %v5411_v6 = vmov 0.0  }
  0x4e   : > { %v374_v2 = vld [vmem:[%s5596_s30] sm:$0xff]  ;;  %382 = vst [vmem:[#allocation2 + $0x30] sm:$0xff] %v366_v0  ;;  %383 = vst [vmem:[#allocation2] sm:$0xff] %v367_v1  ;;  %v375_v3 = vld [vmem:[%s5596_s30 + $0x8] sm:$0xff] }
  0x4f   : > { %384 = vst [vmem:[#allocation2 + $0x58] sm:$0xff] %v374_v2  ;;  %v369_v5 = vld [vmem:[%s5591_s14 + $0x18] sm:$0xff]  ;;  %398 = vst [vmem:[#allocation3 + $0x28] sm:$0xff] %v5411_v6  ;;  %v376_v7 = vld [vmem:[%s5596_s30 + $0x10] sm:$0xff] }
  0x50   : > { %399 = vst [vmem:[#allocation3 + $0x68] sm:$0xff] %v5411_v6  ;;  %400 = vst [vmem:[#allocation3 + $0x10] sm:$0xff] %v5411_v6  ;;  %v377_v8 = vld [vmem:[%s5596_s30 + $0x18] sm:$0xff]  ;;  %v370_v9 = vld [vmem:[%s5591_s14 + $0x20] sm:$0xff] }
  0x51   : > { %401 = vst [vmem:[#allocation3 + $0x40] sm:$0xff] %v5411_v6  ;;  %402 = vst [vmem:[#allocation3 + $0x48] sm:$0xff] %v5411_v6  ;;  %v371_v10 = vld [vmem:[%s5591_s14 + $0x28] sm:$0xff]  ;;  %v378_v11 = vld [vmem:[%s5596_s30 + $0x20] sm:$0xff] }
  0x52   : > { %403 = vst [vmem:[#allocation3 + $0x30] sm:$0xff] %v5411_v6  ;;  %404 = vst [vmem:[#allocation3 + $0x70] sm:$0xff] %v5411_v6  ;;  %v379_v12 = vld [vmem:[%s5596_s30 + $0x28] sm:$0xff]  ;;  %v372_v13 = vld [vmem:[%s5591_s14 + $0x30] sm:$0xff] }
  0x53   : > { %405 = vst [vmem:[#allocation3 + $0x38] sm:$0xff] %v5411_v6  ;;  %406 = vst [vmem:[#allocation3 + $0x20] sm:$0xff] %v5411_v6  ;;  %v373_v14 = vld [vmem:[%s5591_s14 + $0x38] sm:$0xff]  ;;  %v380_v15 = vld [vmem:[%s5596_s30 + $0x30] sm:$0xff] }
  0x54   : > { %407 = vst [vmem:[#allocation3 + $0x78] sm:$0xff] %v5411_v6  ;;  %408 = vst [vmem:[#allocation3 + $0x18] sm:$0xff] %v5411_v6  ;;  %v381_v16 = vld [vmem:[%s5596_s30 + $0x38] sm:$0xff] }
  0x55   : > { %409 = vst [vmem:[#allocation3 + $0x58] sm:$0xff] %v5411_v6  ;;  %410 = vst [vmem:[#allocation3] sm:$0xff] %v5411_v6 }
  0x56   : > { %411 = vst [vmem:[#allocation3 + $0x8] sm:$0xff] %v5411_v6  ;;  %412 = vst [vmem:[#allocation3 + $0x60] sm:$0xff] %v5411_v6 }
  0x57   : > { %413 = vst [vmem:[#allocation3 + $0x50] sm:$0xff] %v5411_v6  ;;  %385 = vst [vmem:[#allocation2 + $0x18] sm:$0xff] %v375_v3 }
  0x58   : > { %386 = vst [vmem:[#allocation2 + $0x50] sm:$0xff] %v368_v4  ;;  %387 = vst [vmem:[#allocation2 + $0x68] sm:$0xff] %v369_v5 }
  0x59   : > { %388 = vst [vmem:[#allocation2 + $0x8] sm:$0xff] %v376_v7  ;;  %389 = vst [vmem:[#allocation2 + $0x48] sm:$0xff] %v377_v8 }
  0x5a   : > { %390 = vst [vmem:[#allocation2 + $0x40] sm:$0xff] %v370_v9  ;;  %391 = vst [vmem:[#allocation2 + $0x20] sm:$0xff] %v371_v10 }
  0x5b   : > { %392 = vst [vmem:[#allocation2 + $0x10] sm:$0xff] %v378_v11  ;;  %393 = vst [vmem:[#allocation2 + $0x38] sm:$0xff] %v379_v12 }
  0x5c   : > { %394 = vst [vmem:[#allocation2 + $0x60] sm:$0xff] %v372_v13  ;;  %395 = vst [vmem:[#allocation2 + $0x70] sm:$0xff] %v373_v14 }
  0x5d   : > { %396 = vst [vmem:[#allocation2 + $0x78] sm:$0xff] %v380_v15  ;;  %397 = vst [vmem:[#allocation2 + $0x28] sm:$0xff] %v381_v16 }
  0x5e PF: > { %v415_v29 = vld [vmem:[#allocation2] sm:$0xff]  ;;  %v417_v30 = vld [vmem:[#allocation2 + $0x18] sm:$0xff]  ;;  %v414_v31 = vld [vmem:[#allocation2 + $0x30] sm:$0xff]  ;;  %vm451_vm0 = vcmask 261120   ;;  %v8515_v34 = vmov 0.0   ;;  %v5413_v37 = vmov 0  }
  0x5f   : > { %v419_v25 = vld [vmem:[#allocation2 + $0x68] sm:$0xff]  ;;  %v418_v27 = vld [vmem:[#allocation2 + $0x50] sm:$0xff]  ;;  %v416_v32 = vld [vmem:[#allocation2 + $0x58] sm:$0xff]  ;;  %525 = vmatprep.mubr.f32.mxu0 %v8515_v34  ;;  %608 = vmatprep.mubr.f32.mxu1 %v8515_v34  ;;  %vm755_vm1 = vcmask 64512   ;;  %p4590_p7 = scmp.ne.s32.totalorder %s5390_s27, 3 }
  0x60   : > { %v421_v26 = vld [vmem:[#allocation2 + $0x48] sm:$0xff]  ;;  %v430_v33 = vld [vmem:[%s5575_s23] sm:$0xff]  ;;  %4723 = vset.pattern.permute.xlu0 %v5413_v37 }
  0x61   : > { %v423_v21 = vld [vmem:[#allocation2 + $0x20] sm:$0xff]  ;;  %v420_v28 = vld [vmem:[#allocation2 + $0x8] sm:$0xff] }
  0x62   : > { %v425_v22 = vld [vmem:[#allocation2 + $0x38] sm:$0xff]  ;;  %v422_v23 = vld [vmem:[#allocation2 + $0x40] sm:$0xff]  ;;  %v424_v24 = vld [vmem:[#allocation2 + $0x10] sm:$0xff] }
  0x63   : > { %v427_v17 = vld [vmem:[#allocation2 + $0x70] sm:$0xff]  ;;  %v426_v19 = vld [vmem:[#allocation2 + $0x60] sm:$0xff]  ;;  %v434_v38 = vld [vmem:[%s5606_s15 + $0x8] sm:$0xff] }
  0x64   : > { %v429_v18 = vld [vmem:[#allocation2 + $0x28] sm:$0xff]  ;;  %485 = vmatprep.subr.mxu0 %v427_v17  ;;  %v428_v20 = vld [vmem:[#allocation2 + $0x78] sm:$0xff]  ;;  %v433_v35 = vld [vmem:[%s5606_s15] sm:$0xff] }
  0x65   : > { %568 = vmatprep.subr.mxu1 %v429_v18  ;;  %486 = vmatpush1.msra.mxu0 %v426_v19  ;;  %v431_v36 = vld [vmem:[%s5575_s23 + $0x8] sm:$0xff]  ;;  %v432_v39 = vld [vmem:[%s5575_s23 + $0x10] sm:$0xff] }
  0x66   : > { %569 = vmatpush1.msra.mxu1 %v428_v20  ;;  %487 = vmatprep.subr.mxu0 %v423_v21 }
  0x67   : > { %570 = vmatprep.subr.mxu1 %v425_v22  ;;  %488 = vmatpush1.msra.mxu0 %v422_v23 }
  0x68   : > { %571 = vmatpush1.msra.mxu1 %v424_v24  ;;  %489 = vmatprep.subr.mxu0 %v419_v25 }
  0x69   : > { %572 = vmatprep.subr.mxu1 %v421_v26  ;;  %490 = vmatpush1.msra.mxu0 %v418_v27 }
  0x6a   : > { %573 = vmatpush1.msra.mxu1 %v420_v28  ;;  %491 = vmatprep.subr.mxu0 %v415_v29 }
  0x6b   : > { %574 = vmatprep.subr.mxu1 %v417_v30  ;;  %492 = vmatpush1.msra.mxu0 %v414_v31 }
  0x6c   : > { %575 = vmatpush1.msra.mxu1 %v416_v32  ;;  %4448 = vmatmul.mubr.msk.f32.vlgmr.msra.gmra.mxu0 %vm451_vm0, %v430_v33 }
  0x6d   : > { %4451 = vmatmul.mubr.msk.f32.vlgmr.msra.gmra.mxu1 %vm451_vm0, %v430_v33  ;;  %531 = vmatprep.mubr.f32.mxu0 %v8515_v34 }
  0x6e   : > { %614 = vmatprep.mubr.f32.mxu1 %v8515_v34  ;;  %438 = vperm.xlu0 %4723, %v433_v35  }
  0x70   : > { %4449 = vmatmul.mubr.msk.f32.gmra.mxu0 %vm451_vm0, %v431_v36 }
  0x71   : > { %4452 = vmatmul.mubr.msk.f32.gmra.mxu1 %vm451_vm0, %v431_v36  ;;  %537 = vmatprep.mubr.f32.mxu0 %v8515_v34 }
  0x72   : > { %620 = vmatprep.mubr.f32.mxu1 %v8515_v34  ;;  %443 = vperm.xlu0 %4723, %v434_v38  }
  0x74   : > { %4450 = vmatmul.mubr.msk.f32.gmra.mxu0 %vm451_vm0, %v432_v39 }
  0x75   : > { %4453 = vmatmul.mubr.msk.f32.gmra.mxu1 %vm451_vm0, %v432_v39  ;;  %1012 = vmatprep.mubr.f32.mxu0 %v8515_v34 }
  0x76   : > { %1461 = vmatprep.mubr.f32.mxu1 %v8515_v34 }
  0xe9   : > { %v439_v40 = vpop.permute.xlu0 %438 }
  0xed   : > { %v444_v49 = vpop.permute.xlu0 %443 }
 0x12c   : > { %v527_v41 = vpop.f32.mrf.mxu0 }
 0x12d   : > { %v610_v42 = vpop.f32.mrf.mxu1  ;;  %v528_v44 = vadd.f32 %v527_v41, %v439_v40 }
 0x12e   : > { %v611_v43 = vadd.f32 %v610_v42, %v439_v40  ;;  %v529_v45 = vpop.f32.mrf.mxu0 }
 0x12f   : > { %v612_v46 = vpop.f32.mrf.mxu1  ;;  %627 = vxpose.xlu1.b32.start.end [1/1] (short) %v528_v44, 128  ;;  %v530_v57 = vadd.f32 %v529_v45, %v439_v40 }
 0x130   : > { %691 = vxpose.xlu0.b32.start.end [1/1] (short) %v611_v43, 128  ;;  %v533_v47 = vpop.f32.mrf.mxu0  ;;  %v613_v56 = vadd.f32 %v612_v46, %v439_v40 }
 0x131   : > { %v616_v48 = vpop.f32.mrf.mxu1  ;;  %v534_v54 = vadd.f32 %v533_v47, %v444_v49 }
 0x132   : > { %v535_v50 = vpop.f32.mrf.mxu0  ;;  %v617_v55 = vadd.f32 %v616_v48, %v444_v49 }
 0x133   : > { %v618_v51 = vpop.f32.mrf.mxu1  ;;  %v536_v52 = vadd.f32 %v535_v50, %v444_v49 }
 0x134   : > { %v619_v53 = vadd.f32 %v618_v51, %v444_v49  ;;  %v5868_v49 = vpop.f32.mrf.mxu0 }
 0x135   : > { %978 = vmatprep.subr.mxu0 %v536_v52  ;;  %v5863_v48 = vpop.f32.mrf.mxu1  ;;  %8966 = vst [vmem:[#allocation20_spill] sm:$0xff] %v5868_v49 }
 0x136   : > { %1427 = vmatprep.subr.mxu1 %v619_v53  ;;  %979 = vmatpush1.msra.mxu0 %v534_v54  ;;  %8965 = vst [vmem:[#allocation19_spill] sm:$0xff] %v5863_v48  ;;  %v5876_v52 = vpop.f32.mrf.mxu0 }
 0x137   : > { %1428 = vmatpush1.msra.mxu1 %v617_v55  ;;  %v5871_v50 = vpop.f32.mrf.mxu1  ;;  %8968 = vst [vmem:[#allocation22_spill] sm:$0xff] %v5876_v52 }
 0x138   : > { %8967 = vst [vmem:[#allocation21_spill] sm:$0xff] %v5871_v50 }
 0x16c   : > { %659 = vxpose.xlu1.b32.start.end [1/1] (short) %v530_v57, 128 }
 0x16d   : > { %723 = vxpose.xlu0.b32.start.end [1/1] (short) %v613_v56, 128 }
 0x1ab   : > { %v643_v58 = vpop.trf.xlu1 }
 0x1ac   : > { %4454 = vmatmul.mubr.msk.f32.vlgmr.msra.gmra.mxu0 %vm755_vm1, %v643_v58  ;;  %4518 = vmatmul.mubr.msk.f32.vlgmr.msra.gmra.mxu1 %vm755_vm1, %v643_v58  ;;  %v5710_v11 = vpop.trf.xlu0 }
 0x1ad   : > { %1018 = vmatprep.mubr.f32.mxu0 %v8515_v34  ;;  %1467 = vmatprep.mubr.f32.mxu1 %v8515_v34 }
 0x1af   : > { %v644_v59 = vpop.trf.xlu1 }
 0x1b0   : > { %4455 = vmatmul.mubr.msk.f32.gmra.mxu0 %vm755_vm1, %v644_v59  ;;  %4519 = vmatmul.mubr.msk.f32.gmra.mxu1 %vm755_vm1, %v644_v59  ;;  %v5720_v13 = vpop.trf.xlu0 }
 0x1b1   : > { %1024 = vmatprep.mubr.f32.mxu0 %v8515_v34  ;;  %1473 = vmatprep.mubr.f32.mxu1 %v8515_v34 }
 0x1b3   : > { %v645_v60 = vpop.trf.xlu1 }
 0x1b4   : > { %4456 = vmatmul.mubr.msk.f32.gmra.mxu0 %vm755_vm1, %v645_v60  ;;  %4520 = vmatmul.mubr.msk.f32.gmra.mxu1 %vm755_vm1, %v645_v60  ;;  %v5726_v16 = vpop.trf.xlu0 }
 0x1b5   : > { %1030 = vmatprep.mubr.f32.mxu0 %v8515_v34  ;;  %1479 = vmatprep.mubr.f32.mxu1 %v8515_v34 }
 0x1b7   : > { %v646_v61 = vpop.trf.xlu1 }
 0x1b8   : > { %4457 = vmatmul.mubr.msk.f32.gmra.mxu0 %vm755_vm1, %v646_v61  ;;  %4521 = vmatmul.mubr.msk.f32.gmra.mxu1 %vm755_vm1, %v646_v61  ;;  %v5736_v18 = vpop.trf.xlu0 }
 0x1b9   : > { %1036 = vmatprep.mubr.f32.mxu0 %v8515_v34  ;;  %1485 = vmatprep.mubr.f32.mxu1 %v8515_v34 }
 0x1bb   : > { %v647_v62 = vpop.trf.xlu1 }
 0x1bc   : > { %4458 = vmatmul.mubr.msk.f32.gmra.mxu0 %vm755_vm1, %v647_v62  ;;  %4522 = vmatmul.mubr.msk.f32.gmra.mxu1 %vm755_vm1, %v647_v62  ;;  %v5742_v21 = vpop.trf.xlu0 }
 0x1bd   : > { %1042 = vmatprep.mubr.f32.mxu0 %v8515_v34  ;;  %1491 = vmatprep.mubr.f32.mxu1 %v8515_v34 }
 0x1bf   : > { %v648_v63 = vpop.trf.xlu1 }
 0x1c0   : > { %4459 = vmatmul.mubr.msk.f32.gmra.mxu0 %vm755_vm1, %v648_v63  ;;  %4523 = vmatmul.mubr.msk.f32.gmra.mxu1 %vm755_vm1, %v648_v63  ;;  %v5752_v23 = vpop.trf.xlu0 }
 0x1c1   : > { %1048 = vmatprep.mubr.f32.mxu0 %v8515_v34  ;;  %1497 = vmatprep.mubr.f32.mxu1 %v8515_v34 }
 0x1c3   : > { %v649_v0 = vpop.trf.xlu1 }
 0x1c4   : > { %4460 = vmatmul.mubr.msk.f32.gmra.mxu0 %vm755_vm1, %v649_v0  ;;  %4524 = vmatmul.mubr.msk.f32.gmra.mxu1 %vm755_vm1, %v649_v0  ;;  %v5758_v26 = vpop.trf.xlu0 }
 0x1c5   : > { %1054 = vmatprep.mubr.f32.mxu0 %v8515_v34  ;;  %1503 = vmatprep.mubr.f32.mxu1 %v8515_v34 }
 0x1c7   : > { %v650_v1 = vpop.trf.xlu1 }
 0x1c8   : > { %4461 = vmatmul.mubr.msk.f32.gmra.mxu0 %vm755_vm1, %v650_v1  ;;  %4525 = vmatmul.mubr.msk.f32.gmra.mxu1 %vm755_vm1, %v650_v1  ;;  %v5768_v28 = vpop.trf.xlu0 }
 0x1c9   : > { %1060 = vmatprep.mubr.f32.mxu0 %v8515_v34  ;;  %1509 = vmatprep.mubr.f32.mxu1 %v8515_v34 }
 0x1cb   : > { %v651_v2 = vpop.trf.xlu1 }
 0x1cc   : > { %4462 = vmatmul.mubr.msk.f32.gmra.mxu0 %vm755_vm1, %v651_v2  ;;  %4526 = vmatmul.mubr.msk.f32.gmra.mxu1 %vm755_vm1, %v651_v2  ;;  %v715_v31 = vpop.trf.xlu0 }
 0x1cd   : > { %1066 = vmatprep.mubr.f32.mxu0 %v8515_v34  ;;  %1515 = vmatprep.mubr.f32.mxu1 %v8515_v34 }
 0x1cf   : > { %v652_v3 = vpop.trf.xlu1 }
 0x1d0   : > { %4463 = vmatmul.mubr.msk.f32.gmra.mxu0 %vm755_vm1, %v652_v3  ;;  %4527 = vmatmul.mubr.msk.f32.gmra.mxu1 %vm755_vm1, %v652_v3  ;;  %v716_v33 = vpop.trf.xlu0 }
 0x1d1   : > { %1072 = vmatprep.mubr.f32.mxu0 %v8515_v34  ;;  %1521 = vmatprep.mubr.f32.mxu1 %v8515_v34 }
 0x1d3   : > { %v653_v4 = vpop.trf.xlu1 }
 0x1d4   : > { %4464 = vmatmul.mubr.msk.f32.gmra.mxu0 %vm755_vm1, %v653_v4  ;;  %4528 = vmatmul.mubr.msk.f32.gmra.mxu1 %vm755_vm1, %v653_v4  ;;  %v717_v37 = vpop.trf.xlu0 }
 0x1d5   : > { %1078 = vmatprep.mubr.f32.mxu0 %v8515_v34  ;;  %1527 = vmatprep.mubr.f32.mxu1 %v8515_v34 }
 0x1d7   : > { %v654_v5 = vpop.trf.xlu1 }
 0x1d8   : > { %4465 = vmatmul.mubr.msk.f32.gmra.mxu0 %vm755_vm1, %v654_v5  ;;  %4529 = vmatmul.mubr.msk.f32.gmra.mxu1 %vm755_vm1, %v654_v5  ;;  %v718_v38 = vpop.trf.xlu0 }
 0x1d9   : > { %1084 = vmatprep.mubr.f32.mxu0 %v8515_v34  ;;  %1533 = vmatprep.mubr.f32.mxu1 %v8515_v34 }
 0x1db   : > { %v655_v6 = vpop.trf.xlu1 }
 0x1dc   : > { %4466 = vmatmul.mubr.msk.f32.gmra.mxu0 %vm755_vm1, %v655_v6  ;;  %4530 = vmatmul.mubr.msk.f32.gmra.mxu1 %vm755_vm1, %v655_v6  ;;  %v719_v39 = vpop.trf.xlu0 }
 0x1dd   : > { %1090 = vmatprep.mubr.f32.mxu0 %v8515_v34  ;;  %1539 = vmatprep.mubr.f32.mxu1 %v8515_v34 }
 0x1df   : > { %v656_v7 = vpop.trf.xlu1 }
 0x1e0   : > { %4467 = vmatmul.mubr.msk.f32.gmra.mxu0 %vm755_vm1, %v656_v7  ;;  %4531 = vmatmul.mubr.msk.f32.gmra.mxu1 %vm755_vm1, %v656_v7  ;;  %v720_v40 = vpop.trf.xlu0 }
 0x1e1   : > { %1096 = vmatprep.mubr.f32.mxu0 %v8515_v34  ;;  %1545 = vmatprep.mubr.f32.mxu1 %v8515_v34 }
 0x1e3   : > { %v657_v8 = vpop.trf.xlu1 }
 0x1e4   : > { %4468 = vmatmul.mubr.msk.f32.gmra.mxu0 %vm755_vm1, %v657_v8  ;;  %4532 = vmatmul.mubr.msk.f32.gmra.mxu1 %vm755_vm1, %v657_v8  ;;  %v721_v41 = vpop.trf.xlu0 }
 0x1e5   : > { %1102 = vmatprep.mubr.f32.mxu0 %v8515_v34  ;;  %1551 = vmatprep.mubr.f32.mxu1 %v8515_v34 }
 0x1e7   : > { %v658_v9 = vpop.trf.xlu1 }
 0x1e8   : > { %4469 = vmatmul.mubr.msk.f32.gmra.mxu0 %vm755_vm1, %v658_v9  ;;  %4533 = vmatmul.mubr.msk.f32.gmra.mxu1 %vm755_vm1, %v658_v9  ;;  %v722_v42 = vpop.trf.xlu0 }
 0x1e9   : > { %1108 = vmatprep.mubr.f32.mxu0 %v8515_v34  ;;  %1557 = vmatprep.mubr.f32.mxu1 %v8515_v34 }
 0x1eb   : > { %v675_v10 = vpop.trf.xlu1 }
 0x1ec   : > { %4470 = vmatmul.mubr.msk.f32.gmra.mxu0 %vm755_vm1, %v675_v10  ;;  %4534 = vmatmul.mubr.msk.f32.gmra.mxu1 %vm755_vm1, %v675_v10  ;;  %v739_v43 = vpop.trf.xlu0 }
 0x1ed   : > { %1114 = vmatprep.mubr.f32.mxu0 %v8515_v34  ;;  %1563 = vmatprep.mubr.f32.mxu1 %v8515_v34 }
 0x1ef   : > { %v676_v12 = vpop.trf.xlu1 }
 0x1f0   : > { %4471 = vmatmul.mubr.msk.f32.gmra.mxu0 %vm755_vm1, %v676_v12  ;;  %4535 = vmatmul.mubr.msk.f32.gmra.mxu1 %vm755_vm1, %v676_v12  ;;  %v740_v44 = vpop.trf.xlu0 }
 0x1f1   : > { %1120 = vmatprep.mubr.f32.mxu0 %v8515_v34  ;;  %1569 = vmatprep.mubr.f32.mxu1 %v8515_v34 }
 0x1f3   : > { %v677_v14 = vpop.trf.xlu1 }
 0x1f4   : > { %4472 = vmatmul.mubr.msk.f32.gmra.mxu0 %vm755_vm1, %v677_v14  ;;  %4536 = vmatmul.mubr.msk.f32.gmra.mxu1 %vm755_vm1, %v677_v14  ;;  %v741_v45 = vpop.trf.xlu0 }
 0x1f5   : > { %1126 = vmatprep.mubr.f32.mxu0 %v8515_v34  ;;  %1575 = vmatprep.mubr.f32.mxu1 %v8515_v34 }
 0x1f7   : > { %v678_v15 = vpop.trf.xlu1 }
 0x1f8   : > { %4473 = vmatmul.mubr.msk.f32.gmra.mxu0 %vm755_vm1, %v678_v15  ;;  %4537 = vmatmul.mubr.msk.f32.gmra.mxu1 %vm755_vm1, %v678_v15  ;;  %v742_v46 = vpop.trf.xlu0 }
 0x1f9   : > { %1132 = vmatprep.mubr.f32.mxu0 %v8515_v34  ;;  %1581 = vmatprep.mubr.f32.mxu1 %v8515_v34 }
 0x1fb   : > { %v679_v17 = vpop.trf.xlu1 }
 0x1fc   : > { %4474 = vmatmul.mubr.msk.f32.gmra.mxu0 %vm755_vm1, %v679_v17  ;;  %4538 = vmatmul.mubr.msk.f32.gmra.mxu1 %vm755_vm1, %v679_v17  ;;  %v743_v47 = vpop.trf.xlu0 }
 0x1fd   : > { %1138 = vmatprep.mubr.f32.mxu0 %v8515_v34  ;;  %1587 = vmatprep.mubr.f32.mxu1 %v8515_v34 }
 0x1ff   : > { %v680_v19 = vpop.trf.xlu1 }
 0x200   : > { %4475 = vmatmul.mubr.msk.f32.gmra.mxu0 %vm755_vm1, %v680_v19  ;;  %4539 = vmatmul.mubr.msk.f32.gmra.mxu1 %vm755_vm1, %v680_v19  ;;  %v744_v51 = vpop.trf.xlu0 }
 0x201   : > { %1144 = vmatprep.mubr.f32.mxu0 %v8515_v34  ;;  %1593 = vmatprep.mubr.f32.mxu1 %v8515_v34 }
 0x203   : > { %v681_v20 = vpop.trf.xlu1 }
 0x204   : > { %4476 = vmatmul.mubr.msk.f32.gmra.mxu0 %vm755_vm1, %v681_v20  ;;  %4540 = vmatmul.mubr.msk.f32.gmra.mxu1 %vm755_vm1, %v681_v20  ;;  %v745_v57 = vpop.trf.xlu0 }
 0x205   : > { %1150 = vmatprep.mubr.f32.mxu0 %v8515_v34  ;;  %1599 = vmatprep.mubr.f32.mxu1 %v8515_v34 }
 0x207   : > { %v682_v22 = vpop.trf.xlu1 }
 0x208   : > { %4477 = vmatmul.mubr.msk.f32.gmra.mxu0 %vm755_vm1, %v682_v22  ;;  %4541 = vmatmul.mubr.msk.f32.gmra.mxu1 %vm755_vm1, %v682_v22  ;;  %v746_v0 = vpop.trf.xlu0 }
 0x209   : > { %1156 = vmatprep.mubr.f32.mxu0 %v8515_v34  ;;  %1605 = vmatprep.mubr.f32.mxu1 %v8515_v34 }
 0x20b   : > { %v683_v24 = vpop.trf.xlu1 }
 0x20c   : > { %4478 = vmatmul.mubr.msk.f32.gmra.mxu0 %vm755_vm1, %v683_v24  ;;  %4542 = vmatmul.mubr.msk.f32.gmra.mxu1 %vm755_vm1, %v683_v24  ;;  %v747_v7 = vpop.trf.xlu0 }
 0x20d   : > { %1162 = vmatprep.mubr.f32.mxu0 %v8515_v34  ;;  %1611 = vmatprep.mubr.f32.mxu1 %v8515_v34 }
 0x20f   : > { %v684_v25 = vpop.trf.xlu1 }
 0x210   : > { %4479 = vmatmul.mubr.msk.f32.gmra.mxu0 %vm755_vm1, %v684_v25  ;;  %4543 = vmatmul.mubr.msk.f32.gmra.mxu1 %vm755_vm1, %v684_v25  ;;  %v748_v14 = vpop.trf.xlu0 }
 0x211   : > { %1168 = vmatprep.mubr.f32.mxu0 %v8515_v34  ;;  %1617 = vmatprep.mubr.f32.mxu1 %v8515_v34 }
 0x213   : > { %v685_v27 = vpop.trf.xlu1 }
 0x214   : > { %4480 = vmatmul.mubr.msk.f32.gmra.mxu0 %vm755_vm1, %v685_v27  ;;  %4544 = vmatmul.mubr.msk.f32.gmra.mxu1 %vm755_vm1, %v685_v27 }
 0x215   : > { %1174 = vmatprep.mubr.f32.mxu0 %v8515_v34  ;;  %1623 = vmatprep.mubr.f32.mxu1 %v8515_v34 }
 0x217   : > { %v686_v29 = vpop.trf.xlu1 }
 0x218   : > { %4481 = vmatmul.mubr.msk.f32.gmra.mxu0 %vm755_vm1, %v686_v29  ;;  %4545 = vmatmul.mubr.msk.f32.gmra.mxu1 %vm755_vm1, %v686_v29 }
 0x219   : > { %1180 = vmatprep.mubr.f32.mxu0 %v8515_v34  ;;  %1629 = vmatprep.mubr.f32.mxu1 %v8515_v34 }
 0x21b   : > { %v687_v30 = vpop.trf.xlu1 }
 0x21c   : > { %4482 = vmatmul.mubr.msk.f32.gmra.mxu0 %vm755_vm1, %v687_v30  ;;  %4546 = vmatmul.mubr.msk.f32.gmra.mxu1 %vm755_vm1, %v687_v30 }
 0x21d   : > { %1186 = vmatprep.mubr.f32.mxu0 %v8515_v34  ;;  %1635 = vmatprep.mubr.f32.mxu1 %v8515_v34 }
 0x21f   : > { %v688_v32 = vpop.trf.xlu1 }
 0x220   : > { %4483 = vmatmul.mubr.msk.f32.gmra.mxu0 %vm755_vm1, %v688_v32  ;;  %4547 = vmatmul.mubr.msk.f32.gmra.mxu1 %vm755_vm1, %v688_v32 }
 0x221   : > { %1192 = vmatprep.mubr.f32.mxu0 %v8515_v34  ;;  %1641 = vmatprep.mubr.f32.mxu1 %v8515_v34 }
 0x223   : > { %v689_v35 = vpop.trf.xlu1 }
 0x224   : > { %4484 = vmatmul.mubr.msk.f32.gmra.mxu0 %vm755_vm1, %v689_v35  ;;  %4548 = vmatmul.mubr.msk.f32.gmra.mxu1 %vm755_vm1, %v689_v35 }
 0x225   : > { %1198 = vmatprep.mubr.f32.mxu0 %v8515_v34  ;;  %1647 = vmatprep.mubr.f32.mxu1 %v8515_v34 }
 0x227   : > { %v690_v36 = vpop.trf.xlu1 }
 0x228   : > { %4485 = vmatmul.mubr.msk.f32.gmra.mxu0 %vm755_vm1, %v690_v36  ;;  %4549 = vmatmul.mubr.msk.f32.gmra.mxu1 %vm755_vm1, %v690_v36 }
 0x229   : > { %1204 = vmatprep.mubr.f32.mxu0 %v8515_v34  ;;  %1653 = vmatprep.mubr.f32.mxu1 %v8515_v34 }
 0x22c   : > { %4486 = vmatmul.mubr.msk.f32.gmra.mxu0 %vm755_vm1, %v5710_v11  ;;  %4550 = vmatmul.mubr.msk.f32.gmra.mxu1 %vm755_vm1, %v5710_v11 }
 0x22d   : > { %1210 = vmatprep.mubr.f32.mxu0 %v8515_v34  ;;  %1659 = vmatprep.mubr.f32.mxu1 %v8515_v34 }
 0x230   : > { %4487 = vmatmul.mubr.msk.f32.gmra.mxu0 %vm755_vm1, %v5720_v13  ;;  %4551 = vmatmul.mubr.msk.f32.gmra.mxu1 %vm755_vm1, %v5720_v13 }
 0x231   : > { %1216 = vmatprep.mubr.f32.mxu0 %v8515_v34  ;;  %1665 = vmatprep.mubr.f32.mxu1 %v8515_v34 }
 0x234   : > { %4488 = vmatmul.mubr.msk.f32.gmra.mxu0 %vm755_vm1, %v5726_v16  ;;  %4552 = vmatmul.mubr.msk.f32.gmra.mxu1 %vm755_vm1, %v5726_v16 }
 0x235   : > { %1222 = vmatprep.mubr.f32.mxu0 %v8515_v34  ;;  %1671 = vmatprep.mubr.f32.mxu1 %v8515_v34 }
 0x238   : > { %4489 = vmatmul.mubr.msk.f32.gmra.mxu0 %vm755_vm1, %v5736_v18  ;;  %4553 = vmatmul.mubr.msk.f32.gmra.mxu1 %vm755_vm1, %v5736_v18 }
 0x239   : > { %1228 = vmatprep.mubr.f32.mxu0 %v8515_v34  ;;  %1677 = vmatprep.mubr.f32.mxu1 %v8515_v34 }
 0x23c   : > { %4490 = vmatmul.mubr.msk.f32.gmra.mxu0 %vm755_vm1, %v5742_v21  ;;  %4554 = vmatmul.mubr.msk.f32.gmra.mxu1 %vm755_vm1, %v5742_v21  ;;  %v749_v21 = vpop.trf.xlu0 }
 0x23d   : > { %1234 = vmatprep.mubr.f32.mxu0 %v8515_v34  ;;  %1683 = vmatprep.mubr.f32.mxu1 %v8515_v34 }
 0x240   : > { %4491 = vmatmul.mubr.msk.f32.gmra.mxu0 %vm755_vm1, %v5752_v23  ;;  %4555 = vmatmul.mubr.msk.f32.gmra.mxu1 %vm755_vm1, %v5752_v23 }
 0x241   : > { %1240 = vmatprep.mubr.f32.mxu0 %v8515_v34  ;;  %1689 = vmatprep.mubr.f32.mxu1 %v8515_v34 }
 0x244   : > { %4492 = vmatmul.mubr.msk.f32.gmra.mxu0 %vm755_vm1, %v5758_v26  ;;  %4556 = vmatmul.mubr.msk.f32.gmra.mxu1 %vm755_vm1, %v5758_v26 }
 0x245   : > { %1246 = vmatprep.mubr.f32.mxu0 %v8515_v34  ;;  %1695 = vmatprep.mubr.f32.mxu1 %v8515_v34 }
 0x248   : > { %4493 = vmatmul.mubr.msk.f32.gmra.mxu0 %vm755_vm1, %v5768_v28  ;;  %4557 = vmatmul.mubr.msk.f32.gmra.mxu1 %vm755_vm1, %v5768_v28  ;;  %v750_v28 = vpop.trf.xlu0 }
 0x249   : > { %1252 = vmatprep.mubr.f32.mxu0 %v8515_v34  ;;  %1701 = vmatprep.mubr.f32.mxu1 %v8515_v34 }
 0x24c   : > { %4494 = vmatmul.mubr.msk.f32.gmra.mxu0 %vm755_vm1, %v715_v31  ;;  %4558 = vmatmul.mubr.msk.f32.gmra.mxu1 %vm755_vm1, %v715_v31  ;;  %v751_v36 = vpop.trf.xlu0 }
 0x24d   : > { %1258 = vmatprep.mubr.f32.mxu0 %v8515_v34  ;;  %1707 = vmatprep.mubr.f32.mxu1 %v8515_v34 }
 0x250   : > { %4495 = vmatmul.mubr.msk.f32.gmra.mxu0 %vm755_vm1, %v716_v33  ;;  %4559 = vmatmul.mubr.msk.f32.gmra.mxu1 %vm755_vm1, %v716_v33 }
 0x251   : > { %1264 = vmatprep.mubr.f32.mxu0 %v8515_v34  ;;  %1713 = vmatprep.mubr.f32.mxu1 %v8515_v34 }
 0x254   : > { %4496 = vmatmul.mubr.msk.f32.gmra.mxu0 %vm755_vm1, %v717_v37  ;;  %4560 = vmatmul.mubr.msk.f32.gmra.mxu1 %vm755_vm1, %v717_v37 }
 0x255   : > { %1270 = vmatprep.mubr.f32.mxu0 %v8515_v34  ;;  %1719 = vmatprep.mubr.f32.mxu1 %v8515_v34 }
 0x258   : > { %4497 = vmatmul.mubr.msk.f32.gmra.mxu0 %vm755_vm1, %v718_v38  ;;  %4561 = vmatmul.mubr.msk.f32.gmra.mxu1 %vm755_vm1, %v718_v38 }
 0x259   : > { %1276 = vmatprep.mubr.f32.mxu0 %v8515_v34  ;;  %1725 = vmatprep.mubr.f32.mxu1 %v8515_v34 }
 0x25c   : > { %4498 = vmatmul.mubr.msk.f32.gmra.mxu0 %vm755_vm1, %v719_v39  ;;  %4562 = vmatmul.mubr.msk.f32.gmra.mxu1 %vm755_vm1, %v719_v39 }
 0x25d   : > { %1282 = vmatprep.mubr.f32.mxu0 %v8515_v34  ;;  %1731 = vmatprep.mubr.f32.mxu1 %v8515_v34 }
 0x260   : > { %4499 = vmatmul.mubr.msk.f32.gmra.mxu0 %vm755_vm1, %v720_v40  ;;  %4563 = vmatmul.mubr.msk.f32.gmra.mxu1 %vm755_vm1, %v720_v40 }
 0x261   : > { %1288 = vmatprep.mubr.f32.mxu0 %v8515_v34  ;;  %1737 = vmatprep.mubr.f32.mxu1 %v8515_v34 }
 0x264   : > { %4500 = vmatmul.mubr.msk.f32.gmra.mxu0 %vm755_vm1, %v721_v41  ;;  %4564 = vmatmul.mubr.msk.f32.gmra.mxu1 %vm755_vm1, %v721_v41 }
 0x265   : > { %1294 = vmatprep.mubr.f32.mxu0 %v8515_v34  ;;  %1743 = vmatprep.mubr.f32.mxu1 %v8515_v34 }
 0x268   : > { %4501 = vmatmul.mubr.msk.f32.gmra.mxu0 %vm755_vm1, %v722_v42  ;;  %4565 = vmatmul.mubr.msk.f32.gmra.mxu1 %vm755_vm1, %v722_v42 }
 0x269   : > { %1300 = vmatprep.mubr.f32.mxu0 %v8515_v34  ;;  %1749 = vmatprep.mubr.f32.mxu1 %v8515_v34 }
 0x26c   : > { %v5878_v53 = vpop.f32.mrf.mxu0  ;;  %4502 = vmatmul.mubr.msk.f32.gmra.mxu0 %vm755_vm1, %v739_v43  ;;  %v5881_v54 = vpop.f32.mrf.mxu1  ;;  %4566 = vmatmul.mubr.msk.f32.gmra.mxu1 %vm755_vm1, %v739_v43 }
 0x26d   : > { %8969 = vst [vmem:[#allocation23_spill] sm:$0xff] %v5878_v53  ;;  %8970 = vst [vmem:[#allocation24_spill] sm:$0xff] %v5881_v54  ;;  %1306 = vmatprep.mubr.f32.mxu0 %v8515_v34  ;;  %1755 = vmatprep.mubr.f32.mxu1 %v8515_v34  ;;  %v752_v43 = vpop.trf.xlu0 }
 0x26e   : > { %v5886_v55 = vpop.f32.mrf.mxu0  ;;  %v5888_v56 = vpop.f32.mrf.mxu1 }
 0x26f   : > { %8971 = vst [vmem:[#allocation25_spill] sm:$0xff] %v5886_v55  ;;  %8972 = vst [vmem:[#allocation26_spill] sm:$0xff] %v5888_v56 }
 0x270   : > { %v5890_v58 = vpop.f32.mrf.mxu0  ;;  %4503 = vmatmul.mubr.msk.f32.gmra.mxu0 %vm755_vm1, %v740_v44  ;;  %v5893_v59 = vpop.f32.mrf.mxu1  ;;  %4567 = vmatmul.mubr.msk.f32.gmra.mxu1 %vm755_vm1, %v740_v44 }
 0x271   : > { %8973 = vst [vmem:[#allocation27_spill] sm:$0xff] %v5890_v58  ;;  %8974 = vst [vmem:[#allocation28_spill] sm:$0xff] %v5893_v59  ;;  %1312 = vmatprep.mubr.f32.mxu0 %v8515_v34  ;;  %1761 = vmatprep.mubr.f32.mxu1 %v8515_v34 }
 0x272   : > { %v5898_v60 = vpop.f32.mrf.mxu0  ;;  %v5900_v61 = vpop.f32.mrf.mxu1 }
 0x273   : > { %8975 = vst [vmem:[#allocation29_spill] sm:$0xff] %v5898_v60  ;;  %8976 = vst [vmem:[#allocation30_spill] sm:$0xff] %v5900_v61 }
 0x274   : > { %v5902_v62 = vpop.f32.mrf.mxu0  ;;  %4504 = vmatmul.mubr.msk.f32.gmra.mxu0 %vm755_vm1, %v741_v45  ;;  %v5905_v63 = vpop.f32.mrf.mxu1  ;;  %4568 = vmatmul.mubr.msk.f32.gmra.mxu1 %vm755_vm1, %v741_v45 }
 0x275   : > { %8977 = vst [vmem:[#allocation31_spill] sm:$0xff] %v5902_v62  ;;  %8978 = vst [vmem:[#allocation32_spill] sm:$0xff] %v5905_v63  ;;  %1318 = vmatprep.mubr.f32.mxu0 %v8515_v34  ;;  %1767 = vmatprep.mubr.f32.mxu1 %v8515_v34 }
 0x276   : > { %v5910_v1 = vpop.f32.mrf.mxu0  ;;  %v5912_v2 = vpop.f32.mrf.mxu1 }
 0x277   : > { %8979 = vst [vmem:[#allocation33_spill] sm:$0xff] %v5910_v1  ;;  %8980 = vst [vmem:[#allocation34_spill] sm:$0xff] %v5912_v2  ;;  %v1851_v2 = vmax.f32 %v5890_v58, %v5898_v60 }
 0x278   : > { %v5914_v3 = vpop.f32.mrf.mxu0  ;;  %4505 = vmatmul.mubr.msk.f32.gmra.mxu0 %vm755_vm1, %v742_v46  ;;  %v5917_v4 = vpop.f32.mrf.mxu1  ;;  %4569 = vmatmul.mubr.msk.f32.gmra.mxu1 %vm755_vm1, %v742_v46 }
 0x279   : > { %8981 = vst [vmem:[#allocation35_spill] sm:$0xff] %v5914_v3  ;;  %8982 = vst [vmem:[#allocation36_spill] sm:$0xff] %v5917_v4  ;;  %1324 = vmatprep.mubr.f32.mxu0 %v8515_v34  ;;  %1773 = vmatprep.mubr.f32.mxu1 %v8515_v34 }
 0x27a   : > { %v5922_v5 = vpop.f32.mrf.mxu0  ;;  %v5924_v6 = vpop.f32.mrf.mxu1 }
 0x27b   : > { %8983 = vst [vmem:[#allocation37_spill] sm:$0xff] %v5922_v5  ;;  %8984 = vst [vmem:[#allocation38_spill] sm:$0xff] %v5924_v6  ;;  %v1861_v52 = vmax.f32 %v5914_v3, %v5922_v5 }
 0x27c   : > { %v5926_v8 = vpop.f32.mrf.mxu0  ;;  %4506 = vmatmul.mubr.msk.f32.gmra.mxu0 %vm755_vm1, %v743_v47  ;;  %v5929_v9 = vpop.f32.mrf.mxu1  ;;  %4570 = vmatmul.mubr.msk.f32.gmra.mxu1 %vm755_vm1, %v743_v47 }
 0x27d   : > { %8985 = vst [vmem:[#allocation39_spill] sm:$0xff] %v5926_v8  ;;  %8986 = vst [vmem:[#allocation40_spill] sm:$0xff] %v5929_v9  ;;  %1330 = vmatprep.mubr.f32.mxu0 %v8515_v34  ;;  %1779 = vmatprep.mubr.f32.mxu1 %v8515_v34 }
 0x27e   : > { %v5934_v10 = vpop.f32.mrf.mxu0  ;;  %v5936_v11 = vpop.f32.mrf.mxu1 }
 0x27f   : > { %8987 = vst [vmem:[#allocation41_spill] sm:$0xff] %v5934_v10  ;;  %8988 = vst [vmem:[#allocation42_spill] sm:$0xff] %v5936_v11 }
 0x280   : > { %v5938_v12 = vpop.f32.mrf.mxu0  ;;  %4507 = vmatmul.mubr.msk.f32.gmra.mxu0 %vm755_vm1, %v744_v51  ;;  %v5941_v13 = vpop.f32.mrf.mxu1  ;;  %4571 = vmatmul.mubr.msk.f32.gmra.mxu1 %vm755_vm1, %v744_v51 }
 0x281   : > { %8989 = vst [vmem:[#allocation43_spill] sm:$0xff] %v5938_v12  ;;  %8990 = vst [vmem:[#allocation44_spill] sm:$0xff] %v5941_v13  ;;  %1336 = vmatprep.mubr.f32.mxu0 %v8515_v34  ;;  %1785 = vmatprep.mubr.f32.mxu1 %v8515_v34 }
 0x282   : > { %v5946_v15 = vpop.f32.mrf.mxu0  ;;  %v5948_v16 = vpop.f32.mrf.mxu1 }
 0x283   : > { %8991 = vst [vmem:[#allocation45_spill] sm:$0xff] %v5946_v15  ;;  %8992 = vst [vmem:[#allocation46_spill] sm:$0xff] %v5948_v16 }
 0x284   : > { %v5950_v17 = vpop.f32.mrf.mxu0  ;;  %4508 = vmatmul.mubr.msk.f32.gmra.mxu0 %vm755_vm1, %v745_v57  ;;  %v5953_v18 = vpop.f32.mrf.mxu1  ;;  %4572 = vmatmul.mubr.msk.f32.gmra.mxu1 %vm755_vm1, %v745_v57 }
 0x285   : > { %8993 = vst [vmem:[#allocation47_spill] sm:$0xff] %v5950_v17  ;;  %8994 = vst [vmem:[#allocation48_spill] sm:$0xff] %v5953_v18  ;;  %1342 = vmatprep.mubr.f32.mxu0 %v8515_v34  ;;  %1791 = vmatprep.mubr.f32.mxu1 %v8515_v34 }
 0x286   : > { %v5958_v19 = vpop.f32.mrf.mxu0  ;;  %v5960_v20 = vpop.f32.mrf.mxu1 }
 0x287   : > { %8995 = vst [vmem:[#allocation49_spill] sm:$0xff] %v5958_v19  ;;  %8996 = vst [vmem:[#allocation50_spill] sm:$0xff] %v5960_v20 }
 0x288   : > { %v5962_v22 = vpop.f32.mrf.mxu0  ;;  %4509 = vmatmul.mubr.msk.f32.gmra.mxu0 %vm755_vm1, %v746_v0  ;;  %v5965_v23 = vpop.f32.mrf.mxu1  ;;  %4573 = vmatmul.mubr.msk.f32.gmra.mxu1 %vm755_vm1, %v746_v0 }
 0x289   : > { %8997 = vst [vmem:[#allocation51_spill] sm:$0xff] %v5962_v22  ;;  %8998 = vst [vmem:[#allocation52_spill] sm:$0xff] %v5965_v23  ;;  %1348 = vmatprep.mubr.f32.mxu0 %v8515_v34  ;;  %1797 = vmatprep.mubr.f32.mxu1 %v8515_v34  ;;  %v753_v0 = vpop.trf.xlu0 }
 0x28a   : > { %v5970_v24 = vpop.f32.mrf.mxu0  ;;  %v5972_v25 = vpop.f32.mrf.mxu1 }
 0x28b   : > { %8999 = vst [vmem:[#allocation53_spill] sm:$0xff] %v5970_v24  ;;  %9000 = vst [vmem:[#allocation54_spill] sm:$0xff] %v5972_v25 }
 0x28c   : > { %v5974_v26 = vpop.f32.mrf.mxu0  ;;  %4510 = vmatmul.mubr.msk.f32.gmra.mxu0 %vm755_vm1, %v747_v7  ;;  %v5977_v27 = vpop.f32.mrf.mxu1  ;;  %4574 = vmatmul.mubr.msk.f32.gmra.mxu1 %vm755_vm1, %v747_v7 }
 0x28d   : > { %9001 = vst [vmem:[#allocation55_spill] sm:$0xff] %v5974_v26  ;;  %9002 = vst [vmem:[#allocation56_spill] sm:$0xff] %v5977_v27  ;;  %1354 = vmatprep.mubr.f32.mxu0 %v8515_v34  ;;  %1803 = vmatprep.mubr.f32.mxu1 %v8515_v34  ;;  %v754_v49 = vpop.trf.xlu0 }
 0x28e   : > { %v5982_v29 = vpop.f32.mrf.mxu0  ;;  %v5984_v30 = vpop.f32.mrf.mxu1 }
 0x28f   : > { %9003 = vst [vmem:[#allocation57_spill] sm:$0xff] %v5982_v29  ;;  %9004 = vst [vmem:[#allocation58_spill] sm:$0xff] %v5984_v30 }
 0x290   : > { %v5986_v31 = vpop.f32.mrf.mxu0  ;;  %4511 = vmatmul.mubr.msk.f32.gmra.mxu0 %vm755_vm1, %v748_v14  ;;  %v5989_v32 = vpop.f32.mrf.mxu1  ;;  %4575 = vmatmul.mubr.msk.f32.gmra.mxu1 %vm755_vm1, %v748_v14 }
 0x291   : > { %9005 = vst [vmem:[#allocation59_spill] sm:$0xff] %v5986_v31  ;;  %9006 = vst [vmem:[#allocation60_spill] sm:$0xff] %v5989_v32  ;;  %1360 = vmatprep.mubr.f32.mxu0 %v8515_v34  ;;  %1809 = vmatprep.mubr.f32.mxu1 %v8515_v34 }
 0x292   : > { %v5994_v33 = vpop.f32.mrf.mxu0  ;;  %v5996_v35 = vpop.f32.mrf.mxu1 }
 0x293   : > { %9007 = vst [vmem:[#allocation61_spill] sm:$0xff] %v5994_v33  ;;  %9008 = vst [vmem:[#allocation62_spill] sm:$0xff] %v5996_v35 }
 0x294   : > { %v5998_v37 = vpop.f32.mrf.mxu0  ;;  %4512 = vmatmul.mubr.msk.f32.gmra.mxu0 %vm755_vm1, %v749_v21  ;;  %v6001_v38 = vpop.f32.mrf.mxu1  ;;  %4576 = vmatmul.mubr.msk.f32.gmra.mxu1 %vm755_vm1, %v749_v21 }
 0x295   : > { %9009 = vst [vmem:[#allocation63_spill] sm:$0xff] %v5998_v37  ;;  %9010 = vst [vmem:[#allocation64_spill] sm:$0xff] %v6001_v38  ;;  %1366 = vmatprep.mubr.f32.mxu0 %v8515_v34  ;;  %1815 = vmatprep.mubr.f32.mxu1 %v8515_v34 }
 0x296   : > { %v6006_v39 = vpop.f32.mrf.mxu0  ;;  %v6008_v40 = vpop.f32.mrf.mxu1 }
 0x297   : > { %9011 = vst [vmem:[#allocation65_spill] sm:$0xff] %v6006_v39  ;;  %9012 = vst [vmem:[#allocation66_spill] sm:$0xff] %v6008_v40 }
 0x298   : > { %v6010_v41 = vpop.f32.mrf.mxu0  ;;  %4513 = vmatmul.mubr.msk.f32.gmra.mxu0 %vm755_vm1, %v750_v28  ;;  %v6013_v42 = vpop.f32.mrf.mxu1  ;;  %4577 = vmatmul.mubr.msk.f32.gmra.mxu1 %vm755_vm1, %v750_v28 }
 0x299   : > { %9013 = vst [vmem:[#allocation67_spill] sm:$0xff] %v6010_v41  ;;  %9014 = vst [vmem:[#allocation68_spill] sm:$0xff] %v6013_v42  ;;  %1372 = vmatprep.mubr.f32.mxu0 %v8515_v34  ;;  %1821 = vmatprep.mubr.f32.mxu1 %v8515_v34 }
 0x29a   : > { %v6018_v44 = vpop.f32.mrf.mxu0  ;;  %v6020_v45 = vpop.f32.mrf.mxu1 }
 0x29b   : > { %9015 = vst [vmem:[#allocation69_spill] sm:$0xff] %v6018_v44  ;;  %9016 = vst [vmem:[#allocation70_spill] sm:$0xff] %v6020_v45 }
 0x29c   : > { %v6022_v46 = vpop.f32.mrf.mxu0  ;;  %4514 = vmatmul.mubr.msk.f32.gmra.mxu0 %vm755_vm1, %v751_v36  ;;  %v6025_v47 = vpop.f32.mrf.mxu1  ;;  %4578 = vmatmul.mubr.msk.f32.gmra.mxu1 %vm755_vm1, %v751_v36 }
 0x29d   : > { %9017 = vst [vmem:[#allocation71_spill] sm:$0xff] %v6022_v46  ;;  %9018 = vst [vmem:[#allocation72_spill] sm:$0xff] %v6025_v47  ;;  %1378 = vmatprep.mubr.f32.mxu0 %v8515_v34  ;;  %1827 = vmatprep.mubr.f32.mxu1 %v8515_v34 }
 0x29e   : > { %v6030_v51 = vpop.f32.mrf.mxu0  ;;  %v6032_v57 = vpop.f32.mrf.mxu1 }
 0x29f   : > { %9019 = vst [vmem:[#allocation73_spill] sm:$0xff] %v6030_v51  ;;  %9020 = vst [vmem:[#allocation74_spill] sm:$0xff] %v6032_v57 }
 0x2a0   : > { %v6034_v7 = vpop.f32.mrf.mxu0  ;;  %4515 = vmatmul.mubr.msk.f32.gmra.mxu0 %vm755_vm1, %v752_v43  ;;  %v6037_v14 = vpop.f32.mrf.mxu1  ;;  %4579 = vmatmul.mubr.msk.f32.gmra.mxu1 %vm755_vm1, %v752_v43 }
 0x2a1   : > { %9021 = vst [vmem:[#allocation75_spill] sm:$0xff] %v6034_v7  ;;  %9022 = vst [vmem:[#allocation76_spill] sm:$0xff] %v6037_v14  ;;  %1384 = vmatprep.mubr.f32.mxu0 %v8515_v34  ;;  %1833 = vmatprep.mubr.f32.mxu1 %v8515_v34 }
 0x2a2   : > { %v6042_v21 = vpop.f32.mrf.mxu0  ;;  %v6044_v28 = vpop.f32.mrf.mxu1 }
 0x2a3   : > { %9023 = vst [vmem:[#allocation77_spill] sm:$0xff] %v6042_v21  ;;  %9024 = vst [vmem:[#allocation78_spill] sm:$0xff] %v6044_v28  ;;  %v1911_v5 = vmax.f32 %v6034_v7, %v6042_v21  ;;  %v1852_v21 = vmax.f32 %v1851_v2, %v5893_v59  ;;  %v1906_v7 = vmax.f32 %v6022_v46, %v6030_v51 }
 0x2a4   : > { %v6046_v36 = vpop.f32.mrf.mxu0  ;;  %4516 = vmatmul.mubr.msk.f32.gmra.mxu0 %vm755_vm1, %v753_v0  ;;  %v6049_v48 = vpop.f32.mrf.mxu1  ;;  %4580 = vmatmul.mubr.msk.f32.gmra.mxu1 %vm755_vm1, %v753_v0  ;;  %v1901_v2 = vmax.f32 %v6010_v41, %v6018_v44  ;;  %v1896_v51 = vmax.f32 %v5998_v37, %v6006_v39 }
 0x2a5   : > { %9025 = vst [vmem:[#allocation79_spill] sm:$0xff] %v6046_v36  ;;  %9026 = vst [vmem:[#allocation80_spill] sm:$0xff] %v6049_v48  ;;  %1390 = vmatprep.mubr.f32.mxu0 %v8515_v34  ;;  %1839 = vmatprep.mubr.f32.mxu1 %v8515_v34  ;;  %v1853_v59 = vmax.f32 %v1852_v21, %v5900_v61 }
 0x2a6   : > { %v6054_v43 = vpop.f32.mrf.mxu0  ;;  %v6056_v50 = vpop.f32.mrf.mxu1  ;;  %v1902_v21 = vmax.f32 %v1901_v2, %v6013_v42  ;;  %v1897_v37 = vmax.f32 %v1896_v51, %v6001_v38 }
 0x2a7   : > { %9027 = vst [vmem:[#allocation81_spill] sm:$0xff] %v6054_v43  ;;  %9028 = vst [vmem:[#allocation82_spill] sm:$0xff] %v6056_v50  ;;  %v1916_v56 = vmax.f32 %v6046_v36, %v6054_v43  ;;  %v1862_v36 = vmax.f32 %v1861_v52, %v5917_v4  ;;  %v1912_v4 = vmax.f32 %v1911_v5, %v6037_v14  ;;  %v9078_v14 = vld [vmem:[#allocation32_spill] sm:$0xff] }
 0x2a8   : > { %v6062_v54 = vpop.f32.mrf.mxu0  ;;  %4517 = vmatmul.mubr.msk.f32.gmra.mxu0 %vm755_vm1, %v754_v49  ;;  %v6065_v0 = vpop.f32.mrf.mxu1  ;;  %4581 = vmatmul.mubr.msk.f32.gmra.mxu1 %vm755_vm1, %v754_v49  ;;  %v1903_v44 = vmax.f32 %v1902_v21, %v6020_v45 }
 0x2a9   : > { %9029 = vst [vmem:[#allocation83_spill] sm:$0xff] %v6062_v54  ;;  %9030 = vst [vmem:[#allocation84_spill] sm:$0xff] %v6065_v0  ;;  %v1917_v34 = vmax.f32 %v1916_v56, %v6049_v48 }
 0x2aa   : > { %v6071_v63 = vpop.f32.mrf.mxu0  ;;  %v6073_v11 = vpop.f32.mrf.mxu1 }
 0x2ab   : > { %9031 = vst [vmem:[#allocation85_spill] sm:$0xff] %v6071_v63  ;;  %9032 = vst [vmem:[#allocation86_spill] sm:$0xff] %v6073_v11  ;;  %v1921_v3 = vmax.f32 %v6062_v54, %v6071_v63  ;;  %v1918_v43 = vmax.f32 %v1917_v34, %v6056_v50  ;;  %v1863_v34 = vmax.f32 %v1862_v36, %v5924_v6 }
 0x2ac   : > { %v6081_v49 = vpop.f32.mrf.mxu0  ;;  %v6083_v56 = vpop.f32.mrf.mxu1  ;;  %v1913_v36 = vmax.f32 %v1912_v4, %v6044_v28  ;;  %v9084_v28 = vld [vmem:[#allocation24_spill] sm:$0xff] }
 0x2ad   : > { %9033 = vst [vmem:[#allocation87_spill] sm:$0xff] %v6081_v49  ;;  %9034 = vst [vmem:[#allocation88_spill] sm:$0xff] %v6083_v56  ;;  %1919 = vmax.xlane.f32.xlu0 %v1918_v43  ;;  %v1922_v60 = vmax.f32 %v1921_v3, %v6065_v0 }
 0x2ae   : > { %v6086_v58 = vpop.f32.mrf.mxu0  ;;  %v6088_v48 = vpop.f32.mrf.mxu1 }
 0x2af   : > { %9035 = vst [vmem:[#allocation89_spill] sm:$0xff] %v6086_v58  ;;  %9036 = vst [vmem:[#allocation90_spill] sm:$0xff] %v6088_v48  ;;  %v1923_v52 = vmax.f32 %v1922_v60, %v6073_v11  ;;  %v1907_v60 = vmax.f32 %v1906_v7, %v6025_v47  ;;  %v1898_v47 = vmax.f32 %v1897_v37, %v6008_v40 }
 0x2b0   : > { %v6096_v63 = vpop.f32.mrf.mxu0  ;;  %v6098_v43 = vpop.f32.mrf.mxu1 }
 0x2b1   : > { %9037 = vst [vmem:[#allocation91_spill] sm:$0xff] %v6096_v63  ;;  %9038 = vst [vmem:[#allocation92_spill] sm:$0xff] %v6098_v43  ;;  %1864 = vmax.xlane.f32.xlu0 %v1863_v34  ;;  %1924 = vmax.xlane.f32.xlu1 %v1923_v52  ;;  %v1908_v41 = vmax.f32 %v1907_v60, %v6032_v57 }
 0x2b2   : > { %v6100_v3 = vpop.f32.mrf.mxu0  ;;  %v6102_v0 = vpop.f32.mrf.mxu1 }
 0x2b3   : > { %9039 = vst [vmem:[#allocation93_spill] sm:$0xff] %v6100_v3  ;;  %9040 = vst [vmem:[#allocation94_spill] sm:$0xff] %v6102_v0 }
 0x2b4   : > { %v6109_v5 = vpop.f32.mrf.mxu0  ;;  %v6111_v46 = vpop.f32.mrf.mxu1 }
 0x2b5   : > { %9041 = vst [vmem:[#allocation95_spill] sm:$0xff] %v6109_v5  ;;  %9042 = vst [vmem:[#allocation96_spill] sm:$0xff] %v6111_v46  ;;  %1854 = vmax.xlane.f32.xlu0 %v1853_v59  ;;  %1914 = vmax.xlane.f32.xlu1 %v1913_v36  ;;  %v1891_v36 = vmax.f32 %v5986_v31, %v5994_v33 }
 0x2b6   : > { %v6113_v34 = vpop.f32.mrf.mxu0  ;;  %v6115_v52 = vpop.f32.mrf.mxu1 }
 0x2b7   : > { %9043 = vst [vmem:[#allocation97_spill] sm:$0xff] %v6113_v34  ;;  %9044 = vst [vmem:[#allocation98_spill] sm:$0xff] %v6115_v52  ;;  %v1892_v31 = vmax.f32 %v1891_v36, %v5989_v32 }
 0x2b8   : > { %v6121_v4 = vpop.f32.mrf.mxu0  ;;  %v6123_v7 = vpop.f32.mrf.mxu1 }
 0x2b9   : > { %9045 = vst [vmem:[#allocation99_spill] sm:$0xff] %v6121_v4  ;;  %9046 = vst [vmem:[#allocation100_spill] sm:$0xff] %v6123_v7  ;;  %1909 = vmax.xlane.f32.xlu1 %v1908_v41  ;;  %v1886_v41 = vmax.f32 %v5974_v26, %v5982_v29  ;;  %v1893_v45 = vmax.f32 %v1892_v31, %v5996_v35 }
 0x2ba   : > { %v6125_v61 = vpop.f32.mrf.mxu0  ;;  %v6127_v59 = vpop.f32.mrf.mxu1 }
 0x2bb   : > { %9047 = vst [vmem:[#allocation101_spill] sm:$0xff] %v6125_v61  ;;  %9048 = vst [vmem:[#allocation102_spill] sm:$0xff] %v6127_v59  ;;  %v1887_v26 = vmax.f32 %v1886_v41, %v5977_v27 }
 0x2bc   : > { %v6133_v39 = vpop.f32.mrf.mxu0  ;;  %v6135_v60 = vpop.f32.mrf.mxu1 }
 0x2bd   : > { %9049 = vst [vmem:[#allocation103_spill] sm:$0xff] %v6133_v39  ;;  %9050 = vst [vmem:[#allocation104_spill] sm:$0xff] %v6135_v60  ;;  %1904 = vmax.xlane.f32.xlu1 %v1903_v44  ;;  %v1881_v44 = vmax.f32 %v5962_v22, %v5970_v24  ;;  %v1888_v40 = vmax.f32 %v1887_v26, %v5984_v30 }
 0x2be   : > { %v6137_v2 = vpop.f32.mrf.mxu0  ;;  %v6139_v42 = vpop.f32.mrf.mxu1 }
 0x2bf   : > { %9051 = vst [vmem:[#allocation105_spill] sm:$0xff] %v6137_v2  ;;  %9052 = vst [vmem:[#allocation106_spill] sm:$0xff] %v6139_v42  ;;  %v1882_v22 = vmax.f32 %v1881_v44, %v5965_v23 }
 0x2c0   : > { %v6145_v33 = vpop.f32.mrf.mxu0  ;;  %v6147_v21 = vpop.f32.mrf.mxu1 }
 0x2c1   : > { %9053 = vst [vmem:[#allocation107_spill] sm:$0xff] %v6145_v33  ;;  %9054 = vst [vmem:[#allocation108_spill] sm:$0xff] %v6147_v21  ;;  %1899 = vmax.xlane.f32.xlu1 %v1898_v47  ;;  %v1876_v47 = vmax.f32 %v5950_v17, %v5958_v19  ;;  %v1883_v35 = vmax.f32 %v1882_v22, %v5972_v25 }
 0x2c2   : > { %v6149_v51 = vpop.f32.mrf.mxu0  ;;  %v6151_v38 = vpop.f32.mrf.mxu1 }
 0x2c3   : > { %9055 = vst [vmem:[#allocation109_spill] sm:$0xff] %v6149_v51  ;;  %9056 = vst [vmem:[#allocation110_spill] sm:$0xff] %v6151_v38  ;;  %v1877_v17 = vmax.f32 %v1876_v47, %v5953_v18 }
 0x2c4   : > { %v6157_v29 = vpop.f32.mrf.mxu0  ;;  %v6159_v37 = vpop.f32.mrf.mxu1 }
 0x2c5   : > { %9057 = vst [vmem:[#allocation111_spill] sm:$0xff] %v6157_v29  ;;  %9058 = vst [vmem:[#allocation112_spill] sm:$0xff] %v6159_v37  ;;  %1894 = vmax.xlane.f32.xlu1 %v1893_v45  ;;  %v1871_v45 = vmax.f32 %v5938_v12, %v5946_v15  ;;  %v1878_v30 = vmax.f32 %v1877_v17, %v5960_v20  ;;  %v9077_v20 = vld [vmem:[#allocation42_spill] sm:$0xff] }
 0x2c6   : > { %v6161_v36 = vpop.f32.mrf.mxu0  ;;  %v6163_v32 = vpop.f32.mrf.mxu1 }
 0x2c7   : > { %9059 = vst [vmem:[#allocation113_spill] sm:$0xff] %v6161_v36  ;;  %9060 = vst [vmem:[#allocation114_spill] sm:$0xff] %v6163_v32  ;;  %v1872_v12 = vmax.f32 %v1871_v45, %v5941_v13 }
 0x2c8   : > { %v6169_v24 = vpop.f32.mrf.mxu0  ;;  %v6171_v31 = vpop.f32.mrf.mxu1 }
 0x2c9   : > { %9061 = vst [vmem:[#allocation115_spill] sm:$0xff] %v6169_v24  ;;  %9062 = vst [vmem:[#allocation116_spill] sm:$0xff] %v6171_v31  ;;  %1889 = vmax.xlane.f32.xlu1 %v1888_v40  ;;  %v1866_v40 = vmax.f32 %v5926_v8, %v5934_v10  ;;  %v1873_v25 = vmax.f32 %v1872_v12, %v5948_v16 }
 0x2ca   : > { %v6173_v41 = vpop.f32.mrf.mxu0  ;;  %v6175_v27 = vpop.f32.mrf.mxu1 }
 0x2cb   : > { %9063 = vst [vmem:[#allocation117_spill] sm:$0xff] %v6173_v41  ;;  %9064 = vst [vmem:[#allocation118_spill] sm:$0xff] %v6175_v27  ;;  %v1867_v8 = vmax.f32 %v1866_v40, %v5929_v9 }
 0x2cc   : > { %v6181_v19 = vpop.f32.mrf.mxu0  ;;  %v6183_v26 = vpop.f32.mrf.mxu1 }
 0x2cd   : > { %9065 = vst [vmem:[#allocation119_spill] sm:$0xff] %v6181_v19  ;;  %9066 = vst [vmem:[#allocation120_spill] sm:$0xff] %v6183_v26  ;;  %1884 = vmax.xlane.f32.xlu1 %v1883_v35  ;;  %v1856_v35 = vmax.f32 %v5902_v62, %v5910_v1  ;;  %v1868_v57 = vmax.f32 %v1867_v8, %v9077_v20 }
 0x2ce   : > { %v6185_v44 = vpop.f32.mrf.mxu0  ;;  %v6187_v23 = vpop.f32.mrf.mxu1 }
 0x2cf   : > { %9067 = vst [vmem:[#allocation121_spill] sm:$0xff] %v6185_v44  ;;  %9068 = vst [vmem:[#allocation122_spill] sm:$0xff] %v6187_v23  ;;  %v1857_v62 = vmax.f32 %v1856_v35, %v9078_v14 }
 0x2d0   : > { %v6193_v15 = vpop.f32.mrf.mxu0  ;;  %v6195_v22 = vpop.f32.mrf.mxu1 }
 0x2d1   : > { %9069 = vst [vmem:[#allocation123_spill] sm:$0xff] %v6193_v15  ;;  %9070 = vst [vmem:[#allocation124_spill] sm:$0xff] %v6195_v22  ;;  %1879 = vmax.xlane.f32.xlu1 %v1878_v30  ;;  %v1846_v30 = vmax.f32 %v5878_v53, %v5886_v55  ;;  %v9089_v53 = vld [vmem:[#allocation26_spill] sm:$0xff] }
 0x2d2   : > { %v6197_v47 = vpop.f32.mrf.mxu0  ;;  %v6199_v18 = vpop.f32.mrf.mxu1 }
 0x2d3   : > { %9071 = vst [vmem:[#allocation125_spill] sm:$0xff] %v6197_v47  ;;  %9072 = vst [vmem:[#allocation126_spill] sm:$0xff] %v6199_v18  ;;  %v1847_v6 = vmax.f32 %v1846_v30, %v9084_v28 }
 0x2d4   : > { %v6205_v10 = vpop.f32.mrf.mxu0  ;;  %v6207_v17 = vpop.f32.mrf.mxu1 }
 0x2d5   : > { %9073 = vst [vmem:[#allocation127_spill] sm:$0xff] %v6205_v10  ;;  %9074 = vst [vmem:[#allocation128_spill] sm:$0xff] %v6207_v17  ;;  %1874 = vmax.xlane.f32.xlu1 %v1873_v25  ;;  %v9083_v25 = vld [vmem:[#allocation34_spill] sm:$0xff]  ;;  %v1848_v14 = vmax.f32 %v1847_v6, %v9089_v53 }
 0x2d6   : > { %v6209_v45 = vpop.f32.mrf.mxu0  ;;  %v6211_v13 = vpop.f32.mrf.mxu1  ;;  %v1858_v16 = vmax.f32 %v1857_v62, %v9083_v25 }
 0x2d7   : > { %9075 = vst [vmem:[#allocation129_spill] sm:$0xff] %v6209_v45  ;;  %9076 = vst [vmem:[#allocation130_spill] sm:$0xff] %v6211_v13  ;;  %v1976_v59 = vmax.f32 %v6205_v10, %v6209_v45  ;;  %v1966_v10 = vmax.f32 %v6181_v19, %v6185_v44 }
 0x2d8   : > { %v6217_v1 = vpop.f32.mrf.mxu0  ;;  %v6219_v12 = vpop.f32.mrf.mxu1 }
 0x2d9   : > { %9079 = vst [vmem:[#allocation131_spill] sm:$0xff] %v6217_v1  ;;  %9080 = vst [vmem:[#allocation132_spill] sm:$0xff] %v6219_v12  ;;  %1869 = vmax.xlane.f32.xlu1 %v1868_v57  ;;  %v1967_v44 = vmax.f32 %v1966_v10, %v6183_v26  ;;  %v1946_v10 = vmax.f32 %v6133_v39, %v6137_v2 }
 0x2da   : > { %v6221_v40 = vpop.f32.mrf.mxu0  ;;  %v6223_v9 = vpop.f32.mrf.mxu1 }
 0x2db   : > { %9081 = vst [vmem:[#allocation133_spill] sm:$0xff] %v6221_v40  ;;  %9082 = vst [vmem:[#allocation134_spill] sm:$0xff] %v6223_v9  ;;  %v1947_v2 = vmax.f32 %v1946_v10, %v6135_v60  ;;  %v1926_v10 = vmax.f32 %v6081_v49, %v6086_v58 }
 0x2dc   : > { %v6227_v11 = vpop.f32.mrf.mxu0  ;;  %v6229_v55 = vpop.f32.mrf.mxu1 }
 0x2dd   : > { %9085 = vst [vmem:[#allocation135_spill] sm:$0xff] %v6227_v11  ;;  %9086 = vst [vmem:[#allocation136_spill] sm:$0xff] %v6229_v55  ;;  %1859 = vmax.xlane.f32.xlu1 %v1858_v16 }
 0x2de   : > { %v6231_v8 = vpop.f32.mrf.mxu0  ;;  %v6233_v35 = vpop.f32.mrf.mxu1 }
 0x2df   : > { %9087 = vst [vmem:[#allocation137_spill] sm:$0xff] %v6231_v8  ;;  %9088 = vst [vmem:[#allocation138_spill] sm:$0xff] %v6233_v35  ;;  %v1986_v6 = vmax.f32 %v6227_v11, %v6231_v8 }
 0x2e0   : > { %v6236_v57 = vpop.f32.mrf.mxu0  ;;  %v6238_v20 = vpop.f32.mrf.mxu1 }
 0x2e1   : > { %9090 = vst [vmem:[#allocation139_spill] sm:$0xff] %v6236_v57  ;;  %9091 = vst [vmem:[#allocation140_spill] sm:$0xff] %v6238_v20  ;;  %1849 = vmax.xlane.f32.xlu1 %v1848_v14  ;;  %v1987_v38 = vmax.f32 %v1986_v6, %v6229_v55  ;;  %v1977_v6 = vmax.f32 %v1976_v59, %v6207_v17  ;;  %v1956_v59 = vmax.f32 %v6157_v29, %v6161_v36 }
 0x2e2   : > { %v6240_v54 = vpop.f32.mrf.mxu0  ;;  %v6242_v62 = vpop.f32.mrf.mxu1 }
 0x2e3   : > { %9092 = vst [vmem:[#allocation141_spill] sm:$0xff] %v6240_v54  ;;  %9093 = vst [vmem:[#allocation142_spill] sm:$0xff] %v6242_v62  ;;  %v1991_v8 = vmax.f32 %v6236_v57, %v6240_v54  ;;  %v1981_v54 = vmax.f32 %v6217_v1, %v6221_v40  ;;  %v1957_v36 = vmax.f32 %v1956_v59, %v6159_v37 }
 0x2e4   : > { %v6244_v30 = vpop.f32.mrf.mxu0  ;;  %v6246_v28 = vpop.f32.mrf.mxu1  ;;  %v1936_v59 = vmax.f32 %v6109_v5, %v6113_v34 }
 0x2e5   : > { %9094 = vst [vmem:[#allocation143_spill] sm:$0xff] %v6244_v30  ;;  %9095 = vst [vmem:[#allocation144_spill] sm:$0xff] %v6246_v28 }
 0x2e6   : > { %v6248_v16 = vpop.f32.mrf.mxu0  ;;  %v6250_v25 = vpop.f32.mrf.mxu1  ;;  %v1937_v34 = vmax.f32 %v1936_v59, %v6111_v46  ;;  %v1927_v59 = vmax.f32 %v1926_v10, %v6083_v56  ;;  %v1931_v46 = vmax.f32 %v6096_v63, %v6100_v3  ;;  %v9133_v3 = vld [vmem:[#allocation102_spill] sm:$0xff] }
 0x2e7   : > { %9096 = vst [vmem:[#allocation145_spill] sm:$0xff] %v6248_v16  ;;  %9097 = vst [vmem:[#allocation146_spill] sm:$0xff] %v6250_v25  ;;  %v1996_v53 = vmax.f32 %v6244_v30, %v6248_v16 }
 0x2e8   : > { %v6256_v50 = vpop.f32.mrf.mxu0  ;;  %v6258_v14 = vpop.f32.mrf.mxu1 }
 0x2e9   : > { %9098 = vst [vmem:[#allocation147_spill] sm:$0xff] %v6256_v50  ;;  %9099 = vst [vmem:[#allocation148_spill] sm:$0xff] %v6258_v14  ;;  %v1997_v0 = vmax.f32 %v1996_v53, %v6246_v28 }
 0x2ea   : > { %v6263_v43 = vpop.f32.mrf.mxu0  ;;  %v6265_v48 = vpop.f32.mrf.mxu1 }
 0x2eb   : > { %9100 = vst [vmem:[#allocation149_spill] sm:$0xff] %v6263_v43  ;;  %9101 = vst [vmem:[#allocation150_spill] sm:$0xff] %v6265_v48  ;;  %v2001_v11 = vmax.f32 %v6256_v50, %v6263_v43  ;;  %v1998_v16 = vmax.f32 %v1997_v0, %v6250_v25  ;;  %v1992_v0 = vmax.f32 %v1991_v8, %v6238_v20 }
 0x2ec   : > { %v6273_v30 = vpop.f32.mrf.mxu0  ;;  %v6275_v53 = vpop.f32.mrf.mxu1  ;;  %v1988_v25 = vmax.f32 %v1987_v38, %v6233_v35  ;;  %v1971_v38 = vmax.f32 %v6193_v15, %v6197_v47  ;;  %v1978_v8 = vmax.f32 %v1977_v6, %v6211_v13 }
 0x2ed   : > { %9102 = vst [vmem:[#allocation151_spill] sm:$0xff] %v6273_v30  ;;  %9103 = vst [vmem:[#allocation152_spill] sm:$0xff] %v6275_v53  ;;  %v2002_v45 = vmax.f32 %v2001_v11, %v6258_v14  ;;  %1999 = vmax.xlane.f32.xlu1 %v1998_v16  ;;  %v1993_v1 = vmax.f32 %v1992_v0, %v6242_v62  ;;  %v1968_v0 = vmax.f32 %v1967_v44, %v6187_v23 }
 0x2ee   : > { %v6281_v55 = vpop.f32.mrf.mxu0  ;;  %v6283_v57 = vpop.f32.mrf.mxu1  ;;  %v1972_v6 = vmax.f32 %v1971_v38, %v6195_v22  ;;  %v1951_v44 = vmax.f32 %v6145_v33, %v6149_v51  ;;  %v1958_v38 = vmax.f32 %v1957_v36, %v6163_v32  ;;  %v1941_v36 = vmax.f32 %v6121_v4, %v6125_v61 }
 0x2ef   : > { %9104 = vst [vmem:[#allocation153_spill] sm:$0xff] %v6281_v55  ;;  %9105 = vst [vmem:[#allocation154_spill] sm:$0xff] %v6283_v57  ;;  %v2003_v28 = vmax.f32 %v2002_v45, %v6265_v48  ;;  %v1982_v45 = vmax.f32 %v1981_v54, %v6219_v12  ;;  %v1961_v54 = vmax.f32 %v6169_v24, %v6173_v41 }
 0x2f0   : > { %v6290_v11 = vpop.f32.mrf.mxu0  ;;  %v6292_v16 = vpop.f32.mrf.mxu1  ;;  %v1973_v24 = vmax.f32 %v1972_v6, %v6199_v18  ;;  %v1952_v6 = vmax.f32 %v1951_v44, %v6147_v21  ;;  %v1942_v44 = vmax.f32 %v1941_v36, %v6123_v7  ;;  %v9132_v21 = vld [vmem:[#allocation92_spill] sm:$0xff] }
 0x2f1   : > { %9106 = vst [vmem:[#allocation155_spill] sm:$0xff] %v6290_v11  ;;  %9107 = vst [vmem:[#allocation156_spill] sm:$0xff] %v6292_v16  ;;  %1989 = vmax.xlane.f32.xlu1 %v1988_v25  ;;  %2004 = vmax.xlane.f32.xlu0 %v2003_v28  ;;  %v1983_v15 = vmax.f32 %v1982_v45, %v6223_v9  ;;  %v1962_v45 = vmax.f32 %v1961_v54, %v6171_v31 }
 0x2f2   : > { %v6297_v19 = vpop.f32.mrf.mxu0  ;;  %v6299_v17 = vpop.f32.mrf.mxu1  ;;  %v1948_v54 = vmax.f32 %v1947_v2, %v6139_v42  ;;  %v1938_v2 = vmax.f32 %v1937_v34, %v6115_v52  ;;  %v1932_v63 = vmax.f32 %v1931_v46, %v9132_v21  ;;  %v1943_v34 = vmax.f32 %v1942_v44, %v9133_v3 }
 0x2f3   : > { %9108 = vst [vmem:[#allocation157_spill] sm:$0xff] %v6297_v19  ;;  %9109 = vst [vmem:[#allocation158_spill] sm:$0xff] %v6299_v17  ;;  %v1963_v33 = vmax.f32 %v1962_v45, %v6175_v27  ;;  %v9126_v45 = vld [vmem:[#allocation110_spill] sm:$0xff] }
 0x2f4   : > { %v6306_v25 = vpop.f32.mrf.mxu0  ;;  %v6308_v28 = vpop.f32.mrf.mxu1  ;;  %v1953_v4 = vmax.f32 %v1952_v6, %v9126_v45 }
 0x2f5   : > { %9110 = vst [vmem:[#allocation159_spill] sm:$0xff] %v6306_v25  ;;  %9111 = vst [vmem:[#allocation160_spill] sm:$0xff] %v6308_v28  ;;  %1979 = vmax.xlane.f32.xlu1 %v1978_v8  ;;  %1994 = vmax.xlane.f32.xlu0 %v1993_v1 }
 0x2f6   : > { %v6313_v29 = vpop.f32.mrf.mxu0  ;;  %v6315_v26 = vpop.f32.mrf.mxu1 }
 0x2f7   : > { %9112 = vst [vmem:[#allocation161_spill] sm:$0xff] %v6313_v29  ;;  %9113 = vst [vmem:[#allocation162_spill] sm:$0xff] %v6315_v26 }
 0x2f8   : > { %v6322_v8 = vpop.f32.mrf.mxu0  ;;  %v6324_v1 = vpop.f32.mrf.mxu1 }
 0x2f9   : > { %9114 = vst [vmem:[#allocation163_spill] sm:$0xff] %v6322_v8  ;;  %9115 = vst [vmem:[#allocation164_spill] sm:$0xff] %v6324_v1  ;;  %1969 = vmax.xlane.f32.xlu1 %v1968_v0  ;;  %1984 = vmax.xlane.f32.xlu0 %v1983_v15 }
 0x2fa   : > { %v6329_v39 = vpop.f32.mrf.mxu0  ;;  %v6331_v37 = vpop.f32.mrf.mxu1 }
 0x2fb   : > { %9116 = vst [vmem:[#allocation165_spill] sm:$0xff] %v6329_v39  ;;  %9117 = vst [vmem:[#allocation166_spill] sm:$0xff] %v6331_v37 }
 0x2fc   : > { %v6338_v0 = vpop.f32.mrf.mxu0  ;;  %v6340_v15 = vpop.f32.mrf.mxu1 }
 0x2fd   : > { %9118 = vst [vmem:[#allocation167_spill] sm:$0xff] %v6338_v0  ;;  %9119 = vst [vmem:[#allocation168_spill] sm:$0xff] %v6340_v15  ;;  %1959 = vmax.xlane.f32.xlu1 %v1958_v38  ;;  %1974 = vmax.xlane.f32.xlu0 %v1973_v24 }
 0x2fe   : > { %v6345_v5 = vpop.f32.mrf.mxu0  ;;  %v6347_v60 = vpop.f32.mrf.mxu1 }
 0x2ff   : > { %9120 = vst [vmem:[#allocation169_spill] sm:$0xff] %v6345_v5  ;;  %9121 = vst [vmem:[#allocation170_spill] sm:$0xff] %v6347_v60 }
 0x300   : > { %v6354_v38 = vpop.f32.mrf.mxu0  ;;  %v6356_v24 = vpop.f32.mrf.mxu1 }
 0x301   : > { %9122 = vst [vmem:[#allocation171_spill] sm:$0xff] %v6354_v38  ;;  %9123 = vst [vmem:[#allocation172_spill] sm:$0xff] %v6356_v24  ;;  %1949 = vmax.xlane.f32.xlu1 %v1948_v54  ;;  %1964 = vmax.xlane.f32.xlu0 %v1963_v33  ;;  %v9131_v54 = vld [vmem:[#allocation90_spill] sm:$0xff] }
 0x302   : > { %v6359_v58 = vpop.f32.mrf.mxu0  ;;  %v6361_v49 = vpop.f32.mrf.mxu1  ;;  %v1928_v56 = vmax.f32 %v1927_v59, %v9131_v54 }
 0x303   : > { %9124 = vst [vmem:[#allocation173_spill] sm:$0xff] %v6359_v58  ;;  %9125 = vst [vmem:[#allocation174_spill] sm:$0xff] %v6361_v49 }
 0x304   : > { %v6368_v61 = vpop.f32.mrf.mxu0  ;;  %v6370_v42 = vpop.f32.mrf.mxu1 }
 0x305   : > { %9127 = vst [vmem:[#allocation175_spill] sm:$0xff] %v6368_v61  ;;  %9128 = vst [vmem:[#allocation176_spill] sm:$0xff] %v6370_v42  ;;  %1939 = vmax.xlane.f32.xlu1 %v1938_v2  ;;  %1954 = vmax.xlane.f32.xlu0 %v1953_v4  ;;  %v9138_v4 = vld [vmem:[#allocation94_spill] sm:$0xff] }
 0x306   : > { %v6372_v33 = vpop.f32.mrf.mxu0  ;;  %v6374_v10 = vpop.f32.mrf.mxu1  ;;  %v1933_v7 = vmax.f32 %v1932_v63, %v9138_v4 }
 0x307   : > { %9129 = vst [vmem:[#allocation177_spill] sm:$0xff] %v6372_v33  ;;  %9130 = vst [vmem:[#allocation178_spill] sm:$0xff] %v6374_v10 }
 0x308   : > { %v6379_v52 = vpop.f32.mrf.mxu0  ;;  %v6381_v36 = vpop.f32.mrf.mxu1 }
 0x309   : > { %9134 = vst [vmem:[#allocation179_spill] sm:$0xff] %v6379_v52  ;;  %9135 = vst [vmem:[#allocation180_spill] sm:$0xff] %v6381_v36  ;;  %1929 = vmax.xlane.f32.xlu1 %v1928_v56  ;;  %1944 = vmax.xlane.f32.xlu0 %v1943_v34 }
 0x30a   : > { %v6383_v6 = vpop.f32.mrf.mxu0  ;;  %v6385_v2 = vpop.f32.mrf.mxu1 }
 0x30b   : > { %9136 = vst [vmem:[#allocation181_spill] sm:$0xff] %v6383_v6  ;;  %9137 = vst [vmem:[#allocation182_spill] sm:$0xff] %v6385_v2 }
 0x30c   : > { %v6388_v45 = vpop.f32.mrf.mxu0  ;;  %v6390_v51 = vpop.f32.mrf.mxu1 }
 0x30d   : > { %9139 = vst [vmem:[#allocation183_spill] sm:$0xff] %v6388_v45  ;;  %9140 = vst [vmem:[#allocation184_spill] sm:$0xff] %v6390_v51  ;;  %1934 = vmax.xlane.f32.xlu0 %v1933_v7 }
 0x30e   : > { %v6392_v46 = vpop.f32.mrf.mxu0  ;;  %v6394_v59 = vpop.f32.mrf.mxu1 }
 0x30f   : > { %9141 = vst [vmem:[#allocation185_spill] sm:$0xff] %v6392_v46  ;;  %9142 = vst [vmem:[#allocation186_spill] sm:$0xff] %v6394_v59 }
 0x310   : > { %v6396_v44 = vpop.f32.mrf.mxu0  ;;  %v6398_v21 = vpop.f32.mrf.mxu1 }
 0x311   : > { %9143 = vst [vmem:[#allocation187_spill] sm:$0xff] %v6396_v44  ;;  %9144 = vst [vmem:[#allocation188_spill] sm:$0xff] %v6398_v21 }
 0x312   : > { %v6400_v56 = vpop.f32.mrf.mxu0  ;;  %v6402_v34 = vpop.f32.mrf.mxu1 }
 0x313   : > { %9145 = vst [vmem:[#allocation189_spill] sm:$0xff] %v6400_v56  ;;  %9146 = vst [vmem:[#allocation190_spill] sm:$0xff] %v6402_v34 }
 0x314   : > { %v6404_v54 = vpop.f32.mrf.mxu0  ;;  %v6406_v63 = vpop.f32.mrf.mxu1 }
 0x315   : > { %9147 = vst [vmem:[#allocation191_spill] sm:$0xff] %v6404_v54  ;;  %9148 = vst [vmem:[#allocation192_spill] sm:$0xff] %v6406_v63 }
 0x316   : > { %v6408_v4 = vpop.f32.mrf.mxu0  ;;  %v6410_v3 = vpop.f32.mrf.mxu1 }
 0x317   : > { %9149 = vst [vmem:[#allocation193_spill] sm:$0xff] %v6408_v4  ;;  %9150 = vst [vmem:[#allocation194_spill] sm:$0xff] %v6410_v3  ;;  %v2056_v37 = vmax.f32 %v6404_v54, %v6408_v4  ;;  %v2046_v54 = vmax.f32 %v6388_v45, %v6392_v46 }
 0x318   : > { %v6412_v7 = vpop.f32.mrf.mxu0  ;;  %v6414_v32 = vpop.f32.mrf.mxu1 }
 0x319   : > { %9151 = vst [vmem:[#allocation195_spill] sm:$0xff] %v6412_v7  ;;  %9152 = vst [vmem:[#allocation196_spill] sm:$0xff] %v6414_v32  ;;  %v2047_v46 = vmax.f32 %v2046_v54, %v6390_v51  ;;  %v2041_v54 = vmax.f32 %v6379_v52, %v6383_v6 }
 0x31a   : > { %v6416_v31 = vpop.f32.mrf.mxu0  ;;  %v6418_v27 = vpop.f32.mrf.mxu1 }
 0x31b   : > { %9153 = vst [vmem:[#allocation197_spill] sm:$0xff] %v6416_v31  ;;  %9154 = vst [vmem:[#allocation198_spill] sm:$0xff] %v6418_v27 }
 0x31c   : > { %v6420_v41 = vpop.f32.mrf.mxu0  ;;  %v6422_v23 = vpop.f32.mrf.mxu1 }
 0x31d   : > { %9155 = vst [vmem:[#allocation199_spill] sm:$0xff] %v6420_v41  ;;  %9156 = vst [vmem:[#allocation200_spill] sm:$0xff] %v6422_v23 }
 0x31e   : > { %v6424_v22 = vpop.f32.mrf.mxu0  ;;  %v6426_v18 = vpop.f32.mrf.mxu1 }
 0x31f   : > { %9157 = vst [vmem:[#allocation201_spill] sm:$0xff] %v6424_v22  ;;  %9158 = vst [vmem:[#allocation202_spill] sm:$0xff] %v6426_v18  ;;  %v2066_v14 = vmax.f32 %v6420_v41, %v6424_v22 }
 0x320   : > { %v6428_v47 = vpop.f32.mrf.mxu0  ;;  %v6430_v13 = vpop.f32.mrf.mxu1 }
 0x321   : > { %9159 = vst [vmem:[#allocation203_spill] sm:$0xff] %v6428_v47  ;;  %9160 = vst [vmem:[#allocation204_spill] sm:$0xff] %v6430_v13  ;;  %v2067_v49 = vmax.f32 %v2066_v14, %v6422_v23  ;;  %v2057_v14 = vmax.f32 %v2056_v37, %v6406_v63  ;;  %v2036_v37 = vmax.f32 %v6368_v61, %v6372_v33 }
 0x322   : > { %v6432_v12 = vpop.f32.mrf.mxu0  ;;  %v6434_v9 = vpop.f32.mrf.mxu1  ;;  %v2006_v61 = vmax.f32 %v6273_v30, %v6281_v55  ;;  %v9185_v55 = vld [vmem:[#allocation80_spill] sm:$0xff] }
 0x323   : > { %9161 = vst [vmem:[#allocation205_spill] sm:$0xff] %v6432_v12  ;;  %9162 = vst [vmem:[#allocation206_spill] sm:$0xff] %v6434_v9  ;;  %v2071_v22 = vmax.f32 %v6428_v47, %v6432_v12  ;;  %v2061_v12 = vmax.f32 %v6412_v7, %v6416_v31 }
 0x324   : > { %v6436_v40 = vpop.f32.mrf.mxu0  ;;  %v6438_v35 = vpop.f32.mrf.mxu1  ;;  %v6531_v6 = vmax.f32 %v2006_v61, %v6275_v53 }
 0x325   : > { %9163 = vst [vmem:[#allocation207_spill] sm:$0xff] %v6436_v40  ;;  %9164 = vst [vmem:[#allocation208_spill] sm:$0xff] %v6438_v35 }
 0x326   : > { %v6440_v20 = vpop.f32.mrf.mxu0  ;;  %v6442_v62 = vpop.f32.mrf.mxu1 }
 0x327   : > { %9165 = vst [vmem:[#allocation209_spill] sm:$0xff] %v6440_v20  ;;  %9166 = vst [vmem:[#allocation210_spill] sm:$0xff] %v6442_v62  ;;  %v2076_v48 = vmax.f32 %v6436_v40, %v6440_v20 }
 0x328   : > { %v6448_v43 = vpop.f32.mrf.mxu0  ;;  %v6450_v50 = vpop.f32.mrf.mxu1 }
 0x329   : > { %9167 = vst [vmem:[#allocation211_spill] sm:$0xff] %v6448_v43  ;;  %9168 = vst [vmem:[#allocation212_spill] sm:$0xff] %v6450_v50  ;;  %v2077_v17 = vmax.f32 %v2076_v48, %v6438_v35  ;;  %v2072_v35 = vmax.f32 %v2071_v22, %v6430_v13  ;;  %v2058_v22 = vmax.f32 %v2057_v14, %v6410_v3 }
 0x32a   : > { %v6455_v16 = vpop.f32.mrf.mxu0  ;;  %v6457_v57 = vpop.f32.mrf.mxu1  ;;  %v2037_v14 = vmax.f32 %v2036_v37, %v6370_v42  ;;  %v9187_v42 = vld [vmem:[#allocation82_spill] sm:$0xff] }
 0x32b   : > { %9169 = vst [vmem:[#allocation213_spill] sm:$0xff] %v6455_v16  ;;  %9170 = vst [vmem:[#allocation214_spill] sm:$0xff] %v6457_v57  ;;  %v2081_v41 = vmax.f32 %v6448_v43, %v6455_v16  ;;  %v2078_v40 = vmax.f32 %v2077_v17, %v6442_v62  ;;  %v2068_v17 = vmax.f32 %v2067_v49, %v6426_v18 }
 0x32c   : > { %v6465_v20 = vpop.f32.mrf.mxu0  ;;  %v6467_v48 = vpop.f32.mrf.mxu1  ;;  %v2051_v49 = vmax.f32 %v6396_v44, %v6400_v56  ;;  %v2073_v7 = vmax.f32 %v2072_v35, %v6434_v9  ;;  %v9183_v56 = vld [vmem:[#allocation81_spill] sm:$0xff] }
 0x32d   : > { %9171 = vst [vmem:[#allocation215_spill] sm:$0xff] %v6465_v20  ;;  %9172 = vst [vmem:[#allocation216_spill] sm:$0xff] %v6467_v48  ;;  %v2082_v4 = vmax.f32 %v2081_v41, %v6450_v50  ;;  %2079 = vmax.xlane.f32.xlu1 %v2078_v40 }
 0x32e   : > { %v6473_v23 = vpop.f32.mrf.mxu0  ;;  %v6475_v47 = vpop.f32.mrf.mxu1 }
 0x32f   : > { %9173 = vst [vmem:[#allocation217_spill] sm:$0xff] %v6473_v23  ;;  %9174 = vst [vmem:[#allocation218_spill] sm:$0xff] %v6475_v47  ;;  %v2083_v62 = vmax.f32 %v2082_v4, %v6457_v57  ;;  %v2062_v4 = vmax.f32 %v2061_v12, %v6414_v32  ;;  %v2048_v12 = vmax.f32 %v2047_v46, %v6394_v59  ;;  %v9190_v59 = vld [vmem:[#allocation35_spill] sm:$0xff] }
 0x330   : > { %v6482_v41 = vpop.f32.mrf.mxu0  ;;  %v6484_v40 = vpop.f32.mrf.mxu1 }
 0x331   : > { %9175 = vst [vmem:[#allocation219_spill] sm:$0xff] %v6482_v41  ;;  %9176 = vst [vmem:[#allocation220_spill] sm:$0xff] %v6484_v40  ;;  %2069 = vmax.xlane.f32.xlu1 %v2068_v17  ;;  %2084 = vmax.xlane.f32.xlu0 %v2083_v62  ;;  %v2026_v62 = vmax.f32 %v6338_v0, %v6345_v5  ;;  %v2052_v5 = vmax.f32 %v2051_v49, %v6398_v21  ;;  %v9182_v0 = vld [vmem:[#allocation79_spill] sm:$0xff] }
 0x332   : > { %v6489_v45 = vpop.f32.mrf.mxu0  ;;  %v6491_v63 = vpop.f32.mrf.mxu1  ;;  %v2063_v52 = vmax.f32 %v2062_v4, %v6418_v27  ;;  %v2031_v49 = vmax.f32 %v6354_v38, %v6359_v58 }
 0x333   : > { %9177 = vst [vmem:[#allocation221_spill] sm:$0xff] %v6489_v45  ;;  %9178 = vst [vmem:[#allocation222_spill] sm:$0xff] %v6491_v63  ;;  %v2027_v37 = vmax.f32 %v2026_v62, %v6340_v15 }
 0x334   : > { %v6500_v17 = vpop.f32.mrf.mxu0  ;;  %v6502_v33 = vpop.f32.mrf.mxu1 }
 0x335   : > { %9179 = vst [vmem:[#allocation223_spill] sm:$0xff] %v6500_v17  ;;  %9180 = vst [vmem:[#allocation224_spill] sm:$0xff] %v6502_v33  ;;  %2059 = vmax.xlane.f32.xlu1 %v2058_v22  ;;  %2074 = vmax.xlane.f32.xlu0 %v2073_v7  ;;  %v2016_v7 = vmax.f32 %v6306_v25, %v6313_v29 }
 0x336   : > { %v1920_v35 = vpop.xlane.xlu0 %1919  ;;  %v6510_v51 = vpop.f32.mrf.mxu0 }
 0x337   : > { %9181 = vst [vmem:[#allocation225_spill] sm:$0xff] %v6510_v51  ;;  %v2222_v44 = vsub.f32 %v9182_v0, %v1920_v35  ;;  %v2223_v3 = vsub.f32 %v9183_v56, %v1920_v35  ;;  %v6516_v22 = vpop.f32.mrf.mxu1  ;;  %v2224_v46 = vsub.f32 %v9185_v55, %v1920_v35  ;;  %v2042_v0 = vmax.f32 %v2041_v54, %v6381_v36 }
 0x338   : > { %9184 = vst [vmem:[#allocation79_spill] sm:$0xff] %v6516_v22  ;;  %v6522_v30 = vpop.f32.mrf.mxu0  ;;  %v2225_v56 = vsub.f32 %v9187_v42, %v1920_v35  ;;  %v2038_v55 = vmax.f32 %v2037_v14, %v6374_v10  ;;  %v2053_v54 = vmax.f32 %v2052_v5, %v6402_v34  ;;  %v2017_v61 = vmax.f32 %v2016_v7, %v6308_v28  ;;  %v9194_v7 = vld [vmem:[#allocation83_spill] sm:$0xff]  ;;  %v9195_v28 = vld [vmem:[#allocation85_spill] sm:$0xff] }
 0x339   : > { %9186 = vst [vmem:[#allocation81_spill] sm:$0xff] %v6522_v30  ;;  %2049 = vmax.xlane.f32.xlu1 %v2048_v12  ;;  %2064 = vmax.xlane.f32.xlu0 %v2063_v52  ;;  %v6528_v4 = vpop.f32.mrf.mxu1  ;;  %v2534_v29 = vmul.f32 1.442695, %v2222_v44  ;;  %v2536_v15 = vmul.f32 1.442695, %v2223_v3  ;;  %v2011_v52 = vmax.f32 %v6290_v11, %v6297_v19  ;;  %v2021_v44 = vmax.f32 %v6322_v8, %v6329_v39 }
 0x33a   : > { %9188 = vst [vmem:[#allocation80_spill] sm:$0xff] %v6528_v4  ;;  %v1865_v62 = vpop.xlane.xlu0 %1864  ;;  %v6533_v25 = vpop.f32.mrf.mxu0  ;;  %v2538_v12 = vmul.f32 1.442695, %v2224_v46  ;;  %v2028_v3 = vmax.f32 %v2027_v37, %v6347_v60  ;;  %v2043_v14 = vmax.f32 %v2042_v0, %v6385_v2  ;;  %v2540_v5 = vmul.f32 1.442695, %v2225_v56  ;;  %v9197_v37 = vld [vmem:[#allocation37_spill] sm:$0xff] }
 0x33b   : > { %9189 = vst [vmem:[#allocation82_spill] sm:$0xff] %v6533_v25  ;;  %v2178_v38 = vsub.f32 %v9190_v59, %v1865_v62  ;;  %v1925_v58 = vpop.xlane.xlu1 %1924  ;;  %v6538_v42 = vpop.f32.mrf.mxu1  ;;  %v2032_v59 = vmax.f32 %v2031_v49, %v6356_v24  ;;  %4724 = vpow2.f32 %v2534_v29  ;;  %v2179_v49 = vsub.f32 %v9197_v37, %v1865_v62  ;;  %v9198_v60 = vld [vmem:[#allocation84_spill] sm:$0xff]  ;;  %v9199_v56 = vld [vmem:[#allocation86_spill] sm:$0xff] }
 0x33c   : > { %9191 = vst [vmem:[#allocation35_spill] sm:$0xff] %v6538_v42  ;;  %v6545_v35 = vpop.f32.mrf.mxu0  ;;  %v2226_v19 = vsub.f32 %v9194_v7, %v1925_v58  ;;  %v2227_v8 = vsub.f32 %v9195_v28, %v1925_v58  ;;  %4726 = vpow2.f32 %v2536_v15  ;;  %v2228_v0 = vsub.f32 %v9198_v60, %v1925_v58  ;;  %v9201_v29 = vld [vmem:[#allocation36_spill] sm:$0xff]  ;;  %v9203_v15 = vld [vmem:[#allocation38_spill] sm:$0xff] }
 0x33d   : > { %9192 = vst [vmem:[#allocation226_spill] sm:$0xff] %v6545_v35  ;;  %2039 = vmax.xlane.f32.xlu1 %v2038_v55  ;;  %2054 = vmax.xlane.f32.xlu0 %v2053_v54  ;;  %v6550_v53 = vpop.f32.mrf.mxu1  ;;  %v2446_v11 = vmul.f32 1.442695, %v2178_v38  ;;  %v2229_v55 = vsub.f32 %v9199_v56, %v1925_v58  ;;  %4728 = vpow2.f32 %v2538_v12  ;;  %v2180_v38 = vsub.f32 %v9201_v29, %v1865_v62  ;;  %v9205_v56 = vld [vmem:[#allocation27_spill] sm:$0xff]  ;;  %v9206_v29 = vld [vmem:[#allocation174_spill] sm:$0xff] }
 0x33e   : > { %9193 = vst [vmem:[#allocation227_spill] sm:$0xff] %v6550_v53  ;;  %v6554_v46 = vpop.xlane.xlu0 %1854  ;;  %v6556_v39 = vpop.f32.mrf.mxu0  ;;  %v2542_v7 = vmul.f32 1.442695, %v2226_v19  ;;  %v2544_v28 = vmul.f32 1.442695, %v2227_v8  ;;  %v2018_v36 = vmax.f32 %v2017_v61, %v6315_v26  ;;  %4730 = vpow2.f32 %v2540_v5  ;;  %v9213_v26 = vld [vmem:[#allocation156_spill] sm:$0xff] }
 0x33f   : > { %9196 = vst [vmem:[#allocation83_spill] sm:$0xff] %v6556_v39  ;;  %v6561_v54 = vpop.xlane.xlu1 %1914  ;;  %v6563_v24 = vpop.f32.mrf.mxu1  ;;  %v2181_v37 = vsub.f32 %v9203_v15, %v1865_v62  ;;  %v2546_v2 = vmul.f32 1.442695, %v2228_v0  ;;  %v2022_v60 = vmax.f32 %v2021_v44, %v6324_v1  ;;  %4732 = vpow2.f32 %v2446_v11  ;;  %v9207_v62 = vld [vmem:[#allocation29_spill] sm:$0xff]  ;;  %v9209_v0 = vld [vmem:[#allocation154_spill] sm:$0xff] }
 0x340   : > { %9200 = vst [vmem:[#allocation85_spill] sm:$0xff] %v6563_v24  ;;  %v6566_v10 = vpop.f32.mrf.mxu0  ;;  %v2548_v12 = vmul.f32 1.442695, %v2229_v55  ;;  %v2170_v19 = vsub.f32 %v9205_v56, %v6554_v46  ;;  %v2033_v21 = vmax.f32 %v2032_v59, %v9206_v29  ;;  %v2448_v61 = vmul.f32 1.442695, %v2179_v49  ;;  %v9211_v59 = vld [vmem:[#allocation75_spill] sm:$0xff] }
 0x341   : > { %9202 = vst [vmem:[#allocation37_spill] sm:$0xff] %v6566_v10  ;;  %2029 = vmax.xlane.f32.xlu1 %v2028_v3  ;;  %2044 = vmax.xlane.f32.xlu0 %v2043_v14  ;;  %v6570_v58 = vpop.f32.mrf.mxu1  ;;  %4734 = vpow2.f32 %v2542_v7  ;;  %v2171_v5 = vsub.f32 %v9207_v62, %v6554_v46  ;;  %v2008_v11 = vmax.f32 %v6531_v6, %v9209_v0  ;;  %v2450_v44 = vmul.f32 1.442695, %v2180_v38  ;;  %v9212_v7 = vld [vmem:[#allocation77_spill] sm:$0xff]  ;;  %v9214_v38 = vld [vmem:[#allocation78_spill] sm:$0xff]  ;;  %v9216_v29 = vld [vmem:[#allocation76_spill] sm:$0xff] }
 0x342   : > { %9204 = vst [vmem:[#allocation84_spill] sm:$0xff] %v6570_v58  ;;  %v6575_v8 = vpop.f32.mrf.mxu0  ;;  %4736 = vpow2.f32 %v2544_v28  ;;  %v2452_v15 = vmul.f32 1.442695, %v2181_v37  ;;  %v2218_v49 = vsub.f32 %v9211_v59, %v6561_v54  ;;  %v2219_v56 = vsub.f32 %v9212_v7, %v6561_v54 }
 0x343   : > { %v6580_v3 = vpop.xlane.xlu1 %1909  ;;  %v6582_v14 = vpop.f32.mrf.mxu1  ;;  %4738 = vpow2.f32 %v2546_v2  ;;  %v2012_v1 = vmax.f32 %v2011_v52, %v9213_v26  ;;  %v2430_v6 = vmul.f32 1.442695, %v2170_v19  ;;  %v2221_v28 = vsub.f32 %v9214_v38, %v6561_v54  ;;  %v9215_v2 = vld [vmem:[#allocation166_spill] sm:$0xff] }
 0x344   : > { %9208 = vst [vmem:[#allocation86_spill] sm:$0xff] %v6582_v14  ;;  %v6586_v55 = vpop.f32.mrf.mxu0  ;;  %4740 = vpow2.f32 %v2548_v12  ;;  %v2023_v37 = vmax.f32 %v2022_v60, %v9215_v2  ;;  %v2432_v59 = vmul.f32 1.442695, %v2171_v5  ;;  %v2220_v7 = vsub.f32 %v9216_v29, %v6561_v54  ;;  %v9217_v12 = vld [vmem:[#allocation73_spill] sm:$0xff]  ;;  %v9218_v60 = vld [vmem:[#allocation71_spill] sm:$0xff]  ;;  %v9219_v29 = vld [vmem:[#allocation74_spill] sm:$0xff] }
 0x345   : > { %9210 = vst [vmem:[#allocation36_spill] sm:$0xff] %v6586_v55  ;;  %2019 = vmax.xlane.f32.xlu1 %v2018_v36  ;;  %2034 = vmax.xlane.f32.xlu0 %v2033_v21  ;;  %v6592_v62 = vpop.f32.mrf.mxu1  ;;  %4742 = vpow2.f32 %v2448_v61  ;;  %v2528_v52 = vmul.f32 1.442695, %v2219_v56  ;;  %v2215_v19 = vsub.f32 %v9217_v12, %v6580_v3  ;;  %v2526_v38 = vmul.f32 1.442695, %v2218_v49  ;;  %v9221_v12 = vld [vmem:[#allocation158_spill] sm:$0xff] }
 0x346   : > { %v6597_v0 = vpop.f32.mrf.mxu0  ;;  %4744 = vpow2.f32 %v2450_v44  ;;  %v2214_v61 = vsub.f32 %v9218_v60, %v6580_v3  ;;  %v2532_v54 = vmul.f32 1.442695, %v2221_v28  ;;  %v2217_v44 = vsub.f32 %v9219_v29, %v6580_v3  ;;  %v9222_v49 = vld [vmem:[#allocation72_spill] sm:$0xff]  ;;  %v9225_v29 = vld [vmem:[#allocation69_spill] sm:$0xff] }
 0x347   : > { %v6602_v36 = vpop.xlane.xlu1 %1904  ;;  %v6604_v21 = vpop.f32.mrf.mxu1  ;;  %4746 = vpow2.f32 %v2452_v15  ;;  %v2013_v34 = vmax.f32 %v2012_v1, %v9221_v12  ;;  %v2530_v15 = vmul.f32 1.442695, %v2220_v7  ;;  %v2216_v60 = vsub.f32 %v9222_v49, %v6580_v3 }
 0x348   : > { %v6608_v26 = vpop.f32.mrf.mxu0  ;;  %4748 = vpow2.f32 %v2430_v6  ;;  %v6618_v2 = vpop.eup %4724  ;;  %v2520_v28 = vmul.f32 1.442695, %v2215_v19  ;;  %v2211_v32 = vsub.f32 %v9225_v29, %v6602_v36  ;;  %v2518_v1 = vmul.f32 1.442695, %v2214_v61  ;;  %v9230_v19 = vld [vmem:[#allocation70_spill] sm:$0xff]  ;;  %v9232_v61 = vld [vmem:[#allocation68_spill] sm:$0xff] }
 0x349   : > { %2009 = vmax.xlane.f32.xlu1 %v2008_v11  ;;  %2024 = vmax.xlane.f32.xlu0 %v2023_v37  ;;  %v6612_v5 = vpop.f32.mrf.mxu1  ;;  %9220 = vst [vmem:[#allocation38_spill] sm:$0xff] %v6618_v2  ;;  %4750 = vpow2.f32 %v2432_v59  ;;  %v6627_v6 = vpop.eup %4726  ;;  %v9228_v59 = vld [vmem:[#allocation67_spill] sm:$0xff]  ;;  %v2213_v12 = vsub.f32 %v9230_v19, %v6602_v36  ;;  %v2212_v13 = vsub.f32 %v9232_v61, %v6602_v36 }
 0x34a   : > { %v6616_v56 = vpop.f32.mrf.mxu0  ;;  %9224 = vst [vmem:[#allocation29_spill] sm:$0xff] %v6627_v6  ;;  %4752 = vpow2.f32 %v2528_v52  ;;  %v6633_v31 = vpop.eup %4728  ;;  %v2210_v3 = vsub.f32 %v9228_v59, %v6602_v36  ;;  %v2524_v52 = vmul.f32 1.442695, %v2217_v44  ;;  %v9234_v44 = vld [vmem:[#allocation65_spill] sm:$0xff] }
 0x34b   : > { %v6623_v11 = vpop.xlane.xlu1 %1899  ;;  %v6625_v37 = vpop.f32.mrf.mxu1  ;;  %9227 = vst [vmem:[#allocation77_spill] sm:$0xff] %v6633_v31  ;;  %4754 = vpow2.f32 %v2526_v38  ;;  %v2522_v38 = vmul.f32 1.442695, %v2216_v60  ;;  %v9236_v60 = vld [vmem:[#allocation63_spill] sm:$0xff]  ;;  %v2516_v43 = vmul.f32 1.442695, %v2213_v12 }
 0x34c   : > { %9223 = vst [vmem:[#allocation27_spill] sm:$0xff] %v6625_v37  ;;  %v6631_v27 = vpop.f32.mrf.mxu0  ;;  %v6639_v49 = vpop.eup %4730  ;;  %4756 = vpow2.f32 %v2532_v54  ;;  %v2512_v54 = vmul.f32 1.442695, %v2211_v32  ;;  %v2207_v19 = vsub.f32 %v9234_v44, %v6623_v11  ;;  %v2206_v36 = vsub.f32 %v9236_v60, %v6623_v11  ;;  %v9238_v32 = vld [vmem:[#allocation66_spill] sm:$0xff] }
 0x34d   : > { %9226 = vst [vmem:[#allocation75_spill] sm:$0xff] %v6631_v27  ;;  %2014 = vmax.xlane.f32.xlu0 %v2013_v34  ;;  %v6637_v7 = vpop.f32.mrf.mxu1  ;;  %9229 = vst [vmem:[#allocation78_spill] sm:$0xff] %v6639_v49  ;;  %v6645_v18 = vpop.eup %4732  ;;  %4758 = vpow2.f32 %v2530_v15  ;;  %v2510_v15 = vmul.f32 1.442695, %v2210_v3  ;;  %v9240_v3 = vld [vmem:[#allocation64_spill] sm:$0xff] }
 0x34e   : > { %v6643_v29 = vpop.f32.mrf.mxu0  ;;  %9231 = vst [vmem:[#allocation76_spill] sm:$0xff] %v6645_v18  ;;  %v6653_v9 = vpop.eup %4734  ;;  %4760 = vpow2.f32 %v2520_v28  ;;  %v2209_v28 = vsub.f32 %v9238_v32, %v6623_v11  ;;  %v2208_v60 = vsub.f32 %v9240_v3, %v6623_v11  ;;  %v2504_v32 = vmul.f32 1.442695, %v2207_v19  ;;  %v9245_v3 = vld [vmem:[#allocation59_spill] sm:$0xff] }
 0x34f   : > { %v6649_v59 = vpop.xlane.xlu1 %1894  ;;  %v6651_v34 = vpop.f32.mrf.mxu1  ;;  %9233 = vst [vmem:[#allocation73_spill] sm:$0xff] %v6653_v9  ;;  %4762 = vpow2.f32 %v2518_v1  ;;  %v2514_v1 = vmul.f32 1.442695, %v2212_v13 }
 0x350   : > { %v6657_v50 = vpop.f32.mrf.mxu0  ;;  %v6659_v57 = vpop.eup %4736  ;;  %4764 = vpow2.f32 %v2524_v52 }
 0x351   : > { %9235 = vst [vmem:[#allocation71_spill] sm:$0xff] %v6659_v57  ;;  %v6663_v61 = vpop.f32.mrf.mxu1  ;;  %v6665_v16 = vpop.eup %4738  ;;  %2934 = vmatprep.subr.mxu0 %v6659_v57  ;;  %4766 = vpow2.f32 %v2522_v38  ;;  %v9242_v57 = vld [vmem:[#allocation61_spill] sm:$0xff]  ;;  %v2502_v38 = vmul.f32 1.442695, %v2206_v36  ;;  %v2506_v36 = vmul.f32 1.442695, %v2208_v60 }
 0x352   : > { %9237 = vst [vmem:[#allocation74_spill] sm:$0xff] %v6665_v16  ;;  %v6670_v44 = vpop.f32.mrf.mxu0  ;;  %v6672_v63 = vpop.eup %4740  ;;  %2935 = vmatpush1.xpose.msra.mxu0 %v6653_v9  ;;  %4768 = vpow2.f32 %v2512_v54  ;;  %v2203_v40 = vsub.f32 %v9242_v57, %v6649_v59  ;;  %v2202_v9 = vsub.f32 %v9245_v3, %v6649_v59  ;;  %v9247_v57 = vld [vmem:[#allocation62_spill] sm:$0xff] }
 0x353   : > { %9239 = vst [vmem:[#allocation72_spill] sm:$0xff] %v6672_v63  ;;  %v6677_v42 = vpop.xlane.xlu1 %1889  ;;  %v6679_v52 = vpop.f32.mrf.mxu1  ;;  %3005 = vmatprep.subr.mxu1 %v6672_v63  ;;  %2936 = vmatprep.subr.mxu0 %v6627_v6  ;;  %4770 = vpow2.f32 %v2510_v15  ;;  %v2508_v63 = vmul.f32 1.442695, %v2209_v28  ;;  %v2205_v6 = vsub.f32 %v9247_v57, %v6649_v59 }
 0x354   : > { %v6681_v12 = vpop.eup %4742  ;;  %v6687_v13 = vpop.f32.mrf.mxu0  ;;  %3006 = vmatpush1.xpose.msra.mxu1 %v6665_v16  ;;  %4772 = vpow2.f32 %v2516_v43  ;;  %v9250_v16 = vld [vmem:[#allocation60_spill] sm:$0xff]  ;;  %v2496_v57 = vmul.f32 1.442695, %v2203_v40  ;;  %v2494_v60 = vmul.f32 1.442695, %v2202_v9 }
 0x355   : > { %9241 = vst [vmem:[#allocation69_spill] sm:$0xff] %v6681_v12  ;;  %9243 = vst [vmem:[#allocation67_spill] sm:$0xff] %v6687_v13  ;;  %v6689_v11 = vpop.eup %4744  ;;  %v6694_v54 = vpop.f32.mrf.mxu1  ;;  %3007 = vmatprep.subr.mxu1 %v6639_v49  ;;  %4774 = vpow2.f32 %v2514_v1  ;;  %v2204_v3 = vsub.f32 %v9250_v16, %v6649_v59  ;;  %v9252_v49 = vld [vmem:[#allocation57_spill] sm:$0xff]  ;;  %v9254_v16 = vld [vmem:[#allocation55_spill] sm:$0xff]  ;;  %v2500_v40 = vmul.f32 1.442695, %v2205_v6 }
 0x356   : > { %9244 = vst [vmem:[#allocation70_spill] sm:$0xff] %v6689_v11  ;;  %v6696_v19 = vpop.eup %4746  ;;  %v6701_v47 = vpop.f32.mrf.mxu0  ;;  %2937 = vmatpush1.xpose.msra.mxu0 %v6618_v2  ;;  %4776 = vpow2.f32 %v2504_v32  ;;  %v2199_v14 = vsub.f32 %v9252_v49, %v6677_v42  ;;  %v2198_v59 = vsub.f32 %v9254_v16, %v6677_v42  ;;  %v9256_v32 = vld [vmem:[#allocation58_spill] sm:$0xff] }
 0x357   : > { %9246 = vst [vmem:[#allocation68_spill] sm:$0xff] %v6696_v19  ;;  %9248 = vst [vmem:[#allocation65_spill] sm:$0xff] %v6701_v47  ;;  %v6703_v15 = vpop.eup %4748  ;;  %v6708_v11 = vpop.xlane.xlu1 %1884  ;;  %4778 = vpow2.f32 %v2502_v38  ;;  %v2201_v49 = vsub.f32 %v9256_v32, %v6677_v42  ;;  %v2498_v9 = vmul.f32 1.442695, %v2204_v3 }
 0x358   : > { %9249 = vst [vmem:[#allocation63_spill] sm:$0xff] %v6703_v15  ;;  %v6710_v43 = vpop.f32.mrf.mxu1  ;;  %v6712_v28 = vpop.eup %4750  ;;  %3008 = vmatpush1.xpose.msra.mxu1 %v6633_v31  ;;  %4780 = vpow2.f32 %v2508_v63  ;;  %v9258_v31 = vld [vmem:[#allocation56_spill] sm:$0xff]  ;;  %v2488_v32 = vmul.f32 1.442695, %v2199_v14 }
 0x359   : > { %9251 = vst [vmem:[#allocation66_spill] sm:$0xff] %v6712_v28  ;;  %v6716_v4 = vpop.f32.mrf.mxu0  ;;  %v6718_v1 = vpop.eup %4752  ;;  %4782 = vpow2.f32 %v2506_v36  ;;  %v2200_v16 = vsub.f32 %v9258_v31, %v6677_v42  ;;  %v2486_v31 = vmul.f32 1.442695, %v2198_v59  ;;  %v9263_v42 = vld [vmem:[#allocation51_spill] sm:$0xff]  ;;  %v2492_v14 = vmul.f32 1.442695, %v2201_v49 }
 0x35a   : > { %9253 = vst [vmem:[#allocation64_spill] sm:$0xff] %v6718_v1  ;;  %v6723_v2 = vpop.f32.mrf.mxu1  ;;  %v6725_v15 = vpop.eup %4754  ;;  %2938 = vmatprep.subr.mxu0 %v6718_v1  ;;  %4784 = vpow2.f32 %v2496_v57  ;;  %v9260_v1 = vld [vmem:[#allocation53_spill] sm:$0xff] }
 0x35b   : > { %9255 = vst [vmem:[#allocation61_spill] sm:$0xff] %v6725_v15  ;;  %v6730_v28 = vpop.f32.mrf.mxu0  ;;  %v6732_v38 = vpop.eup %4756  ;;  %2939 = vmatpush1.xpose.msra.mxu0 %v6725_v15  ;;  %v2195_v22 = vsub.f32 %v9260_v1, %v6708_v11  ;;  %4786 = vpow2.f32 %v2494_v60  ;;  %v2194_v15 = vsub.f32 %v9263_v42, %v6708_v11  ;;  %v2490_v59 = vmul.f32 1.442695, %v2200_v16 }
 0x35c   : > { %9257 = vst [vmem:[#allocation59_spill] sm:$0xff] %v6732_v38  ;;  %v6737_v18 = vpop.xlane.xlu1 %1879  ;;  %v6739_v63 = vpop.f32.mrf.mxu1  ;;  %3009 = vmatprep.subr.mxu1 %v6732_v38  ;;  %4788 = vpow2.f32 %v2500_v40  ;;  %v9265_v38 = vld [vmem:[#allocation54_spill] sm:$0xff] }
 0x35d   : > { %v6741_v6 = vpop.eup %4758  ;;  %v6746_v36 = vpop.f32.mrf.mxu0  ;;  %v2197_v1 = vsub.f32 %v9265_v38, %v6708_v11  ;;  %4790 = vpow2.f32 %v2498_v9  ;;  %v2086_v38 = vmax.f32 %v6465_v20, %v6473_v23  ;;  %v9270_v9 = vld [vmem:[#allocation49_spill] sm:$0xff]  ;;  %v9272_v20 = vld [vmem:[#allocation47_spill] sm:$0xff]  ;;  %v9274_v23 = vld [vmem:[#allocation50_spill] sm:$0xff] }
 0x35e   : > { %9259 = vst [vmem:[#allocation62_spill] sm:$0xff] %v6741_v6  ;;  %9261 = vst [vmem:[#allocation60_spill] sm:$0xff] %v6746_v36  ;;  %v6748_v3 = vpop.eup %4760  ;;  %3010 = vmatpush1.xpose.msra.mxu1 %v6741_v6  ;;  %v6753_v19 = vpop.f32.mrf.mxu1  ;;  %v9268_v6 = vld [vmem:[#allocation52_spill] sm:$0xff]  ;;  %4792 = vpow2.f32 %v2488_v32  ;;  %v2191_v16 = vsub.f32 %v9270_v9, %v6737_v18  ;;  %v2190_v32 = vsub.f32 %v9272_v20, %v6737_v18 }
 0x35f   : > { %9262 = vst [vmem:[#allocation57_spill] sm:$0xff] %v6748_v3  ;;  %v6755_v57 = vpop.eup %4762  ;;  %2940 = vmatprep.subr.mxu0 %v6748_v3  ;;  %v6760_v41 = vpop.f32.mrf.mxu0  ;;  %v2196_v42 = vsub.f32 %v9268_v6, %v6708_v11  ;;  %v2480_v3 = vmul.f32 1.442695, %v2195_v22  ;;  %v2096_v6 = vmax.f32 %v6500_v17, %v6510_v51  ;;  %4794 = vpow2.f32 %v2486_v31 }
 0x360   : > { %9264 = vst [vmem:[#allocation55_spill] sm:$0xff] %v6755_v57  ;;  %9266 = vst [vmem:[#allocation58_spill] sm:$0xff] %v6760_v41  ;;  %v6762_v60 = vpop.eup %4764  ;;  %2941 = vmatpush1.xpose.msra.mxu0 %v6755_v57  ;;  %v6767_v45 = vpop.xlane.xlu1 %1874  ;;  %v2478_v57 = vmul.f32 1.442695, %v2194_v15  ;;  %4796 = vpow2.f32 %v2492_v14  ;;  %v2484_v9 = vmul.f32 1.442695, %v2197_v1  ;;  %v2193_v12 = vsub.f32 %v9274_v23, %v6737_v18 }
 0x361   : > { %9267 = vst [vmem:[#allocation56_spill] sm:$0xff] %v6762_v60  ;;  %v6769_v40 = vpop.f32.mrf.mxu1  ;;  %v6771_v49 = vpop.eup %4766  ;;  %3011 = vmatprep.subr.mxu1 %v6762_v60  ;;  %4798 = vpow2.f32 %v2490_v59  ;;  %v2482_v15 = vmul.f32 1.442695, %v2196_v42  ;;  %v6806_v1 = vmax.f32 %v2086_v38, %v6467_v48  ;;  %v2472_v23 = vmul.f32 1.442695, %v2191_v16  ;;  %v9283_v38 = vld [vmem:[#allocation43_spill] sm:$0xff] }
 0x362   : > { %9269 = vst [vmem:[#allocation53_spill] sm:$0xff] %v6771_v49  ;;  %v6778_v37 = vpop.f32.mrf.mxu0  ;;  %v6780_v11 = vpop.eup %4768  ;;  %3012 = vmatpush1.xpose.msra.mxu1 %v6771_v49  ;;  %v9276_v49 = vld [vmem:[#allocation48_spill] sm:$0xff]  ;;  %4800 = vpow2.f32 %v2480_v3  ;;  %v2186_v3 = vsub.f32 %v9283_v38, %v6767_v45 }
 0x363   : > { %9271 = vst [vmem:[#allocation51_spill] sm:$0xff] %v6780_v11  ;;  %v6787_v22 = vpop.f32.mrf.mxu1  ;;  %v6789_v60 = vpop.eup %4770  ;;  %2942 = vmatprep.subr.mxu0 %v6780_v11  ;;  %v2192_v20 = vsub.f32 %v9276_v49, %v6737_v18  ;;  %9278 = vst [vmem:[#allocation47_spill] sm:$0xff] %v6806_v1  ;;  %v9279_v11 = vld [vmem:[#allocation45_spill] sm:$0xff]  ;;  %v6816_v18 = vmax.f32 %v2096_v6, %v6502_v33  ;;  %4802 = vpow2.f32 %v2478_v57  ;;  %v2470_v49 = vmul.f32 1.442695, %v2190_v32  ;;  %v9286_v6 = vld [vmem:[#allocation46_spill] sm:$0xff] }
 0x364   : > { %9273 = vst [vmem:[#allocation54_spill] sm:$0xff] %v6789_v60  ;;  %v6794_v58 = vpop.f32.mrf.mxu0  ;;  %v6796_v31 = vpop.eup %4772  ;;  %2943 = vmatpush1.xpose.msra.mxu0 %v6789_v60  ;;  %v2187_v59 = vsub.f32 %v9279_v11, %v6767_v45  ;;  %v9285_v11 = vld [vmem:[#allocation28_spill] sm:$0xff]  ;;  %4804 = vpow2.f32 %v2484_v9  ;;  %v2476_v1 = vmul.f32 1.442695, %v2193_v12  ;;  %v2189_v57 = vsub.f32 %v9286_v6, %v6767_v45 }
 0x365   : > { %9275 = vst [vmem:[#allocation52_spill] sm:$0xff] %v6796_v31  ;;  %v6801_v17 = vpop.f32.mrf.mxu1  ;;  %v6803_v14 = vpop.eup %4774  ;;  %3013 = vmatprep.subr.mxu1 %v6796_v31  ;;  %9282 = vst [vmem:[#allocation45_spill] sm:$0xff] %v6816_v18  ;;  %4806 = vpow2.f32 %v2482_v15  ;;  %v2474_v38 = vmul.f32 1.442695, %v2192_v20  ;;  %v9289_v33 = vld [vmem:[#allocation44_spill] sm:$0xff]  ;;  %v2146_v6 = vmax.f32 %v6746_v36, %v6760_v41  ;;  %v9291_v15 = vld [vmem:[#allocation41_spill] sm:$0xff] }
 0x366   : > { %9277 = vst [vmem:[#allocation49_spill] sm:$0xff] %v6803_v14  ;;  %v6811_v42 = vpop.f32.mrf.mxu0  ;;  %v6813_v51 = vpop.eup %4776  ;;  %3014 = vmatpush1.xpose.msra.mxu1 %v6803_v14  ;;  %v2188_v18 = vsub.f32 %v9289_v33, %v6767_v45  ;;  %4808 = vpow2.f32 %v2472_v23  ;;  %v9297_v41 = vld [vmem:[#allocation40_spill] sm:$0xff] }
 0x367   : > { %9280 = vst [vmem:[#allocation50_spill] sm:$0xff] %v6811_v42  ;;  %9281 = vst [vmem:[#allocation48_spill] sm:$0xff] %v6813_v51  ;;  %v6821_v16 = vpop.xlane.xlu1 %1869  ;;  %v6823_v60 = vpop.f32.mrf.mxu1  ;;  %2944 = vmatprep.subr.mxu0 %v6813_v51  ;;  %v2464_v51 = vmul.f32 1.442695, %v2187_v59 }
 0x368   : > { %v6825_v31 = vpop.eup %4778  ;;  %v6832_v32 = vpop.f32.mrf.mxu0  ;;  %v2183_v20 = vsub.f32 %v9291_v15, %v6821_v16  ;;  %4810 = vpow2.f32 %v2470_v49  ;;  %v2468_v15 = vmul.f32 1.442695, %v2189_v57 }
 0x369   : > { %9284 = vst [vmem:[#allocation43_spill] sm:$0xff] %v6825_v31  ;;  %9287 = vst [vmem:[#allocation28_spill] sm:$0xff] %v6832_v32  ;;  %v6834_v14 = vpop.eup %4780  ;;  %2945 = vmatpush1.xpose.msra.mxu0 %v6825_v31  ;;  %v2156_v9 = vmax.f32 %v6811_v42, %v6832_v32  ;;  %v6841_v12 = vpop.f32.mrf.mxu1  ;;  %v2462_v31 = vmul.f32 1.442695, %v2186_v3  ;;  %v9293_v42 = vld [vmem:[#allocation39_spill] sm:$0xff]  ;;  %v9294_v32 = vld [vmem:[#allocation42_spill] sm:$0xff]  ;;  %4812 = vpow2.f32 %v2476_v1 }
 0x36a   : > { %9288 = vst [vmem:[#allocation46_spill] sm:$0xff] %v6834_v14  ;;  %v6843_v48 = vpop.eup %4782  ;;  %3015 = vmatprep.subr.mxu1 %v6834_v14  ;;  %v6850_v45 = vpop.f32.mrf.mxu0  ;;  %v2182_v23 = vsub.f32 %v9293_v42, %v6821_v16  ;;  %v2185_v36 = vsub.f32 %v9294_v32, %v6821_v16  ;;  %v2136_v14 = vmax.f32 %v6687_v13, %v6701_v47  ;;  %4814 = vpow2.f32 %v2474_v38 }
 0x36b   : > { %9290 = vst [vmem:[#allocation44_spill] sm:$0xff] %v6843_v48  ;;  %v6852_v33 = vpop.eup %4784  ;;  %3016 = vmatpush1.xpose.msra.mxu1 %v6843_v48  ;;  %v2157_v49 = vmax.f32 %v2156_v9, %v6823_v60  ;;  %v2466_v42 = vmul.f32 1.442695, %v2188_v18  ;;  %v2184_v32 = vsub.f32 %v9297_v41, %v6821_v16  ;;  %v6872_v24 = vpop.xlane.xlu1 %1859  ;;  %4816 = vpow2.f32 %v2464_v51  ;;  %v9301_v51 = vld [vmem:[#allocation33_spill] sm:$0xff] }
 0x36c   : > { %9292 = vst [vmem:[#allocation41_spill] sm:$0xff] %v6852_v33  ;;  %v6859_v59 = vpop.eup %4786  ;;  %2946 = vmatprep.subr.mxu0 %v6852_v33  ;;  %v6865_v3 = vpop.f32.mrf.mxu0  ;;  %v2147_v9 = vmax.f32 %v2146_v6, %v6753_v19  ;;  %v2456_v13 = vmul.f32 1.442695, %v2183_v20  ;;  %4818 = vpow2.f32 %v2462_v31  ;;  %v2151_v16 = vmax.f32 %v6778_v37, %v6794_v58 }
 0x36d   : > { %9295 = vst [vmem:[#allocation39_spill] sm:$0xff] %v6859_v59  ;;  %v6867_v48 = vpop.eup %4788  ;;  %2947 = vmatpush1.xpose.msra.mxu0 %v6859_v59  ;;  %v2161_v1 = vmax.f32 %v6850_v45, %v6865_v3  ;;  %v6876_v57 = vpop.f32.mrf.mxu1  ;;  %v2158_v18 = vmax.f32 %v2157_v49, %v6841_v12  ;;  %v2454_v38 = vmul.f32 1.442695, %v2182_v23  ;;  %v2460_v59 = vmul.f32 1.442695, %v2185_v36 }
 0x36e   : > { %9296 = vst [vmem:[#allocation42_spill] sm:$0xff] %v6867_v48  ;;  %v6878_v33 = vpop.eup %4790  ;;  %3017 = vmatprep.subr.mxu1 %v6867_v48  ;;  %4820 = vpow2.f32 %v2468_v15  ;;  %v2175_v6 = vsub.f32 %v9301_v51, %v6872_v24  ;;  %v2126_v31 = vmax.f32 %v6631_v27, %v6643_v29  ;;  %v2137_v36 = vmax.f32 %v2136_v14, %v6694_v54 }
 0x36f   : > { %9298 = vst [vmem:[#allocation40_spill] sm:$0xff] %v6878_v33  ;;  %v6883_v41 = vpop.eup %4792  ;;  %3018 = vmatpush1.xpose.msra.mxu1 %v6878_v33  ;;  %v2162_v20 = vmax.f32 %v2161_v1, %v6876_v57  ;;  %2159 = vmax.xlane.f32.xlu1 %v2158_v18  ;;  %4822 = vpow2.f32 %v2466_v42  ;;  %v2458_v23 = vmul.f32 1.442695, %v2184_v32  ;;  %v6900_v15 = vpop.f32.mrf.mxu1  ;;  %v8768_v33 = vmov 1.0   ;;  %v9304_v18 = vld [vmem:[#allocation34_spill] sm:$0xff] }
 0x370   : > { %9299 = vst [vmem:[#allocation228_spill] sm:$0xff] %v6883_v41  ;;  %v6888_v47 = vpop.eup %4794  ;;  %2948 = vmatprep.subr.mxu0 %v6883_v41  ;;  %2998 = vmatprep.mubr.f32.mxu0 %v8768_v33  ;;  %v2148_v1 = vmax.f32 %v2147_v9, %v6769_v40  ;;  %4824 = vpow2.f32 %v2456_v13  ;;  %v2177_v41 = vsub.f32 %v9304_v18, %v6872_v24  ;;  %v9306_v9 = vld [vmem:[#allocation31_spill] sm:$0xff]  ;;  %v2440_v48 = vmul.f32 1.442695, %v2175_v6  ;;  %v6925_v27 = vpop.xlane.xlu1 %1849 }
 0x371   : > { %9300 = vst [vmem:[#allocation229_spill] sm:$0xff] %v6888_v47  ;;  %v6894_v49 = vpop.eup %4796  ;;  %2949 = vmatpush1.xpose.msra.mxu0 %v6888_v47  ;;  %v2163_v14 = vmax.f32 %v2162_v20, %v6900_v15  ;;  %3069 = vmatprep.mubr.f32.mxu1 %v8768_v33  ;;  %v2141_v32 = vmax.f32 %v6716_v4, %v6730_v28  ;;  %4826 = vpow2.f32 %v2454_v38 }
 0x372   : > { %9302 = vst [vmem:[#allocation33_spill] sm:$0xff] %v6894_v49  ;;  %v6903_v51 = vpop.eup %4798  ;;  %3019 = vmatprep.subr.mxu1 %v6894_v49  ;;  %v2152_v47 = vmax.f32 %v2151_v16, %v6787_v22  ;;  %v2174_v13 = vsub.f32 %v9306_v9, %v6872_v24  ;;  %v9308_v49 = vld [vmem:[#allocation30_spill] sm:$0xff]  ;;  %v2116_v33 = vmax.f32 %v6586_v55, %v6597_v0  ;;  %4828 = vpow2.f32 %v2460_v59 }
 0x373   : > { %9303 = vst [vmem:[#allocation230_spill] sm:$0xff] %v6903_v51  ;;  %v6911_v42 = vpop.eup %4800  ;;  %3020 = vmatpush1.xpose.msra.mxu1 %v6903_v51  ;;  %v2173_v20 = vsub.f32 %v9308_v49, %v6554_v46  ;;  %2149 = vmax.xlane.f32.xlu1 %v2148_v1  ;;  %v9310_v38 = vsub.f32 %v9285_v11, %v6554_v46  ;;  %4830 = vpow2.f32 %v2458_v23  ;;  %v9311_v49 = vld [vmem:[#allocation32_spill] sm:$0xff]  ;;  %v2444_v11 = vmul.f32 1.442695, %v2177_v41  ;;  %v9316_v41 = vld [vmem:[#allocation25_spill] sm:$0xff] }
 0x374   : > { %9305 = vst [vmem:[#allocation34_spill] sm:$0xff] %v6911_v42  ;;  %v6919_v18 = vpop.eup %4802  ;;  %2950 = vmatprep.subr.mxu0 %v6911_v42  ;;  %v2106_v51 = vmax.f32 %v6545_v35, %v6556_v39  ;;  %v2176_v55 = vsub.f32 %v9311_v49, %v6872_v24  ;;  %2164 = vmax.xlane.f32.xlu0 %v2163_v14  ;;  %v2438_v49 = vmul.f32 1.442695, %v2174_v13  ;;  %v9314_v14 = vld [vmem:[#allocation23_spill] sm:$0xff]  ;;  %4832 = vpow2.f32 %v2440_v48  ;;  %v9342_v35 = vld [vmem:[#allocation221_spill] sm:$0xff] }
 0x375   : > { %9307 = vst [vmem:[#allocation31_spill] sm:$0xff] %v6919_v18  ;;  %v6928_v16 = vpop.eup %4804  ;;  %v2434_v9 = vmul.f32 1.442695, %v9310_v38  ;;  %2951 = vmatpush1.xpose.msra.mxu0 %v6919_v18  ;;  %v2127_v6 = vmax.f32 %v2126_v31, %v6637_v7  ;;  %v2131_v1 = vmax.f32 %v6657_v50, %v6670_v44  ;;  %v2138_v46 = vmax.f32 %v2137_v36, %v6710_v43 }
 0x376   : > { %9309 = vst [vmem:[#allocation30_spill] sm:$0xff] %v6928_v16  ;;  %v6938_v59 = vpop.eup %4806  ;;  %3021 = vmatprep.subr.mxu1 %v6928_v16  ;;  %v2142_v23 = vmax.f32 %v2141_v32, %v6723_v2  ;;  %v2153_v24 = vmax.f32 %v2152_v47, %v6801_v17  ;;  %v2166_v18 = vsub.f32 %v9314_v14, %v6925_v27  ;;  %v2436_v42 = vmul.f32 1.442695, %v2173_v20  ;;  %v9318_v14 = vld [vmem:[#allocation26_spill] sm:$0xff] }
 0x377   : > { %9312 = vst [vmem:[#allocation32_spill] sm:$0xff] %v6938_v59  ;;  %v6945_v38 = vpop.eup %4808  ;;  %3022 = vmatpush1.xpose.msra.mxu1 %v6938_v59  ;;  %v2117_v36 = vmax.f32 %v2116_v33, %v6592_v62  ;;  %v2167_v16 = vsub.f32 %v9316_v41, %v6925_v27  ;;  %2139 = vmax.xlane.f32.xlu1 %v2138_v46  ;;  %4834 = vpow2.f32 %v2434_v9  ;;  %v2442_v13 = vmul.f32 1.442695, %v2176_v55 }
 0x378   : > { %9313 = vst [vmem:[#allocation231_spill] sm:$0xff] %v6945_v38  ;;  %v6952_v31 = vpop.eup %4810  ;;  %2952 = vmatprep.subr.mxu0 %v6945_v38  ;;  %v6961_v47 = vmax.f32 %v2106_v51, %v6550_v53  ;;  %v2169_v59 = vsub.f32 %v9318_v14, %v6925_v27  ;;  %2154 = vmax.xlane.f32.xlu0 %v2153_v24  ;;  %4836 = vpow2.f32 %v2444_v11  ;;  %v6973_v51 = vpop.xlane.xlu1 %1999  ;;  %v9321_v24 = vld [vmem:[#allocation24_spill] sm:$0xff]  ;;  %v2422_v14 = vmul.f32 1.442695, %v2166_v18  ;;  %v9324_v18 = vld [vmem:[#allocation147_spill] sm:$0xff] }
 0x379   : > { %9315 = vst [vmem:[#allocation23_spill] sm:$0xff] %v6952_v31  ;;  %v6958_v32 = vpop.eup %4812  ;;  %2953 = vmatpush1.xpose.msra.mxu0 %v6952_v31  ;;  %v2121_v33 = vmax.f32 %v6608_v26, %v6616_v56  ;;  %v2128_v20 = vmax.f32 %v2127_v6, %v6651_v34  ;;  %v2132_v46 = vmax.f32 %v2131_v1, %v6663_v61  ;;  %4838 = vpow2.f32 %v2438_v49 }
 0x37a   : > { %9317 = vst [vmem:[#allocation25_spill] sm:$0xff] %v6958_v32  ;;  %v6966_v48 = vpop.eup %4814  ;;  %3023 = vmatprep.subr.mxu1 %v6958_v32  ;;  %v2143_v9 = vmax.f32 %v2142_v23, %v6739_v63  ;;  %v2168_v41 = vsub.f32 %v9321_v24, %v6925_v27  ;;  %4840 = vpow2.f32 %v2436_v42  ;;  %v2111_v6 = vmax.f32 %v6566_v10, %v6575_v8  ;;  %v2005_v23 = vpop.xlane.xlu0 %2004  ;;  %v9325_v42 = vld [vmem:[#allocation149_spill] sm:$0xff] }
 0x37b   : > { %9319 = vst [vmem:[#allocation26_spill] sm:$0xff] %v6966_v48  ;;  %v6975_v55 = vpop.eup %4816  ;;  %3024 = vmatpush1.xpose.msra.mxu1 %v6966_v48  ;;  %v2118_v1 = vmax.f32 %v2117_v36, %v6604_v21  ;;  %v2424_v11 = vmul.f32 1.442695, %v2167_v16  ;;  %2129 = vmax.xlane.f32.xlu1 %v2128_v20  ;;  %4842 = vpow2.f32 %v2442_v13  ;;  %v2428_v27 = vmul.f32 1.442695, %v2169_v59  ;;  %v9327_v20 = vld [vmem:[#allocation143_spill] sm:$0xff] }
 0x37c   : > { %9320 = vst [vmem:[#allocation232_spill] sm:$0xff] %v6975_v55  ;;  %v6981_v31 = vpop.eup %4818  ;;  %2954 = vmatprep.subr.mxu0 %v6975_v55  ;;  %2144 = vmax.xlane.f32.xlu0 %v2143_v9  ;;  %v2290_v24 = vsub.f32 %v9324_v18, %v2005_v23  ;;  %v2291_v48 = vsub.f32 %v9325_v42, %v2005_v23  ;;  %v9328_v13 = vld [vmem:[#allocation150_spill] sm:$0xff]  ;;  %4844 = vpow2.f32 %v2422_v14  ;;  %v2426_v9 = vmul.f32 1.442695, %v2168_v41  ;;  %v9330_v18 = vld [vmem:[#allocation148_spill] sm:$0xff]  ;;  %v9334_v14 = vld [vmem:[#allocation85_spill] sm:$0xff] }
 0x37d   : > { %9322 = vst [vmem:[#allocation24_spill] sm:$0xff] %v6981_v31  ;;  %v6987_v49 = vpop.eup %4820  ;;  %2955 = vmatpush1.xpose.msra.mxu0 %v6981_v31  ;;  %v2122_v36 = vmax.f32 %v2121_v33, %v6612_v5  ;;  %v2133_v16 = vmax.f32 %v2132_v46, %v6679_v52  ;;  %v2286_v55 = vsub.f32 %v9327_v20, %v6973_v51  ;;  %4846 = vpow2.f32 %v2424_v11  ;;  %v9332_v46 = vld [vmem:[#allocation145_spill] sm:$0xff] }
 0x37e   : > { %9323 = vst [vmem:[#allocation233_spill] sm:$0xff] %v6987_v49  ;;  %v6992_v32 = vpop.eup %4822  ;;  %3025 = vmatprep.subr.mxu1 %v6987_v49  ;;  %v2293_v59 = vsub.f32 %v9328_v13, %v2005_v23  ;;  %v2292_v42 = vsub.f32 %v9330_v18, %v2005_v23  ;;  %v2672_v31 = vmul.f32 1.442695, %v2291_v48  ;;  %v2101_v33 = vmax.f32 %v6522_v30, %v6533_v25  ;;  %v7011_v49 = vpop.xlane.xlu1 %1989  ;;  %v9335_v23 = vld [vmem:[#allocation144_spill] sm:$0xff] }
 0x37f   : > { %9326 = vst [vmem:[#allocation147_spill] sm:$0xff] %v6992_v32  ;;  %v7000_v38 = vpop.eup %4824  ;;  %3026 = vmatpush1.xpose.msra.mxu1 %v6992_v32  ;;  %v2287_v20 = vsub.f32 %v9332_v46, %v6973_v51  ;;  %2119 = vmax.xlane.f32.xlu1 %v2118_v1  ;;  %v2108_v48 = vmax.f32 %v6961_v47, %v9334_v14  ;;  %4848 = vpow2.f32 %v2428_v27  ;;  %v2670_v32 = vmul.f32 1.442695, %v2290_v24  ;;  %v7020_v11 = vpop.xlane.xlu0 %1994  ;;  %v9338_v1 = vld [vmem:[#allocation146_spill] sm:$0xff]  ;;  %v9339_v47 = vld [vmem:[#allocation69_spill] sm:$0xff]  ;;  %v9340_v27 = vld [vmem:[#allocation27_spill] sm:$0xff] }
 0x380   : > { %9329 = vst [vmem:[#allocation149_spill] sm:$0xff] %v7000_v38  ;;  %v7004_v53 = vpop.eup %4826  ;;  %2956 = vmatprep.subr.mxu0 %v7000_v38  ;;  %v2676_v13 = vmul.f32 1.442695, %v2293_v59  ;;  %v2288_v18 = vsub.f32 %v9335_v23, %v6973_v51  ;;  %2134 = vmax.xlane.f32.xlu0 %v2133_v16  ;;  %v9337_v59 = vld [vmem:[#allocation84_spill] sm:$0xff]  ;;  %v2289_v30 = vsub.f32 %v9338_v1, %v6973_v51  ;;  %v2662_v25 = vmul.f32 1.442695, %v2286_v55 }
 0x381   : > { %9331 = vst [vmem:[#allocation143_spill] sm:$0xff] %v7004_v53  ;;  %v7013_v41 = vpop.eup %4828  ;;  %2957 = vmatpush1.xpose.msra.mxu0 %v7004_v53  ;;  %v2112_v38 = vmax.f32 %v2111_v6, %v9337_v59  ;;  %4850 = vpow2.f32 %v2672_v31  ;;  %v2123_v24 = vmax.f32 %v2122_v36, %v9340_v27  ;;  %v2674_v23 = vmul.f32 1.442695, %v2292_v42  ;;  %v9341_v16 = vld [vmem:[#allocation135_spill] sm:$0xff]  ;;  %v9344_v51 = vld [vmem:[#allocation68_spill] sm:$0xff]  ;;  %v9345_v31 = vld [vmem:[#allocation141_spill] sm:$0xff] }
 0x382   : > { %9333 = vst [vmem:[#allocation150_spill] sm:$0xff] %v7013_v41  ;;  %v7022_v46 = vpop.eup %4830  ;;  %3027 = vmatprep.subr.mxu1 %v7013_v41  ;;  %2958 = vmatprep.subr.mxu0 %v9339_v47  ;;  %4852 = vpow2.f32 %v2426_v9  ;;  %v2278_v53 = vsub.f32 %v9341_v16, %v7011_v49  ;;  %v9343_v6 = vld [vmem:[#allocation219_spill] sm:$0xff]  ;;  %v2664_v59 = vmul.f32 1.442695, %v2287_v20  ;;  %v2283_v55 = vsub.f32 %v9345_v31, %v7020_v11  ;;  %v9348_v9 = vld [vmem:[#allocation45_spill] sm:$0xff]  ;;  %v9350_v41 = vld [vmem:[#allocation76_spill] sm:$0xff] }
 0x383   : > { %9336 = vst [vmem:[#allocation148_spill] sm:$0xff] %v7022_v46  ;;  %3028 = vmatpush1.xpose.msra.mxu1 %v7022_v46  ;;  %v2091_v14 = vmax.f32 %v9343_v6, %v9342_v35  ;;  %4854 = vpow2.f32 %v2676_v13  ;;  %2109 = vmax.xlane.f32.xlu1 %v2108_v48  ;;  %v7038_v1 = vpop.eup %4832  ;;  %v9347_v36 = vld [vmem:[#allocation79_spill] sm:$0xff]  ;;  %v2666_v46 = vmul.f32 1.442695, %v2288_v18  ;;  %v9349_v16 = vld [vmem:[#allocation137_spill] sm:$0xff]  ;;  %v9352_v13 = vld [vmem:[#allocation80_spill] sm:$0xff] }
 0x384   : > { %3029 = vmatprep.subr.mxu1 %v9344_v51  ;;  %9346 = vst [vmem:[#allocation145_spill] sm:$0xff] %v7038_v1  ;;  %v2098_v42 = vmax.f32 %v9348_v9, %v9347_v36  ;;  %4856 = vpow2.f32 %v2670_v32  ;;  %v2279_v47 = vsub.f32 %v9349_v16, %v7011_v49  ;;  %2124 = vmax.xlane.f32.xlu0 %v2123_v24  ;;  %v7045_v20 = vpop.eup %4834  ;;  %v2668_v31 = vmul.f32 1.442695, %v2289_v30  ;;  %v9353_v48 = vld [vmem:[#allocation142_spill] sm:$0xff]  ;;  %v9359_v30 = vld [vmem:[#allocation136_spill] sm:$0xff] }
 0x385   : > { %2959 = vmatpush1.xpose.msra.mxu0 %v9350_v41  ;;  %9351 = vst [vmem:[#allocation144_spill] sm:$0xff] %v7045_v20  ;;  %v2102_v51 = vmax.f32 %v2101_v33, %v9352_v13  ;;  %4858 = vpow2.f32 %v2662_v25  ;;  %v2285_v6 = vsub.f32 %v9353_v48, %v7020_v11  ;;  %v7051_v9 = vpop.eup %4836  ;;  %v9355_v32 = vld [vmem:[#allocation86_spill] sm:$0xff]  ;;  %v2646_v16 = vmul.f32 1.442695, %v2278_v53  ;;  %v9356_v41 = vld [vmem:[#allocation139_spill] sm:$0xff]  ;;  %v7061_v48 = vpop.xlane.xlu1 %1979 }
 0x386   : > { %2960 = vmatprep.subr.mxu0 %v7038_v1  ;;  %9354 = vst [vmem:[#allocation146_spill] sm:$0xff] %v7051_v9  ;;  %v2113_v18 = vmax.f32 %v2112_v38, %v9355_v32  ;;  %4860 = vpow2.f32 %v2674_v23  ;;  %v2282_v24 = vsub.f32 %v9356_v41, %v7020_v11  ;;  %v9357_v35 = vld [vmem:[#allocation70_spill] sm:$0xff]  ;;  %v7057_v36 = vpop.eup %4838  ;;  %v2280_v25 = vsub.f32 %v9359_v30, %v7011_v49  ;;  %v9362_v23 = vld [vmem:[#allocation47_spill] sm:$0xff]  ;;  %v9365_v30 = vld [vmem:[#allocation220_spill] sm:$0xff] }
 0x387   : > { %3030 = vmatpush1.xpose.msra.mxu1 %v9357_v35  ;;  %9358 = vst [vmem:[#allocation27_spill] sm:$0xff] %v7057_v36  ;;  %4862 = vpow2.f32 %v2664_v59  ;;  %v2656_v33 = vmul.f32 1.442695, %v2283_v55  ;;  %2099 = vmax.xlane.f32.xlu1 %v2098_v42  ;;  %v7064_v38 = vpop.eup %4840  ;;  %v9361_v53 = vld [vmem:[#allocation218_spill] sm:$0xff]  ;;  %v2648_v41 = vmul.f32 1.442695, %v2279_v47  ;;  %v7070_v59 = vpop.xlane.xlu0 %1984 }
 0x388   : > { %3031 = vmatprep.subr.mxu1 %v7051_v9  ;;  %9360 = vst [vmem:[#allocation135_spill] sm:$0xff] %v7064_v38  ;;  %v2088_v1 = vmax.f32 %v9362_v23, %v9361_v53  ;;  %4864 = vpow2.f32 %v2666_v46  ;;  %v9363_v35 = vld [vmem:[#allocation140_spill] sm:$0xff]  ;;  %2114 = vmax.xlane.f32.xlu0 %v2113_v18  ;;  %v7073_v55 = vpop.eup %4842  ;;  %v2092_v9 = vmax.f32 %v2091_v14, %v9365_v30  ;;  %v9366_v42 = vld [vmem:[#allocation138_spill] sm:$0xff]  ;;  %v2660_v10 = vmul.f32 1.442695, %v2285_v6  ;;  %v9368_v46 = vld [vmem:[#allocation35_spill] sm:$0xff] }
 0x389   : > { %v2284_v13 = vsub.f32 %v9363_v35, %v7020_v11  ;;  %2961 = vmatpush1.xpose.msra.mxu0 %v7057_v36  ;;  %9364 = vst [vmem:[#allocation141_spill] sm:$0xff] %v7073_v55  ;;  %4866 = vpow2.f32 %v2668_v31  ;;  %v2281_v39 = vsub.f32 %v9366_v42, %v7011_v49  ;;  %v9367_v23 = vld [vmem:[#allocation66_spill] sm:$0xff]  ;;  %v2103_v47 = vmax.f32 %v2102_v51, %v9368_v46  ;;  %v9369_v11 = vld [vmem:[#allocation127_spill] sm:$0xff]  ;;  %v7083_v18 = vpop.eup %4844  ;;  %v9371_v14 = vld [vmem:[#allocation133_spill] sm:$0xff] }
 0x38a   : > { %2962 = vmatprep.subr.mxu0 %v9367_v23  ;;  %4868 = vpow2.f32 %v2646_v16  ;;  %v2654_v35 = vmul.f32 1.442695, %v2282_v24  ;;  %v2270_v53 = vsub.f32 %v9369_v11, %v7061_v48  ;;  %9370 = vst [vmem:[#allocation45_spill] sm:$0xff] %v7083_v18  ;;  %v2650_v36 = vmul.f32 1.442695, %v2280_v25  ;;  %v7088_v49 = vpop.eup %4846  ;;  %v9373_v51 = vld [vmem:[#allocation129_spill] sm:$0xff] }
 0x38b   : > { %3032 = vmatpush1.xpose.msra.mxu1 %v7073_v55  ;;  %4870 = vpow2.f32 %v2656_v33  ;;  %v2275_v31 = vsub.f32 %v9371_v14, %v7070_v59  ;;  %2089 = vmax.xlane.f32.xlu1 %v2088_v1  ;;  %9372 = vst [vmem:[#allocation137_spill] sm:$0xff] %v7088_v49  ;;  %v2658_v6 = vmul.f32 1.442695, %v2284_v13  ;;  %v2271_v16 = vsub.f32 %v9373_v51, %v7061_v48  ;;  %v9374_v24 = vld [vmem:[#allocation63_spill] sm:$0xff]  ;;  %v9376_v33 = vld [vmem:[#allocation134_spill] sm:$0xff] }
 0x38c   : > { %3033 = vmatprep.subr.mxu1 %v7064_v38  ;;  %4872 = vpow2.f32 %v2648_v41  ;;  %2104 = vmax.xlane.f32.xlu0 %v2103_v47  ;;  %v7093_v42 = vpop.eup %4848  ;;  %v2652_v25 = vmul.f32 1.442695, %v2281_v39  ;;  %v2277_v11 = vsub.f32 %v9376_v33, %v7070_v59  ;;  %v9378_v14 = vld [vmem:[#allocation222_spill] sm:$0xff]  ;;  %v2630_v13 = vmul.f32 1.442695, %v2270_v53  ;;  %v9379_v51 = vld [vmem:[#allocation131_spill] sm:$0xff] }
 0x38d   : > { %2963 = vmatpush1.xpose.msra.mxu0 %v9374_v24  ;;  %9375 = vst [vmem:[#allocation142_spill] sm:$0xff] %v7093_v42  ;;  %4874 = vpow2.f32 %v2660_v10  ;;  %v2093_v41 = vmax.f32 %v2092_v9, %v9378_v14  ;;  %v2274_v38 = vsub.f32 %v9379_v51, %v7070_v59  ;;  %v9381_v39 = vld [vmem:[#allocation128_spill] sm:$0xff]  ;;  %v2640_v33 = vmul.f32 1.442695, %v2275_v31  ;;  %v7108_v24 = vpop.xlane.xlu1 %1969  ;;  %v1975_v51 = vpop.xlane.xlu0 %1974  ;;  %v9385_v31 = vld [vmem:[#allocation130_spill] sm:$0xff] }
 0x38e   : > { %2964 = vmatprep.subr.mxu0 %v7088_v49  ;;  %v7098_v1 = vpop.eup %4850  ;;  %4876 = vpow2.f32 %v2654_v35  ;;  %v2272_v10 = vsub.f32 %v9381_v39, %v7061_v48  ;;  %v2632_v9 = vmul.f32 1.442695, %v2271_v16  ;;  %v9383_v53 = vld [vmem:[#allocation132_spill] sm:$0xff]  ;;  %v2273_v39 = vsub.f32 %v9385_v31, %v7061_v48  ;;  %v9387_v16 = vld [vmem:[#allocation119_spill] sm:$0xff] }
 0x38f   : > { %9377 = vst [vmem:[#allocation86_spill] sm:$0xff] %v7098_v1  ;;  %3034 = vmatpush1.xpose.msra.mxu1 %v7045_v20  ;;  %v7104_v47 = vpop.eup %4852  ;;  %4878 = vpow2.f32 %v2650_v36  ;;  %v2276_v35 = vsub.f32 %v9383_v53, %v7070_v59  ;;  %v2644_v20 = vmul.f32 1.442695, %v2277_v11  ;;  %v2262_v59 = vsub.f32 %v9387_v16, %v7108_v24 }
 0x390   : > { %9380 = vst [vmem:[#allocation139_spill] sm:$0xff] %v7104_v47  ;;  %3035 = vmatprep.subr.mxu1 %v7093_v42  ;;  %v7111_v49 = vpop.eup %4854  ;;  %4880 = vpow2.f32 %v2658_v6  ;;  %2094 = vmax.xlane.f32.xlu0 %v2093_v41  ;;  %v2638_v6 = vmul.f32 1.442695, %v2274_v38  ;;  %v2634_v41 = vmul.f32 1.442695, %v2272_v10 }
 0x391   : > { %9382 = vst [vmem:[#allocation136_spill] sm:$0xff] %v7111_v49  ;;  %2965 = vmatpush1.xpose.msra.mxu0 %v7083_v18  ;;  %v7116_v36 = vpop.eup %4856  ;;  %4882 = vpow2.f32 %v2652_v25  ;;  %v9389_v25 = vld [vmem:[#allocation125_spill] sm:$0xff]  ;;  %v2642_v11 = vmul.f32 1.442695, %v2276_v35  ;;  %v2636_v16 = vmul.f32 1.442695, %v2273_v39 }
 0x392   : > { %9384 = vst [vmem:[#allocation47_spill] sm:$0xff] %v7116_v36  ;;  %2966 = vmatprep.subr.mxu0 %v7098_v1  ;;  %v7121_v42 = vpop.eup %4858  ;;  %4884 = vpow2.f32 %v2630_v13  ;;  %v2267_v18 = vsub.f32 %v9389_v25, %v1975_v51  ;;  %v9391_v13 = vld [vmem:[#allocation121_spill] sm:$0xff]  ;;  %v2614_v25 = vmul.f32 1.442695, %v2262_v59  ;;  %v9399_v59 = vld [vmem:[#allocation124_spill] sm:$0xff] }
 0x393   : > { %9386 = vst [vmem:[#allocation140_spill] sm:$0xff] %v7121_v42  ;;  %3036 = vmatpush1.xpose.msra.mxu1 %v7104_v47  ;;  %v7126_v53 = vpop.eup %4860  ;;  %4886 = vpow2.f32 %v2640_v33  ;;  %v2263_v38 = vsub.f32 %v9391_v13, %v7108_v24  ;;  %v9393_v47 = vld [vmem:[#allocation126_spill] sm:$0xff]  ;;  %v9397_v13 = vld [vmem:[#allocation120_spill] sm:$0xff] }
 0x394   : > { %9388 = vst [vmem:[#allocation220_spill] sm:$0xff] %v7126_v53  ;;  %3037 = vmatprep.subr.mxu1 %v7111_v49  ;;  %v7130_v48 = vpop.eup %4862  ;;  %4888 = vpow2.f32 %v2632_v9  ;;  %v2269_v10 = vsub.f32 %v9393_v47, %v1975_v51  ;;  %v9395_v49 = vld [vmem:[#allocation123_spill] sm:$0xff]  ;;  %v2624_v39 = vmul.f32 1.442695, %v2267_v18 }
 0x395   : > { %9390 = vst [vmem:[#allocation138_spill] sm:$0xff] %v7130_v48  ;;  %2967 = vmatpush2.xpose.msra.mxu0 %v7116_v36  ;;  %v7135_v31 = vpop.eup %4864  ;;  %4890 = vpow2.f32 %v2644_v20  ;;  %v2266_v9 = vsub.f32 %v9395_v49, %v1975_v51  ;;  %v2264_v36 = vsub.f32 %v9397_v13, %v7108_v24  ;;  %v7147_v20 = vpop.xlane.xlu1 %1959 }
 0x396   : > { %9392 = vst [vmem:[#allocation66_spill] sm:$0xff] %v7135_v31  ;;  %2968 = vmatprep.subr.mxu0 %v7130_v48  ;;  %v7139_v33 = vpop.eup %4866  ;;  %4892 = vpow2.f32 %v2638_v6  ;;  %v2616_v6 = vmul.f32 1.442695, %v2263_v38  ;;  %v2268_v48 = vsub.f32 %v9399_v59, %v1975_v51  ;;  %v1965_v49 = vpop.xlane.xlu0 %1964  ;;  %v2628_v18 = vmul.f32 1.442695, %v2269_v10 }
 0x397   : > { %9394 = vst [vmem:[#allocation35_spill] sm:$0xff] %v7139_v33  ;;  %3038 = vmatpush2.xpose.msra.mxu1 %v7126_v53  ;;  %v7143_v35 = vpop.eup %4868  ;;  %4894 = vpow2.f32 %v2634_v41  ;;  %v9401_v41 = vld [vmem:[#allocation122_spill] sm:$0xff]  ;;  %v2618_v59 = vmul.f32 1.442695, %v2264_v36 }
 0x398   : > { %9396 = vst [vmem:[#allocation127_spill] sm:$0xff] %v7143_v35  ;;  %3039 = vmatprep.subr.mxu1 %v7139_v33  ;;  %v7150_v47 = vpop.eup %4870  ;;  %4896 = vpow2.f32 %v2642_v11  ;;  %v2265_v13 = vsub.f32 %v9401_v41, %v7108_v24  ;;  %v2622_v33 = vmul.f32 1.442695, %v2266_v9  ;;  %v9403_v11 = vld [vmem:[#allocation111_spill] sm:$0xff]  ;;  %v2626_v10 = vmul.f32 1.442695, %v2268_v48 }
 0x399   : > { %9398 = vst [vmem:[#allocation133_spill] sm:$0xff] %v7150_v47  ;;  %2969 = vmatpush2.xpose.msra.mxu0 %v7121_v42  ;;  %v7154_v53 = vpop.eup %4872  ;;  %4898 = vpow2.f32 %v2636_v16  ;;  %v2254_v38 = vsub.f32 %v9403_v11, %v7147_v20  ;;  %v9405_v16 = vld [vmem:[#allocation117_spill] sm:$0xff] }
 0x39a   : > { %9400 = vst [vmem:[#allocation129_spill] sm:$0xff] %v7154_v53  ;;  %2970 = vmatprep.subr.mxu0 %v7150_v47  ;;  %v7159_v1 = vpop.eup %4874  ;;  %4900 = vpow2.f32 %v2614_v25  ;;  %v2259_v42 = vsub.f32 %v9405_v16, %v1965_v49  ;;  %v9407_v25 = vld [vmem:[#allocation113_spill] sm:$0xff]  ;;  %v2620_v11 = vmul.f32 1.442695, %v2265_v13 }
 0x39b   : > { %9402 = vst [vmem:[#allocation134_spill] sm:$0xff] %v7159_v1  ;;  %3040 = vmatpush2.xpose.msra.mxu1 %v7135_v31  ;;  %v7164_v51 = vpop.eup %4876  ;;  %4902 = vpow2.f32 %v2624_v39  ;;  %v2255_v9 = vsub.f32 %v9407_v25, %v7147_v20  ;;  %v9409_v31 = vld [vmem:[#allocation118_spill] sm:$0xff]  ;;  %v2598_v16 = vmul.f32 1.442695, %v2254_v38  ;;  %v9413_v25 = vld [vmem:[#allocation112_spill] sm:$0xff] }
 0x39c   : > { %9404 = vst [vmem:[#allocation222_spill] sm:$0xff] %v7164_v51  ;;  %3041 = vmatprep.subr.mxu1 %v7159_v1  ;;  %v7168_v24 = vpop.eup %4878  ;;  %4904 = vpow2.f32 %v2616_v6  ;;  %v2261_v36 = vsub.f32 %v9409_v31, %v1965_v49  ;;  %v9411_v1 = vld [vmem:[#allocation115_spill] sm:$0xff]  ;;  %v2608_v13 = vmul.f32 1.442695, %v2259_v42  ;;  %v9415_v38 = vld [vmem:[#allocation116_spill] sm:$0xff]  ;;  %v9417_v42 = vld [vmem:[#allocation114_spill] sm:$0xff] }
 0x39d   : > { %9406 = vst [vmem:[#allocation131_spill] sm:$0xff] %v7168_v24  ;;  %2971 = vmatpush2.xpose.msra.mxu0 %v7164_v51  ;;  %v7173_v41 = vpop.eup %4880  ;;  %4906 = vpow2.f32 %v2628_v18  ;;  %v2258_v6 = vsub.f32 %v9411_v1, %v1965_v49  ;;  %v2256_v51 = vsub.f32 %v9413_v25, %v7147_v20  ;;  %v7185_v18 = vpop.xlane.xlu1 %1949  ;;  %v2257_v25 = vsub.f32 %v9417_v42, %v7147_v20  ;;  %v435_v20 = vld [vmem:[%s5606_s15 + $0x10] sm:$0xff] }
 0x39e   : > { %9408 = vst [vmem:[#allocation128_spill] sm:$0xff] %v7173_v41  ;;  %2972 = vmatprep.subr.mxu0 %v7154_v53  ;;  %v7177_v39 = vpop.eup %4882  ;;  %4908 = vpow2.f32 %v2622_v33  ;;  %v2600_v33 = vmul.f32 1.442695, %v2255_v9  ;;  %v2260_v53 = vsub.f32 %v9415_v38, %v1965_v49  ;;  %v7191_v1 = vpop.xlane.xlu0 %1954  ;;  %v9419_v49 = vld [vmem:[#allocation103_spill] sm:$0xff] }
 0x39f   : > { %9410 = vst [vmem:[#allocation132_spill] sm:$0xff] %v7177_v39  ;;  %3042 = vmatpush2.xpose.msra.mxu1 %v7173_v41  ;;  %v7181_v48 = vpop.eup %4884  ;;  %4910 = vpow2.f32 %v2618_v59  ;;  %v2612_v41 = vmul.f32 1.442695, %v2261_v36  ;;  %v2246_v9 = vsub.f32 %v9419_v49, %v7185_v18 }
 0x3a0   : > { %9412 = vst [vmem:[#allocation130_spill] sm:$0xff] %v7181_v48  ;;  %3043 = vmatprep.subr.mxu1 %v7177_v39  ;;  %v7188_v31 = vpop.eup %4886  ;;  %4912 = vpow2.f32 %v2626_v10  ;;  %v2606_v10 = vmul.f32 1.442695, %v2258_v6  ;;  %v9423_v6 = vld [vmem:[#allocation105_spill] sm:$0xff] }
 0x3a1   : > { %9414 = vst [vmem:[#allocation119_spill] sm:$0xff] %v7188_v31  ;;  %2973 = vmatpush2.xpose.msra.mxu0 %v7143_v35  ;;  %v7194_v59 = vpop.eup %4888  ;;  %4914 = vpow2.f32 %v2620_v11  ;;  %v2602_v35 = vmul.f32 1.442695, %v2256_v51  ;;  %v9421_v11 = vld [vmem:[#allocation109_spill] sm:$0xff]  ;;  %v2247_v42 = vsub.f32 %v9423_v6, %v7185_v18  ;;  %v9425_v51 = vld [vmem:[#allocation110_spill] sm:$0xff] }
 0x3a2   : > { %9416 = vst [vmem:[#allocation125_spill] sm:$0xff] %v7194_v59  ;;  %2974 = vmatprep.subr.mxu0 %v7188_v31  ;;  %v7199_v39 = vpop.eup %4890  ;;  %4916 = vpow2.f32 %v2598_v16  ;;  %v2251_v47 = vsub.f32 %v9421_v11, %v7191_v1  ;;  %v2610_v16 = vmul.f32 1.442695, %v2260_v53  ;;  %v9427_v53 = vld [vmem:[#allocation107_spill] sm:$0xff] }
 0x3a3   : > { %9418 = vst [vmem:[#allocation121_spill] sm:$0xff] %v7199_v39  ;;  %3044 = vmatpush2.xpose.msra.mxu1 %v7168_v24  ;;  %v7204_v38 = vpop.eup %4892  ;;  %4918 = vpow2.f32 %v2608_v13  ;;  %v2604_v24 = vmul.f32 1.442695, %v2257_v25  ;;  %v2253_v13 = vsub.f32 %v9425_v51, %v7191_v1  ;;  %v7229_v51 = vpop.xlane.xlu1 %1939 }
 0x3a4   : > { %9420 = vst [vmem:[#allocation126_spill] sm:$0xff] %v7204_v38  ;;  %3045 = vmatprep.subr.mxu1 %v7199_v39  ;;  %v7210_v36 = vpop.eup %4894  ;;  %4920 = vpow2.f32 %v2600_v33  ;;  %v2582_v39 = vmul.f32 1.442695, %v2246_v9  ;;  %v2250_v33 = vsub.f32 %v9427_v53, %v7191_v1  ;;  %v9431_v9 = vld [vmem:[#allocation108_spill] sm:$0xff] }
 0x3a5   : > { %9422 = vst [vmem:[#allocation123_spill] sm:$0xff] %v7210_v36  ;;  %2975 = vmatpush2.xpose.msra.mxu0 %v7204_v38  ;;  %v7215_v49 = vpop.eup %4896  ;;  %4922 = vpow2.f32 %v2612_v41  ;;  %v9429_v41 = vld [vmem:[#allocation104_spill] sm:$0xff]  ;;  %v2592_v38 = vmul.f32 1.442695, %v2251_v47  ;;  %v2252_v53 = vsub.f32 %v9431_v9, %v7191_v1 }
 0x3a6   : > { %9424 = vst [vmem:[#allocation120_spill] sm:$0xff] %v7215_v49  ;;  %2976 = vmatprep.subr.mxu0 %v7194_v59  ;;  %v7220_v11 = vpop.eup %4898  ;;  %4924 = vpow2.f32 %v2606_v10  ;;  %448 = vperm.xlu0 %4723, %v435_v20   ;;  %v2248_v25 = vsub.f32 %v9429_v41, %v7185_v18  ;;  %v2584_v10 = vmul.f32 1.442695, %v2247_v42  ;;  %v2596_v41 = vmul.f32 1.442695, %v2253_v13  ;;  %v9435_v42 = vld [vmem:[#allocation95_spill] sm:$0xff] }
 0x3a7   : > { %9426 = vst [vmem:[#allocation124_spill] sm:$0xff] %v7220_v11  ;;  %3046 = vmatpush2.xpose.msra.mxu1 %v7215_v49  ;;  %v7225_v6 = vpop.eup %4900  ;;  %4926 = vpow2.f32 %v2602_v35  ;;  %v1945_v49 = vpop.xlane.xlu0 %1944  ;;  %v9433_v35 = vld [vmem:[#allocation106_spill] sm:$0xff]  ;;  %v2238_v31 = vsub.f32 %v9435_v42, %v7229_v51  ;;  %v2594_v13 = vmul.f32 1.442695, %v2252_v53 }
 0x3a8   : > { %9428 = vst [vmem:[#allocation122_spill] sm:$0xff] %v7225_v6  ;;  %3047 = vmatprep.subr.mxu1 %v7220_v11  ;;  %v7232_v59 = vpop.eup %4902  ;;  %4928 = vpow2.f32 %v2610_v16  ;;  %v2249_v47 = vsub.f32 %v9433_v35, %v7185_v18  ;;  %v2590_v16 = vmul.f32 1.442695, %v2250_v33  ;;  %v2586_v9 = vmul.f32 1.442695, %v2248_v25 }
 0x3a9   : > { %9430 = vst [vmem:[#allocation111_spill] sm:$0xff] %v7232_v59  ;;  %2977 = vmatpush2.xpose.msra.mxu0 %v7181_v48  ;;  %v7237_v20 = vpop.eup %4904  ;;  %4930 = vpow2.f32 %v2604_v24  ;;  %v9437_v24 = vld [vmem:[#allocation101_spill] sm:$0xff] }
 0x3aa   : > { %9432 = vst [vmem:[#allocation117_spill] sm:$0xff] %v7237_v20  ;;  %2978 = vmatprep.subr.mxu0 %v7232_v59  ;;  %v7242_v11 = vpop.eup %4906  ;;  %4932 = vpow2.f32 %v2582_v39  ;;  %v2243_v48 = vsub.f32 %v9437_v24, %v1945_v49  ;;  %v9439_v39 = vld [vmem:[#allocation97_spill] sm:$0xff]  ;;  %v2588_v42 = vmul.f32 1.442695, %v2249_v47  ;;  %v2566_v24 = vmul.f32 1.442695, %v2238_v31 }
 0x3ab   : > { %9434 = vst [vmem:[#allocation113_spill] sm:$0xff] %v7242_v11  ;;  %3048 = vmatpush2.xpose.msra.mxu1 %v7210_v36  ;;  %v7247_v1 = vpop.eup %4908  ;;  %4934 = vpow2.f32 %v2592_v38  ;;  %v2239_v33 = vsub.f32 %v9439_v39, %v7229_v51  ;;  %v9441_v36 = vld [vmem:[#allocation102_spill] sm:$0xff]  ;;  %v9445_v39 = vld [vmem:[#allocation96_spill] sm:$0xff] }
 0x3ac   : > { %9436 = vst [vmem:[#allocation118_spill] sm:$0xff] %v7247_v1  ;;  %3049 = vmatprep.subr.mxu1 %v7242_v11  ;;  %v7251_v18 = vpop.eup %4910  ;;  %4936 = vpow2.f32 %v2584_v10  ;;  %v2245_v25 = vsub.f32 %v9441_v36, %v1945_v49  ;;  %v9443_v11 = vld [vmem:[#allocation99_spill] sm:$0xff]  ;;  %v2576_v47 = vmul.f32 1.442695, %v2243_v48  ;;  %v9447_v31 = vld [vmem:[#allocation100_spill] sm:$0xff] }
 0x3ad   : > { %9438 = vst [vmem:[#allocation115_spill] sm:$0xff] %v7251_v18  ;;  %2979 = vmatpush2.xpose.msra.mxu0 %v7247_v1  ;;  %v7256_v35 = vpop.eup %4912  ;;  %4938 = vpow2.f32 %v2596_v41  ;;  %v2242_v10 = vsub.f32 %v9443_v11, %v1945_v49  ;;  %v2240_v1 = vsub.f32 %v9445_v39, %v7229_v51  ;;  %v7268_v41 = vpop.xlane.xlu1 %1929 }
 0x3ae   : > { %9440 = vst [vmem:[#allocation112_spill] sm:$0xff] %v7256_v35  ;;  %2980 = vmatprep.subr.mxu0 %v7237_v20  ;;  %v7260_v38 = vpop.eup %4914  ;;  %4940 = vpow2.f32 %v2590_v16  ;;  %v2568_v16 = vmul.f32 1.442695, %v2239_v33  ;;  %v2244_v20 = vsub.f32 %v9447_v31, %v1945_v49  ;;  %v1935_v11 = vpop.xlane.xlu0 %1934  ;;  %v2580_v48 = vmul.f32 1.442695, %v2245_v25 }
 0x3af   : > { %9442 = vst [vmem:[#allocation116_spill] sm:$0xff] %v7260_v38  ;;  %3050 = vmatpush2.xpose.msra.mxu1 %v7256_v35  ;;  %v7264_v53 = vpop.eup %4916  ;;  %4942 = vpow2.f32 %v2586_v9  ;;  %v9449_v9 = vld [vmem:[#allocation98_spill] sm:$0xff]  ;;  %v2570_v31 = vmul.f32 1.442695, %v2240_v1 }
 0x3b0   : > { %9444 = vst [vmem:[#allocation114_spill] sm:$0xff] %v7264_v53  ;;  %3051 = vmatprep.subr.mxu1 %v7260_v38  ;;  %v7271_v36 = vpop.eup %4918  ;;  %4944 = vpow2.f32 %v2594_v13  ;;  %v2241_v39 = vsub.f32 %v9449_v9, %v7229_v51  ;;  %v2574_v38 = vmul.f32 1.442695, %v2242_v10  ;;  %v9451_v13 = vld [vmem:[#allocation87_spill] sm:$0xff]  ;;  %v2578_v25 = vmul.f32 1.442695, %v2244_v20 }
 0x3b1   : > { %9446 = vst [vmem:[#allocation103_spill] sm:$0xff] %v7271_v36  ;;  %2981 = vmatpush2.xpose.msra.mxu0 %v7225_v6  ;;  %v7275_v35 = vpop.eup %4920  ;;  %4946 = vpow2.f32 %v2588_v42  ;;  %v2230_v33 = vsub.f32 %v9451_v13, %v7268_v41  ;;  %v9453_v42 = vld [vmem:[#allocation93_spill] sm:$0xff] }
 0x3b2   : > { %9448 = vst [vmem:[#allocation109_spill] sm:$0xff] %v7275_v35  ;;  %2982 = vmatprep.subr.mxu0 %v7271_v36  ;;  %v7280_v59 = vpop.eup %4922  ;;  %4948 = vpow2.f32 %v2566_v24  ;;  %v2235_v6 = vsub.f32 %v9453_v42, %v1935_v11  ;;  %v9455_v24 = vld [vmem:[#allocation89_spill] sm:$0xff]  ;;  %v2572_v13 = vmul.f32 1.442695, %v2241_v39 }
 0x3b3   : > { %9450 = vst [vmem:[#allocation105_spill] sm:$0xff] %v7280_v59  ;;  %3052 = vmatpush2.xpose.msra.mxu1 %v7251_v18  ;;  %v7285_v49 = vpop.eup %4924  ;;  %4950 = vpow2.f32 %v2576_v47  ;;  %v2231_v10 = vsub.f32 %v9455_v24, %v7268_v41  ;;  %v9457_v18 = vld [vmem:[#allocation94_spill] sm:$0xff]  ;;  %v2550_v42 = vmul.f32 1.442695, %v2230_v33 }
 0x3b4   : > { %9452 = vst [vmem:[#allocation110_spill] sm:$0xff] %v7285_v49  ;;  %3053 = vmatprep.subr.mxu1 %v7280_v59  ;;  %v7289_v51 = vpop.eup %4926  ;;  %4952 = vpow2.f32 %v2568_v16  ;;  %v2237_v1 = vsub.f32 %v9457_v18, %v1935_v11  ;;  %v9459_v59 = vld [vmem:[#allocation91_spill] sm:$0xff]  ;;  %v9461_v24 = vld [vmem:[#allocation90_spill] sm:$0xff]  ;;  %v2560_v39 = vmul.f32 1.442695, %v2235_v6  ;;  %v9466_v6 = vld [vmem:[#allocation88_spill] sm:$0xff] }
 0x3b5   : > { %9454 = vst [vmem:[#allocation107_spill] sm:$0xff] %v7289_v51  ;;  %2983 = vmatpush2.xpose.msra.mxu0 %v7285_v49  ;;  %v7294_v9 = vpop.eup %4928  ;;  %4954 = vpow2.f32 %v2580_v48  ;;  %v2234_v16 = vsub.f32 %v9459_v59, %v1935_v11  ;;  %v2233_v49 = vsub.f32 %v9461_v24, %v7268_v41  ;;  %v2552_v48 = vmul.f32 1.442695, %v2231_v10 }
 0x3b6   : > { %9456 = vst [vmem:[#allocation104_spill] sm:$0xff] %v7294_v9  ;;  %2984 = vmatprep.subr.mxu0 %v7275_v35  ;;  %v7298_v47 = vpop.eup %4930  ;;  %4956 = vpow2.f32 %v2574_v38  ;;  %v9463_v35 = vld [vmem:[#allocation92_spill] sm:$0xff]  ;;  %v2564_v33 = vmul.f32 1.442695, %v2237_v1  ;;  %v2232_v24 = vsub.f32 %v9466_v6, %v7268_v41 }
 0x3b7   : > { %9458 = vst [vmem:[#allocation108_spill] sm:$0xff] %v7298_v47  ;;  %3054 = vmatpush2.xpose.msra.mxu1 %v7294_v9  ;;  %v7302_v20 = vpop.eup %4932  ;;  %4958 = vpow2.f32 %v2570_v31  ;;  %v2236_v38 = vsub.f32 %v9463_v35, %v1935_v11  ;;  %v2556_v35 = vmul.f32 1.442695, %v2233_v49  ;;  %v2080_v11 = vpop.xlane.xlu1 %2079  ;;  %v9472_v49 = vld [vmem:[#allocation214_spill] sm:$0xff] }
 0x3b8   : > { %9460 = vst [vmem:[#allocation106_spill] sm:$0xff] %v7302_v20  ;;  %3055 = vmatprep.subr.mxu1 %v7298_v47  ;;  %v7307_v18 = vpop.eup %4934  ;;  %4960 = vpow2.f32 %v2578_v25  ;;  %v2558_v47 = vmul.f32 1.442695, %v2234_v16 }
 0x3b9   : > { %9462 = vst [vmem:[#allocation95_spill] sm:$0xff] %v7307_v18  ;;  %2985 = vmatpush2.xpose.msra.mxu0 %v7264_v53  ;;  %v7311_v59 = vpop.eup %4936  ;;  %4962 = vpow2.f32 %v2572_v13  ;;  %v2562_v1 = vmul.f32 1.442695, %v2236_v38 }
 0x3ba   : > { %9464 = vst [vmem:[#allocation101_spill] sm:$0xff] %v7311_v59  ;;  %2986 = vmatprep.subr.mxu0 %v7307_v18  ;;  %v7314_v31 = vpop.eup %4938  ;;  %4964 = vpow2.f32 %v2550_v42  ;;  %v2085_v10 = vpop.xlane.xlu0 %2084  ;;  %v9469_v18 = vld [vmem:[#allocation211_spill] sm:$0xff]  ;;  %v9470_v42 = vld [vmem:[#allocation213_spill] sm:$0xff] }
 0x3bb   : > { %9465 = vst [vmem:[#allocation97_spill] sm:$0xff] %v7314_v31  ;;  %3056 = vmatpush2.xpose.msra.mxu1 %v7289_v51  ;;  %v7319_v25 = vpop.eup %4940  ;;  %4966 = vpow2.f32 %v2560_v39  ;;  %v2354_v41 = vsub.f32 %v9469_v18, %v2085_v10  ;;  %v2355_v16 = vsub.f32 %v9470_v42, %v2085_v10  ;;  %v2357_v39 = vsub.f32 %v9472_v49, %v2085_v10  ;;  %v9476_v18 = vld [vmem:[#allocation209_spill] sm:$0xff]  ;;  %v9478_v49 = vld [vmem:[#allocation207_spill] sm:$0xff] }
 0x3bc   : > { %9467 = vst [vmem:[#allocation102_spill] sm:$0xff] %v7319_v25  ;;  %3057 = vmatprep.subr.mxu1 %v7314_v31  ;;  %v7322_v13 = vpop.eup %4942  ;;  %4968 = vpow2.f32 %v2552_v48  ;;  %v2554_v51 = vmul.f32 1.442695, %v2232_v24  ;;  %v9474_v48 = vld [vmem:[#allocation212_spill] sm:$0xff]  ;;  %v2351_v42 = vsub.f32 %v9476_v18, %v2080_v11  ;;  %v2350_v9 = vsub.f32 %v9478_v49, %v2080_v11 }
 0x3bd   : > { %9468 = vst [vmem:[#allocation99_spill] sm:$0xff] %v7322_v13  ;;  %2987 = vmatpush2.xpose.msra.mxu0 %v7319_v25  ;;  %v7327_v6 = vpop.eup %4944  ;;  %4970 = vpow2.f32 %v2564_v33  ;;  %v2356_v38 = vsub.f32 %v9474_v48, %v2085_v10  ;;  %v2800_v25 = vmul.f32 1.442695, %v2355_v16  ;;  %v2804_v33 = vmul.f32 1.442695, %v2357_v39  ;;  %v9480_v10 = vld [vmem:[#allocation210_spill] sm:$0xff] }
 0x3be   : > { %9471 = vst [vmem:[#allocation96_spill] sm:$0xff] %v7327_v6  ;;  %2988 = vmatprep.subr.mxu0 %v7311_v59  ;;  %v7331_v31 = vpop.eup %4946  ;;  %4972 = vpow2.f32 %v2558_v47  ;;  %v2798_v24 = vmul.f32 1.442695, %v2354_v41  ;;  %v2075_v47 = vpop.xlane.xlu0 %2074  ;;  %v2353_v16 = vsub.f32 %v9480_v10, %v2080_v11  ;;  %v9482_v39 = vld [vmem:[#allocation208_spill] sm:$0xff]  ;;  %v2792_v49 = vmul.f32 1.442695, %v2351_v42 }
 0x3bf   : > { %9473 = vst [vmem:[#allocation100_spill] sm:$0xff] %v7331_v31  ;;  %3058 = vmatpush2.xpose.msra.mxu1 %v7327_v6  ;;  %v7335_v53 = vpop.eup %4948  ;;  %4974 = vpow2.f32 %v2556_v35  ;;  %v7346_v35 = vpop.xlane.xlu1 %2069  ;;  %v2802_v18 = vmul.f32 1.442695, %v2356_v38  ;;  %v9484_v10 = vld [vmem:[#allocation205_spill] sm:$0xff] }
 0x3c0   : > { %9475 = vst [vmem:[#allocation98_spill] sm:$0xff] %v7335_v53  ;;  %3059 = vmatprep.subr.mxu1 %v7331_v31  ;;  %v7339_v59 = vpop.eup %4950  ;;  %4976 = vpow2.f32 %v2562_v1  ;;  %v2352_v1 = vsub.f32 %v9482_v39, %v2080_v11  ;;  %v2790_v31 = vmul.f32 1.442695, %v2350_v9  ;;  %v2796_v38 = vmul.f32 1.442695, %v2353_v16  ;;  %v9488_v39 = vld [vmem:[#allocation206_spill] sm:$0xff] }
 0x3c1   : > { %9477 = vst [vmem:[#allocation87_spill] sm:$0xff] %v7339_v59  ;;  %2989 = vmatpush2.xpose.msra.mxu0 %v7302_v20  ;;  %v7343_v6 = vpop.eup %4952  ;;  %4978 = vpow2.f32 %v2800_v25  ;;  %v2347_v25 = vsub.f32 %v9484_v10, %v2075_v47  ;;  %v9490_v10 = vld [vmem:[#allocation203_spill] sm:$0xff] }
 0x3c2   : > { %9479 = vst [vmem:[#allocation93_spill] sm:$0xff] %v7343_v6  ;;  %2990 = vmatprep.subr.mxu0 %v7339_v59  ;;  %v7349_v48 = vpop.eup %4954  ;;  %4980 = vpow2.f32 %v2554_v51  ;;  %v9486_v59 = vld [vmem:[#allocation199_spill] sm:$0xff] }
 0x3c3   : > { %9481 = vst [vmem:[#allocation89_spill] sm:$0xff] %v7349_v48  ;;  %3060 = vmatpush2.xpose.msra.mxu1 %v7322_v13  ;;  %v7353_v41 = vpop.eup %4956  ;;  %4982 = vpow2.f32 %v2804_v33  ;;  %v2342_v51 = vsub.f32 %v9486_v59, %v7346_v35  ;;  %v2349_v13 = vsub.f32 %v9488_v39, %v2075_v47  ;;  %v2794_v33 = vmul.f32 1.442695, %v2352_v1  ;;  %v9492_v59 = vld [vmem:[#allocation201_spill] sm:$0xff] }
 0x3c4   : > { %9483 = vst [vmem:[#allocation94_spill] sm:$0xff] %v7353_v41  ;;  %3061 = vmatprep.subr.mxu1 %v7349_v48  ;;  %v7357_v20 = vpop.eup %4958  ;;  %4984 = vpow2.f32 %v2798_v24  ;;  %v2346_v48 = vsub.f32 %v9490_v10, %v2075_v47  ;;  %v2343_v24 = vsub.f32 %v9492_v59, %v7346_v35  ;;  %v7383_v59 = vpop.xlane.xlu1 %2059 }
 0x3c5   : > { %9485 = vst [vmem:[#allocation91_spill] sm:$0xff] %v7357_v20  ;;  %2991 = vmatpush2.xpose.msra.mxu0 %v7353_v41  ;;  %v7362_v11 = vpop.eup %4960  ;;  %4986 = vpow2.f32 %v2802_v18  ;;  %v2784_v41 = vmul.f32 1.442695, %v2347_v25  ;;  %v2774_v39 = vmul.f32 1.442695, %v2342_v51  ;;  %v2065_v18 = vpop.xlane.xlu0 %2064 }
 0x3c6   : > { %9487 = vst [vmem:[#allocation90_spill] sm:$0xff] %v7362_v11  ;;  %2992 = vmatprep.subr.mxu0 %v7343_v6  ;;  %v7366_v42 = vpop.eup %4962  ;;  %4988 = vpow2.f32 %v2792_v49  ;;  %v9494_v6 = vld [vmem:[#allocation204_spill] sm:$0xff]  ;;  %v9496_v49 = vld [vmem:[#allocation202_spill] sm:$0xff]  ;;  %v2788_v36 = vmul.f32 1.442695, %v2349_v13 }
 0x3c7   : > { %9489 = vst [vmem:[#allocation92_spill] sm:$0xff] %v7366_v42  ;;  %3062 = vmatpush2.xpose.msra.mxu1 %v7362_v11  ;;  %v7370_v9 = vpop.eup %4964  ;;  %4990 = vpow2.f32 %v2790_v31  ;;  %v2348_v1 = vsub.f32 %v9494_v6, %v2075_v47  ;;  %v2345_v11 = vsub.f32 %v9496_v49, %v7346_v35  ;;  %v9498_v31 = vld [vmem:[#allocation200_spill] sm:$0xff]  ;;  %v2782_v47 = vmul.f32 1.442695, %v2346_v48 }
 0x3c8   : > { %9491 = vst [vmem:[#allocation88_spill] sm:$0xff] %v7370_v9  ;;  %3063 = vmatprep.subr.mxu1 %v7366_v42  ;;  %v7375_v16 = vpop.eup %4966  ;;  %4992 = vpow2.f32 %v2796_v38  ;;  %v2344_v6 = vsub.f32 %v9498_v31, %v7346_v35  ;;  %v2776_v38 = vmul.f32 1.442695, %v2343_v24  ;;  %v9504_v31 = vld [vmem:[#allocation198_spill] sm:$0xff] }
 0x3c9   : > { %9493 = vst [vmem:[#allocation211_spill] sm:$0xff] %v7375_v16  ;;  %2993 = vmatpush2.xpose.msra.mxu0 %v7335_v53  ;;  %v7379_v10 = vpop.eup %4968  ;;  %4994 = vpow2.f32 %v2794_v33  ;;  %v9500_v53 = vld [vmem:[#allocation197_spill] sm:$0xff]  ;;  %v9502_v33 = vld [vmem:[#allocation191_spill] sm:$0xff]  ;;  %v2780_v48 = vmul.f32 1.442695, %v2345_v11  ;;  %v2341_v24 = vsub.f32 %v9504_v31, %v2065_v18 }
 0x3ca   : > { %9495 = vst [vmem:[#allocation213_spill] sm:$0xff] %v7379_v10  ;;  %2994 = vmatprep.subr.mxu0 %v7375_v16  ;;  %v7386_v25 = vpop.eup %4970  ;;  %4996 = vpow2.f32 %v2784_v41  ;;  %v2339_v49 = vsub.f32 %v9500_v53, %v2065_v18  ;;  %v2786_v16 = vmul.f32 1.442695, %v2348_v1  ;;  %v2334_v42 = vsub.f32 %v9502_v33, %v7383_v59  ;;  %v9508_v33 = vld [vmem:[#allocation193_spill] sm:$0xff] }
 0x3cb   : > { %9497 = vst [vmem:[#allocation214_spill] sm:$0xff] %v7386_v25  ;;  %3064 = vmatpush2.xpose.msra.mxu1 %v7357_v20  ;;  %v7391_v51 = vpop.eup %4972  ;;  %4998 = vpow2.f32 %v2774_v39  ;;  %v2778_v41 = vmul.f32 1.442695, %v2344_v6 }
 0x3cc   : > { %9499 = vst [vmem:[#allocation212_spill] sm:$0xff] %v7391_v51  ;;  %3065 = vmatprep.subr.mxu1 %v7386_v25  ;;  %v7395_v13 = vpop.eup %4974  ;;  %5000 = vpow2.f32 %v2788_v36  ;;  %v9506_v25 = vld [vmem:[#allocation195_spill] sm:$0xff]  ;;  %v2768_v11 = vmul.f32 1.442695, %v2339_v49  ;;  %v2758_v31 = vmul.f32 1.442695, %v2334_v42  ;;  %v7423_v49 = vpop.xlane.xlu1 %2049 }
 0x3cd   : > { %9501 = vst [vmem:[#allocation209_spill] sm:$0xff] %v7395_v13  ;;  %2995 = vmatpush2.xpose.msra.mxu0 %v7391_v51  ;;  %v7400_v35 = vpop.eup %4976  ;;  %5002 = vpow2.f32 %v2782_v47  ;;  %v2338_v39 = vsub.f32 %v9506_v25, %v2065_v18  ;;  %v2335_v51 = vsub.f32 %v9508_v33, %v7383_v59  ;;  %v7416_v47 = vpop.xlane.xlu0 %2054  ;;  %v2772_v33 = vmul.f32 1.442695, %v2341_v24  ;;  %v9513_v42 = vld [vmem:[#allocation192_spill] sm:$0xff] }
 0x3ce   : > { %9503 = vst [vmem:[#allocation207_spill] sm:$0xff] %v7400_v35  ;;  %2996 = vmatprep.subr.mxu0 %v7379_v10  ;;  %v7404_v53 = vpop.eup %4978  ;;  %5004 = vpow2.f32 %v2776_v38  ;;  %v9510_v10 = vld [vmem:[#allocation196_spill] sm:$0xff]  ;;  %v9512_v38 = vld [vmem:[#allocation194_spill] sm:$0xff]  ;;  %v9516_v24 = vmov 1.0  }
 0x3cf   : > { %9505 = vst [vmem:[#allocation210_spill] sm:$0xff] %v7404_v53  ;;  %3066 = vmatpush2.xpose.msra.mxu1 %v7400_v35  ;;  %v7408_v1 = vpop.eup %4980  ;;  %5006 = vpow2.f32 %v2786_v16  ;;  %v2340_v6 = vsub.f32 %v9510_v10, %v2065_v18  ;;  %v2337_v35 = vsub.f32 %v9512_v38, %v7383_v59  ;;  %v2336_v16 = vsub.f32 %v9513_v42, %v7383_v59  ;;  %v9518_v59 = vld [vmem:[#allocation183_spill] sm:$0xff]  ;;  %v9520_v42 = vld [vmem:[#allocation190_spill] sm:$0xff] }
 0x3d0   : > { %9507 = vst [vmem:[#allocation208_spill] sm:$0xff] %v7408_v1  ;;  %3067 = vmatprep.subr.mxu1 %v7395_v13  ;;  %v7413_v36 = vpop.eup %4982  ;;  %5008 = vpow2.f32 %v2780_v48  ;;  %v2766_v18 = vmul.f32 1.442695, %v2338_v39  ;;  %v9515_v48 = vld [vmem:[#allocation189_spill] sm:$0xff]  ;;  %v2326_v39 = vsub.f32 %v9518_v59, %v7423_v49  ;;  %v9522_v59 = vld [vmem:[#allocation187_spill] sm:$0xff] }
 0x3d1   : > { %9509 = vst [vmem:[#allocation205_spill] sm:$0xff] %v7413_v36  ;;  %2997 = vmatpush2.xpose.msra.mxu0 %v7370_v9  ;;  %v7419_v25 = vpop.eup %4984  ;;  %5010 = vpow2.f32 %v2778_v41  ;;  %v2760_v9 = vmul.f32 1.442695, %v2335_v51  ;;  %v2331_v13 = vsub.f32 %v9515_v48, %v7416_v47  ;;  %v2770_v41 = vmul.f32 1.442695, %v2340_v6 }
 0x3d2   : > { %9511 = vst [vmem:[#allocation199_spill] sm:$0xff] %v7419_v25  ;;  %3076 = vmatprep.subr.mxu0 %v7404_v53  ;;  %v7429_v10 = vpop.eup %4986  ;;  %5012 = vpow2.f32 %v2768_v11  ;;  %v2764_v11 = vmul.f32 1.442695, %v2337_v35  ;;  %v2333_v48 = vsub.f32 %v9520_v42, %v7416_v47  ;;  %v2762_v6 = vmul.f32 1.442695, %v2336_v16 }
 0x3d3   : > { %3068 = vmatpush2.xpose.msra.mxu1 %v7408_v1  ;;  %9514 = vst [vmem:[#allocation206_spill] sm:$0xff] %v7429_v10  ;;  %v7435_v38 = vpop.eup %4988  ;;  %5014 = vpow2.f32 %v2758_v31  ;;  %v2742_v16 = vmul.f32 1.442695, %v2326_v39  ;;  %v2045_v1 = vpop.xlane.xlu0 %2044 }
 0x3d4   : > { %3147 = vmatprep.subr.mxu1 %v7413_v36  ;;  %2999 = vmatmul.mubr.f32.vlgmr.msra.gmra.mxu0 %v9516_v24  ;;  %9517 = vst [vmem:[#allocation203_spill] sm:$0xff] %v7435_v38  ;;  %v7441_v51 = vpop.eup %4990  ;;  %5016 = vpow2.f32 %v2772_v33  ;;  %v9524_v33 = vld [vmem:[#allocation185_spill] sm:$0xff]  ;;  %v2752_v36 = vmul.f32 1.442695, %v2331_v13  ;;  %v7467_v13 = vpop.xlane.xlu1 %2039 }
 0x3d5   : > { %3077 = vmatpush1.xpose.msra.mxu0 %v7419_v25  ;;  %3140 = vmatprep.mubr.f32.mxu0 %v9516_v24  ;;  %9519 = vst [vmem:[#allocation201_spill] sm:$0xff] %v7441_v51  ;;  %v7447_v31 = vpop.eup %4992  ;;  %5018 = vpow2.f32 %v2766_v18  ;;  %v2330_v25 = vsub.f32 %v9522_v59, %v7416_v47  ;;  %v2327_v42 = vsub.f32 %v9524_v33, %v7423_v49  ;;  %v9526_v18 = vld [vmem:[#allocation188_spill] sm:$0xff]  ;;  %v2756_v33 = vmul.f32 1.442695, %v2333_v48 }
 0x3d6   : > { %3070 = vmatmul.mubr.f32.vlgmr.msra.gmra.mxu1 %v9516_v24  ;;  %3078 = vmatprep.subr.mxu0 %v7435_v38  ;;  %9521 = vst [vmem:[#allocation204_spill] sm:$0xff] %v7447_v31  ;;  %v7453_v35 = vpop.eup %4994  ;;  %5020 = vpow2.f32 %v2760_v9  ;;  %v2332_v59 = vsub.f32 %v9526_v18, %v7416_v47  ;;  %v9528_v9 = vld [vmem:[#allocation186_spill] sm:$0xff] }
 0x3d7   : > { %3148 = vmatpush1.xpose.msra.mxu1 %v7429_v10  ;;  %3211 = vmatprep.mubr.f32.mxu1 %v9516_v24  ;;  %9523 = vst [vmem:[#allocation202_spill] sm:$0xff] %v7453_v35  ;;  %v7458_v38 = vpop.eup %4996  ;;  %5022 = vpow2.f32 %v2770_v41  ;;  %v2329_v53 = vsub.f32 %v9528_v9, %v7423_v49  ;;  %v9530_v41 = vld [vmem:[#allocation184_spill] sm:$0xff]  ;;  %v2750_v39 = vmul.f32 1.442695, %v2330_v25 }
 0x3d8   : > { %3149 = vmatprep.subr.mxu1 %v7447_v31  ;;  %9525 = vst [vmem:[#allocation200_spill] sm:$0xff] %v7458_v38  ;;  %v7463_v10 = vpop.eup %4998  ;;  %5024 = vpow2.f32 %v2764_v11  ;;  %v2328_v47 = vsub.f32 %v9530_v41, %v7423_v49  ;;  %v2744_v11 = vmul.f32 1.442695, %v2327_v42  ;;  %v9536_v41 = vld [vmem:[#allocation182_spill] sm:$0xff] }
 0x3d9   : > { %3079 = vmatpush1.xpose.msra.mxu0 %v7441_v51  ;;  %9527 = vst [vmem:[#allocation197_spill] sm:$0xff] %v7463_v10  ;;  %v7470_v31 = vpop.eup %5000  ;;  %5026 = vpow2.f32 %v2762_v6  ;;  %v9532_v51 = vld [vmem:[#allocation181_spill] sm:$0xff]  ;;  %v9534_v6 = vld [vmem:[#allocation175_spill] sm:$0xff]  ;;  %v2748_v49 = vmul.f32 1.442695, %v2329_v53  ;;  %v2325_v42 = vsub.f32 %v9536_v41, %v2045_v1 }
 0x3da   : > { %3080 = vmatprep.subr.mxu0 %v7458_v38  ;;  %9529 = vst [vmem:[#allocation191_spill] sm:$0xff] %v7470_v31  ;;  %v7475_v18 = vpop.eup %5002  ;;  %5028 = vpow2.f32 %v2752_v36  ;;  %v2323_v9 = vsub.f32 %v9532_v51, %v2045_v1  ;;  %v2754_v38 = vmul.f32 1.442695, %v2332_v59  ;;  %v2318_v20 = vsub.f32 %v9534_v6, %v7467_v13  ;;  %v9540_v6 = vld [vmem:[#allocation177_spill] sm:$0xff] }
 0x3db   : > { %3150 = vmatpush1.xpose.msra.mxu1 %v7453_v35  ;;  %9531 = vst [vmem:[#allocation198_spill] sm:$0xff] %v7475_v18  ;;  %v7479_v48 = vpop.eup %5004  ;;  %5030 = vpow2.f32 %v2742_v16  ;;  %v2746_v51 = vmul.f32 1.442695, %v2328_v47  ;;  %v2740_v35 = vmul.f32 1.442695, %v2325_v42 }
 0x3dc   : > { %3151 = vmatprep.subr.mxu1 %v7470_v31  ;;  %9533 = vst [vmem:[#allocation195_spill] sm:$0xff] %v7479_v48  ;;  %v7484_v25 = vpop.eup %5006  ;;  %5032 = vpow2.f32 %v2756_v33  ;;  %v9538_v31 = vld [vmem:[#allocation179_spill] sm:$0xff]  ;;  %v2736_v53 = vmul.f32 1.442695, %v2323_v9  ;;  %v2726_v41 = vmul.f32 1.442695, %v2318_v20 }
 0x3dd   : > { %3081 = vmatpush1.xpose.msra.mxu0 %v7475_v18  ;;  %9535 = vst [vmem:[#allocation193_spill] sm:$0xff] %v7484_v25  ;;  %v7488_v36 = vpop.eup %5008  ;;  %5034 = vpow2.f32 %v2750_v39  ;;  %v2322_v16 = vsub.f32 %v9538_v31, %v2045_v1  ;;  %v2319_v18 = vsub.f32 %v9540_v6, %v7467_v13  ;;  %v2035_v39 = vpop.xlane.xlu0 %2034  ;;  %v9546_v20 = vld [vmem:[#allocation176_spill] sm:$0xff] }
 0x3de   : > { %3082 = vmatprep.subr.mxu0 %v7479_v48  ;;  %9537 = vst [vmem:[#allocation196_spill] sm:$0xff] %v7488_v36  ;;  %v7492_v59 = vpop.eup %5010  ;;  %5036 = vpow2.f32 %v2744_v11  ;;  %v9542_v48 = vld [vmem:[#allocation180_spill] sm:$0xff]  ;;  %v9544_v11 = vld [vmem:[#allocation178_spill] sm:$0xff]  ;;  %v7505_v6 = vpop.xlane.xlu1 %2029 }
 0x3df   : > { %3152 = vmatpush1.xpose.msra.mxu1 %v7484_v25  ;;  %9539 = vst [vmem:[#allocation194_spill] sm:$0xff] %v7492_v59  ;;  %v7497_v33 = vpop.eup %5012  ;;  %5038 = vpow2.f32 %v2754_v38  ;;  %v2324_v47 = vsub.f32 %v9542_v48, %v2045_v1  ;;  %v2321_v25 = vsub.f32 %v9544_v11, %v7467_v13  ;;  %v2320_v1 = vsub.f32 %v9546_v20, %v7467_v13  ;;  %v9552_v20 = vld [vmem:[#allocation174_spill] sm:$0xff] }
 0x3e0   : > { %3153 = vmatprep.subr.mxu1 %v7488_v36  ;;  %9541 = vst [vmem:[#allocation192_spill] sm:$0xff] %v7497_v33  ;;  %v7501_v31 = vpop.eup %5014  ;;  %5040 = vpow2.f32 %v2748_v49  ;;  %v2734_v38 = vmul.f32 1.442695, %v2322_v16  ;;  %v2728_v49 = vmul.f32 1.442695, %v2319_v18  ;;  %v2317_v18 = vsub.f32 %v9552_v20, %v2035_v39 }
 0x3e1   : > { %3083 = vmatpush1.xpose.msra.mxu0 %v7463_v10  ;;  %9543 = vst [vmem:[#allocation189_spill] sm:$0xff] %v7501_v31  ;;  %v7508_v9 = vpop.eup %5016  ;;  %5042 = vpow2.f32 %v2746_v51  ;;  %v9548_v10 = vld [vmem:[#allocation173_spill] sm:$0xff]  ;;  %v9550_v51 = vld [vmem:[#allocation167_spill] sm:$0xff]  ;;  %v2732_v16 = vmul.f32 1.442695, %v2321_v25 }
 0x3e2   : > { %3084 = vmatprep.subr.mxu0 %v7497_v33  ;;  %9545 = vst [vmem:[#allocation183_spill] sm:$0xff] %v7508_v9  ;;  %v7513_v48 = vpop.eup %5018  ;;  %5044 = vpow2.f32 %v2736_v53  ;;  %v2315_v11 = vsub.f32 %v9548_v10, %v2035_v39  ;;  %v2738_v33 = vmul.f32 1.442695, %v2324_v47  ;;  %v2310_v36 = vsub.f32 %v9550_v51, %v7505_v6  ;;  %v9556_v51 = vld [vmem:[#allocation169_spill] sm:$0xff] }
 0x3e3   : > { %3154 = vmatpush1.xpose.msra.mxu1 %v7492_v59  ;;  %9547 = vst [vmem:[#allocation190_spill] sm:$0xff] %v7513_v48  ;;  %v7517_v42 = vpop.eup %5020  ;;  %5046 = vpow2.f32 %v2726_v41  ;;  %v2730_v53 = vmul.f32 1.442695, %v2320_v1  ;;  %v2724_v59 = vmul.f32 1.442695, %v2317_v18 }
 0x3e4   : > { %3155 = vmatprep.subr.mxu1 %v7508_v9  ;;  %9549 = vst [vmem:[#allocation187_spill] sm:$0xff] %v7517_v42  ;;  %v7522_v13 = vpop.eup %5022  ;;  %5048 = vpow2.f32 %v2740_v35  ;;  %v9554_v9 = vld [vmem:[#allocation171_spill] sm:$0xff]  ;;  %v2720_v25 = vmul.f32 1.442695, %v2315_v11  ;;  %v2710_v20 = vmul.f32 1.442695, %v2310_v36 }
 0x3e5   : > { %3085 = vmatpush1.xpose.msra.mxu0 %v7513_v48  ;;  %9551 = vst [vmem:[#allocation185_spill] sm:$0xff] %v7522_v13  ;;  %v7526_v10 = vpop.eup %5024  ;;  %5050 = vpow2.f32 %v2734_v38  ;;  %v2314_v41 = vsub.f32 %v9554_v9, %v2035_v39  ;;  %v2311_v48 = vsub.f32 %v9556_v51, %v7505_v6  ;;  %v2025_v38 = vpop.xlane.xlu0 %2024  ;;  %v9562_v36 = vld [vmem:[#allocation168_spill] sm:$0xff] }
 0x3e6   : > { %3086 = vmatprep.subr.mxu0 %v7517_v42  ;;  %9553 = vst [vmem:[#allocation188_spill] sm:$0xff] %v7526_v10  ;;  %v7530_v47 = vpop.eup %5026  ;;  %5052 = vpow2.f32 %v2728_v49  ;;  %v9558_v42 = vld [vmem:[#allocation172_spill] sm:$0xff]  ;;  %v9560_v49 = vld [vmem:[#allocation170_spill] sm:$0xff]  ;;  %v7543_v51 = vpop.xlane.xlu1 %2019 }
 0x3e7   : > { %3156 = vmatpush1.xpose.msra.mxu1 %v7522_v13  ;;  %9555 = vst [vmem:[#allocation186_spill] sm:$0xff] %v7530_v47  ;;  %v7535_v35 = vpop.eup %5028  ;;  %5054 = vpow2.f32 %v2738_v33  ;;  %v2316_v1 = vsub.f32 %v9558_v42, %v2035_v39  ;;  %v2313_v13 = vsub.f32 %v9560_v49, %v7505_v6  ;;  %v2312_v33 = vsub.f32 %v9562_v36, %v7505_v6  ;;  %v9568_v36 = vld [vmem:[#allocation166_spill] sm:$0xff] }
 0x3e8   : > { %3157 = vmatprep.subr.mxu1 %v7526_v10  ;;  %9557 = vst [vmem:[#allocation184_spill] sm:$0xff] %v7535_v35  ;;  %v7539_v9 = vpop.eup %5030  ;;  %5056 = vpow2.f32 %v2732_v16  ;;  %v2718_v39 = vmul.f32 1.442695, %v2314_v41  ;;  %v2712_v16 = vmul.f32 1.442695, %v2311_v48  ;;  %v2309_v48 = vsub.f32 %v9568_v36, %v2025_v38 }
 0x3e9   : > { %3087 = vmatpush1.xpose.msra.mxu0 %v7501_v31  ;;  %9559 = vst [vmem:[#allocation181_spill] sm:$0xff] %v7539_v9  ;;  %v7546_v11 = vpop.eup %5032  ;;  %5058 = vpow2.f32 %v2730_v53  ;;  %v9564_v31 = vld [vmem:[#allocation165_spill] sm:$0xff]  ;;  %v9566_v53 = vld [vmem:[#allocation159_spill] sm:$0xff]  ;;  %v2716_v41 = vmul.f32 1.442695, %v2313_v13 }
 0x3ea   : > { %3088 = vmatprep.subr.mxu0 %v7535_v35  ;;  %9561 = vst [vmem:[#allocation175_spill] sm:$0xff] %v7546_v11  ;;  %v7551_v42 = vpop.eup %5034  ;;  %5060 = vpow2.f32 %v2720_v25  ;;  %v2307_v49 = vsub.f32 %v9564_v31, %v2025_v38  ;;  %v2722_v35 = vmul.f32 1.442695, %v2316_v1  ;;  %v2302_v10 = vsub.f32 %v9566_v53, %v7543_v51  ;;  %v9572_v53 = vld [vmem:[#allocation161_spill] sm:$0xff] }
 0x3eb   : > { %3158 = vmatpush1.xpose.msra.mxu1 %v7530_v47  ;;  %9563 = vst [vmem:[#allocation182_spill] sm:$0xff] %v7551_v42  ;;  %v7555_v18 = vpop.eup %5036  ;;  %5062 = vpow2.f32 %v2710_v20  ;;  %v2714_v25 = vmul.f32 1.442695, %v2312_v33  ;;  %v2708_v47 = vmul.f32 1.442695, %v2309_v48 }
 0x3ec   : > { %3159 = vmatprep.subr.mxu1 %v7546_v11  ;;  %9565 = vst [vmem:[#allocation179_spill] sm:$0xff] %v7555_v18  ;;  %v7560_v6 = vpop.eup %5038  ;;  %5064 = vpow2.f32 %v2724_v59  ;;  %v9570_v11 = vld [vmem:[#allocation163_spill] sm:$0xff]  ;;  %v2704_v13 = vmul.f32 1.442695, %v2307_v49  ;;  %v2694_v36 = vmul.f32 1.442695, %v2302_v10 }
 0x3ed   : > { %3089 = vmatpush1.xpose.msra.mxu0 %v7551_v42  ;;  %9567 = vst [vmem:[#allocation177_spill] sm:$0xff] %v7560_v6  ;;  %v7564_v31 = vpop.eup %5040  ;;  %5066 = vpow2.f32 %v2718_v39  ;;  %v2306_v20 = vsub.f32 %v9570_v11, %v2025_v38  ;;  %v2303_v42 = vsub.f32 %v9572_v53, %v7543_v51  ;;  %v2015_v39 = vpop.xlane.xlu0 %2014  ;;  %v9577_v10 = vld [vmem:[#allocation160_spill] sm:$0xff] }
 0x3ee   : > { %3090 = vmatprep.subr.mxu0 %v7555_v18  ;;  %9569 = vst [vmem:[#allocation180_spill] sm:$0xff] %v7564_v31  ;;  %v7568_v1 = vpop.eup %5042  ;;  %5068 = vpow2.f32 %v2712_v16  ;;  %v9574_v18 = vld [vmem:[#allocation164_spill] sm:$0xff]  ;;  %v9575_v16 = vld [vmem:[#allocation162_spill] sm:$0xff]  ;;  %v2010_v53 = vpop.xlane.xlu1 %2009 }
 0x3ef   : > { %3160 = vmatpush1.xpose.msra.mxu1 %v7560_v6  ;;  %9571 = vst [vmem:[#allocation178_spill] sm:$0xff] %v7568_v1  ;;  %v7573_v59 = vpop.eup %5044  ;;  %5070 = vpow2.f32 %v2722_v35  ;;  %v2308_v33 = vsub.f32 %v9574_v18, %v2025_v38  ;;  %v2305_v6 = vsub.f32 %v9575_v16, %v7543_v51  ;;  %v2304_v35 = vsub.f32 %v9577_v10, %v7543_v51  ;;  %v9583_v10 = vld [vmem:[#allocation158_spill] sm:$0xff] }
 0x3f0   : > { %3161 = vmatprep.subr.mxu1 %v7564_v31  ;;  %9573 = vst [vmem:[#allocation176_spill] sm:$0xff] %v7573_v59  ;;  %v7577_v11 = vpop.eup %5046  ;;  %5072 = vpow2.f32 %v2716_v41  ;;  %v2702_v38 = vmul.f32 1.442695, %v2306_v20  ;;  %v9579_v41 = vld [vmem:[#allocation157_spill] sm:$0xff] }
 0x3f1   : > { %3091 = vmatpush1.xpose.msra.mxu0 %v7539_v9  ;;  %v7582_v49 = vpop.eup %5048  ;;  %5074 = vpow2.f32 %v2714_v25  ;;  %v2696_v9 = vmul.f32 1.442695, %v2303_v42  ;;  %v2299_v31 = vsub.f32 %v9579_v41, %v2015_v39  ;;  %v2706_v16 = vmul.f32 1.442695, %v2308_v33  ;;  %v9584_v41 = vld [vmem:[#allocation155_spill] sm:$0xff] }
 0x3f2   : > { %3092 = vmatprep.subr.mxu0 %v7573_v59  ;;  %9576 = vst [vmem:[#allocation173_spill] sm:$0xff] %v7582_v49  ;;  %v7587_v18 = vpop.eup %5050  ;;  %5076 = vpow2.f32 %v2704_v13  ;;  %v9581_v59 = vld [vmem:[#allocation151_spill] sm:$0xff]  ;;  %v2700_v20 = vmul.f32 1.442695, %v2305_v6  ;;  %v2698_v13 = vmul.f32 1.442695, %v2304_v35 }
 0x3f3   : > { %3162 = vmatpush1.xpose.msra.mxu1 %v7568_v1  ;;  %9578 = vst [vmem:[#allocation167_spill] sm:$0xff] %v7587_v18  ;;  %v7591_v48 = vpop.eup %5052  ;;  %5078 = vpow2.f32 %v2694_v36  ;;  %v2294_v25 = vsub.f32 %v9581_v59, %v2010_v53  ;;  %v2301_v1 = vsub.f32 %v9583_v10, %v2015_v39  ;;  %v9585_v59 = vld [vmem:[#allocation153_spill] sm:$0xff]  ;;  %v9586_v10 = vld [vmem:[#allocation156_spill] sm:$0xff] }
 0x3f4   : > { %3163 = vmatprep.subr.mxu1 %v7582_v49  ;;  %9580 = vst [vmem:[#allocation174_spill] sm:$0xff] %v7591_v48  ;;  %v7595_v51 = vpop.eup %5054  ;;  %5080 = vpow2.f32 %v2708_v47  ;;  %v2298_v49 = vsub.f32 %v9584_v41, %v2015_v39  ;;  %v2295_v33 = vsub.f32 %v9585_v59, %v2010_v53 }
 0x3f5   : > { %3093 = vmatpush1.xpose.msra.mxu0 %v7587_v18  ;;  %9582 = vst [vmem:[#allocation171_spill] sm:$0xff] %v7595_v51  ;;  %v7599_v42 = vpop.eup %5056  ;;  %5082 = vpow2.f32 %v2702_v38  ;;  %v2688_v18 = vmul.f32 1.442695, %v2299_v31  ;;  %v2678_v6 = vmul.f32 1.442695, %v2294_v25  ;;  %v9587_v38 = vld [vmem:[#allocation152_spill] sm:$0xff] }
 0x3f6   : > { %3094 = vmatprep.subr.mxu0 %v7591_v48  ;;  %v7603_v36 = vpop.eup %5058  ;;  %5084 = vpow2.f32 %v2696_v9  ;;  %v2300_v48 = vsub.f32 %v9586_v10, %v2015_v39  ;;  %v2296_v41 = vsub.f32 %v9587_v38, %v2010_v53  ;;  %v2692_v55 = vmul.f32 1.442695, %v2301_v1  ;;  %v9591_v38 = vld [vmem:[#allocation28_spill] sm:$0xff] }
 0x3f7   : > { %3164 = vmatpush1.xpose.msra.mxu1 %v7595_v51  ;;  %v7607_v47 = vpop.eup %5060  ;;  %5086 = vpow2.f32 %v2706_v16  ;;  %v9588_v51 = vld [vmem:[#allocation154_spill] sm:$0xff]  ;;  %v2686_v59 = vmul.f32 1.442695, %v2298_v49  ;;  %v2680_v39 = vmul.f32 1.442695, %v2295_v33 }
 0x3f8   : > { %3165 = vmatprep.subr.mxu1 %v7599_v42  ;;  %v7611_v35 = vpop.eup %5062  ;;  %5088 = vpow2.f32 %v2700_v20  ;;  %v2297_v9 = vsub.f32 %v9588_v51, %v2010_v53  ;;  %v2690_v20 = vmul.f32 1.442695, %v2300_v48  ;;  %v2160_v1 = vpop.xlane.xlu1 %2159  ;;  %v2682_v51 = vmul.f32 1.442695, %v2296_v41 }
 0x3f9   : > { %3095 = vmatpush1.xpose.msra.mxu0 %v7577_v11  ;;  %v7616_v31 = vpop.eup %5064  ;;  %5090 = vpow2.f32 %v2698_v13  ;;  %v2415_v41 = vsub.f32 %v9591_v38, %v2160_v1 }
 0x3fa   : > { %3096 = vmatprep.subr.mxu0 %v7607_v47  ;;  %v7619_v16 = vpop.eup %5066  ;;  %5092 = vpow2.f32 %v2688_v18  ;;  %v2684_v13 = vmul.f32 1.442695, %v2297_v9 }
 0x3fb   : > { %3166 = vmatpush1.xpose.msra.mxu1 %v7603_v36  ;;  %v7622_v25 = vpop.eup %5068  ;;  %5094 = vpow2.f32 %v2678_v6 }
 0x3fc   : > { %3167 = vmatprep.subr.mxu1 %v7616_v31  ;;  %v7625_v53 = vpop.eup %5070  ;;  %5096 = vpow2.f32 %v2692_v55 }
 0x3fd   : > { %3097 = vmatpush1.xpose.msra.mxu0 %v7619_v16  ;;  %9589 = vst [vmem:[#allocation169_spill] sm:$0xff] %v7625_v53  ;;  %v2165_v49 = vpop.xlane.xlu0 %2164  ;;  %v7628_v10 = vpop.eup %5072  ;;  %5098 = vpow2.f32 %v2686_v59 }
 0x3fe   : > { %3098 = vmatprep.subr.mxu0 %v7622_v25  ;;  %9590 = vst [vmem:[#allocation172_spill] sm:$0xff] %v7628_v10  ;;  %v2418_v18 = vsub.f32 %v6850_v45, %v2165_v49  ;;  %v2419_v48 = vsub.f32 %v6865_v3, %v2165_v49  ;;  %v2420_v33 = vsub.f32 %v6876_v57, %v2165_v49  ;;  %v7634_v6 = vpop.eup %5074  ;;  %5100 = vpow2.f32 %v2680_v39 }
 0x3ff   : > { %3168 = vmatpush1.xpose.msra.mxu1 %v7625_v53  ;;  %v2421_v55 = vsub.f32 %v6900_v15, %v2165_v49  ;;  %v7639_v9 = vpop.eup %5076  ;;  %5102 = vpow2.f32 %v2690_v20  ;;  %v2417_v3 = vsub.f32 %v6841_v12, %v2160_v1  ;;  %v9592_v15 = vld [vmem:[#allocation50_spill] sm:$0xff] }
 0x400   : > { %3169 = vmatprep.subr.mxu1 %v7628_v10  ;;  %v2926_v59 = vmul.f32 1.442695, %v2418_v18  ;;  %v2928_v53 = vmul.f32 1.442695, %v2419_v48  ;;  %v7642_v45 = vpop.eup %5078  ;;  %5104 = vpow2.f32 %v2684_v13  ;;  %v2414_v49 = vsub.f32 %v9592_v15, %v2160_v1 }
 0x401   : > { %3099 = vmatpush1.xpose.msra.mxu0 %v7611_v35  ;;  %v2932_v57 = vmul.f32 1.442695, %v2421_v55  ;;  %v2155_v39 = vpop.xlane.xlu0 %2154  ;;  %v7646_v38 = vpop.eup %5080  ;;  %5106 = vpow2.f32 %v2682_v51  ;;  %v2930_v10 = vmul.f32 1.442695, %v2420_v33  ;;  %v2920_v18 = vmul.f32 1.442695, %v2415_v41 }
 0x402   : > { %3100 = vmatprep.subr.mxu0 %v7639_v9  ;;  %v7650_v20 = vpop.eup %5082  ;;  %5108 = vpow2.f32 %v2928_v53  ;;  %v2411_v12 = vsub.f32 %v6794_v58, %v2155_v39  ;;  %v2416_v48 = vsub.f32 %v6823_v60, %v2160_v1  ;;  %v2150_v55 = vpop.xlane.xlu1 %2149  ;;  %v2924_v33 = vmul.f32 1.442695, %v2417_v3  ;;  %v9596_v1 = vld [vmem:[#allocation58_spill] sm:$0xff] }
 0x403   : > { %3170 = vmatpush1.xpose.msra.mxu1 %v7634_v6  ;;  %9593 = vst [vmem:[#allocation170_spill] sm:$0xff] %v7650_v20  ;;  %v7654_v13 = vpop.eup %5084  ;;  %5110 = vpow2.f32 %v2926_v59  ;;  %v2413_v15 = vsub.f32 %v6801_v17, %v2155_v39  ;;  %v2918_v41 = vmul.f32 1.442695, %v2414_v49  ;;  %v2410_v58 = vsub.f32 %v6778_v37, %v2155_v39 }
 0x404   : > { %3171 = vmatprep.subr.mxu1 %v7646_v38  ;;  %9594 = vst [vmem:[#allocation168_spill] sm:$0xff] %v7654_v13  ;;  %v7658_v51 = vpop.eup %5086  ;;  %5112 = vpow2.f32 %v2932_v57  ;;  %v2407_v59 = vsub.f32 %v9596_v1, %v2150_v55  ;;  %v2922_v17 = vmul.f32 1.442695, %v2416_v48  ;;  %v2412_v57 = vsub.f32 %v6787_v22, %v2155_v39 }
 0x405   : > { %3101 = vmatpush1.xpose.msra.mxu0 %v7650_v20  ;;  %v7662_v53 = vpop.eup %5088  ;;  %5114 = vpow2.f32 %v2930_v10  ;;  %v2912_v20 = vmul.f32 1.442695, %v2411_v12  ;;  %v2409_v37 = vsub.f32 %v6769_v40, %v2150_v55  ;;  %v2916_v49 = vmul.f32 1.442695, %v2413_v15  ;;  %v9597_v12 = vld [vmem:[#allocation60_spill] sm:$0xff] }
 0x406   : > { %3102 = vmatprep.subr.mxu0 %v7654_v13  ;;  %9595 = vst [vmem:[#allocation165_spill] sm:$0xff] %v7662_v53  ;;  %v7666_v60 = vpop.eup %5090  ;;  %5116 = vpow2.f32 %v2920_v18  ;;  %v2145_v13 = vpop.xlane.xlu0 %2144  ;;  %v2406_v1 = vsub.f32 %v9597_v12, %v2150_v55  ;;  %v2904_v39 = vmul.f32 1.442695, %v2407_v59  ;;  %v2914_v15 = vmul.f32 1.442695, %v2412_v57 }
 0x407   : > { %3172 = vmatpush1.xpose.msra.mxu1 %v7658_v51  ;;  %v7670_v3 = vpop.eup %5092  ;;  %5118 = vpow2.f32 %v2924_v33  ;;  %v2403_v48 = vsub.f32 %v6730_v28, %v2145_v13  ;;  %v2408_v33 = vsub.f32 %v6753_v19, %v2150_v55  ;;  %v2908_v12 = vmul.f32 1.442695, %v2409_v37  ;;  %v9600_v55 = vld [vmem:[#allocation65_spill] sm:$0xff] }
 0x408   : > { %3173 = vmatprep.subr.mxu1 %v7662_v53  ;;  %v7674_v10 = vpop.eup %5094  ;;  %5120 = vpow2.f32 %v2918_v41  ;;  %v2910_v53 = vmul.f32 1.442695, %v2410_v58  ;;  %v2140_v41 = vpop.xlane.xlu1 %2139  ;;  %v2405_v59 = vsub.f32 %v6739_v63, %v2145_v13 }
 0x409   : > { %3103 = vmatpush1.xpose.msra.mxu0 %v7642_v45  ;;  %v7678_v18 = vpop.eup %5096  ;;  %5122 = vpow2.f32 %v2912_v20  ;;  %v2902_v20 = vmul.f32 1.442695, %v2406_v1  ;;  %v2399_v57 = vsub.f32 %v9600_v55, %v2140_v41  ;;  %v2906_v63 = vmul.f32 1.442695, %v2408_v33  ;;  %v9601_v55 = vld [vmem:[#allocation67_spill] sm:$0xff] }
 0x40a   : > { %3104 = vmatprep.subr.mxu0 %v7670_v3  ;;  %v7682_v22 = vpop.eup %5098  ;;  %5124 = vpow2.f32 %v2922_v17  ;;  %v2402_v17 = vsub.f32 %v6716_v4, %v2145_v13  ;;  %v2135_v1 = vpop.xlane.xlu0 %2134 }
 0x40b   : > { %3174 = vmatpush1.xpose.msra.mxu1 %v7666_v60  ;;  %9598 = vst [vmem:[#allocation159_spill] sm:$0xff] %v7682_v22  ;;  %v7686_v40 = vpop.eup %5100  ;;  %5126 = vpow2.f32 %v2916_v49  ;;  %v2404_v49 = vsub.f32 %v6723_v2, %v2145_v13  ;;  %v2888_v13 = vmul.f32 1.442695, %v2399_v57  ;;  %v2394_v57 = vsub.f32 %v6657_v50, %v2135_v1 }
 0x40c   : > { %3175 = vmatprep.subr.mxu1 %v7678_v18  ;;  %v7690_v58 = vpop.eup %5102  ;;  %5128 = vpow2.f32 %v2910_v53  ;;  %v2401_v53 = vsub.f32 %v6710_v43, %v2140_v41  ;;  %v2894_v33 = vmul.f32 1.442695, %v2402_v17 }
 0x40d   : > { %3105 = vmatpush1.xpose.msra.mxu0 %v7682_v22  ;;  %v7694_v28 = vpop.eup %5104  ;;  %5130 = vpow2.f32 %v2904_v39  ;;  %v2896_v22 = vmul.f32 1.442695, %v2403_v48  ;;  %v2900_v39 = vmul.f32 1.442695, %v2405_v59  ;;  %v2898_v59 = vmul.f32 1.442695, %v2404_v49 }
 0x40e   : > { %3106 = vmatprep.subr.mxu0 %v7686_v40  ;;  %9599 = vst [vmem:[#allocation166_spill] sm:$0xff] %v7694_v28  ;;  %v7698_v19 = vpop.eup %5106  ;;  %5132 = vpow2.f32 %v2914_v15  ;;  %v2395_v15 = vsub.f32 %v6670_v44, %v2135_v1  ;;  %v2892_v17 = vmul.f32 1.442695, %v2401_v53  ;;  %v2396_v53 = vsub.f32 %v6663_v61, %v2135_v1 }
 0x40f   : > { %3176 = vmatpush1.xpose.msra.mxu1 %v7690_v58  ;;  %v7702_v37 = vpop.eup %5108  ;;  %5134 = vpow2.f32 %v2908_v12  ;;  %v2400_v12 = vsub.f32 %v6694_v54, %v2140_v41 }
 0x410   : > { %3177 = vmatprep.subr.mxu1 %v7694_v28  ;;  %v7706_v4 = vpop.eup %5110  ;;  %5136 = vpow2.f32 %v2902_v20  ;;  %v2398_v28 = vsub.f32 %v9601_v55, %v2140_v41  ;;  %v2130_v20 = vpop.xlane.xlu1 %2129  ;;  %v2397_v55 = vsub.f32 %v6679_v52, %v2135_v1  ;;  %v2880_v41 = vmul.f32 1.442695, %v2395_v15 }
 0x411   : > { %3107 = vmatpush1.xpose.msra.mxu0 %v7674_v10  ;;  %v7710_v48 = vpop.eup %5112  ;;  %5138 = vpow2.f32 %v2896_v22  ;;  %v2391_v54 = vsub.f32 %v6643_v29, %v2130_v20  ;;  %v2890_v52 = vmul.f32 1.442695, %v2400_v12  ;;  %v2878_v12 = vmul.f32 1.442695, %v2394_v57 }
 0x412   : > { %3108 = vmatprep.subr.mxu0 %v7702_v37  ;;  %v7714_v2 = vpop.eup %5114  ;;  %5140 = vpow2.f32 %v2906_v63  ;;  %v2886_v44 = vmul.f32 1.442695, %v2398_v28  ;;  %v2125_v28 = vpop.xlane.xlu0 %2124 }
 0x413   : > { %3178 = vmatpush1.xpose.msra.mxu1 %v7698_v19  ;;  %v7718_v43 = vpop.eup %5116  ;;  %5142 = vpow2.f32 %v2900_v39  ;;  %v2393_v39 = vsub.f32 %v6651_v34, %v2130_v20  ;;  %v2872_v1 = vmul.f32 1.442695, %v2391_v54  ;;  %v2389_v54 = vsub.f32 %v9340_v27, %v2125_v28 }
 0x414   : > { %3179 = vmatprep.subr.mxu1 %v7710_v48  ;;  %v7724_v22 = vpop.eup %5118  ;;  %5144 = vpow2.f32 %v2894_v33  ;;  %v2884_v33 = vmul.f32 1.442695, %v2397_v55  ;;  %v2882_v55 = vmul.f32 1.442695, %v2396_v53 }
 0x415   : > { %3109 = vmatpush2.xpose.msra.mxu0 %v7706_v4  ;;  %v7728_v63 = vpop.eup %5120  ;;  %5146 = vpow2.f32 %v2888_v13  ;;  %v9602_v13 = vld [vmem:[#allocation75_spill] sm:$0xff] }
 0x416   : > { %3110 = vmatprep.subr.mxu0 %v7718_v43  ;;  %v7732_v49 = vpop.eup %5122  ;;  %5148 = vpow2.f32 %v2898_v59  ;;  %v2390_v15 = vsub.f32 %v9602_v13, %v2130_v20  ;;  %v2387_v59 = vsub.f32 %v6616_v56, %v2125_v28  ;;  %v2876_v13 = vmul.f32 1.442695, %v2393_v39 }
 0x417   : > { %3180 = vmatpush2.xpose.msra.mxu1 %v7714_v2  ;;  %v7736_v50 = vpop.eup %5124  ;;  %5150 = vpow2.f32 %v2892_v17  ;;  %v2392_v17 = vsub.f32 %v6637_v7, %v2130_v20 }
 0x418   : > { %3181 = vmatprep.subr.mxu1 %v7724_v22  ;;  %v7740_v29 = vpop.eup %5126  ;;  %5152 = vpow2.f32 %v2886_v44  ;;  %v2120_v44 = vpop.xlane.xlu1 %2119  ;;  %v2864_v53 = vmul.f32 1.442695, %v2387_v59  ;;  %v9605_v59 = vld [vmem:[#allocation36_spill] sm:$0xff] }
 0x419   : > { %3111 = vmatpush2.xpose.msra.mxu0 %v7728_v63  ;;  %v7744_v61 = vpop.eup %5128  ;;  %5154 = vpow2.f32 %v2880_v41  ;;  %v2870_v41 = vmul.f32 1.442695, %v2390_v15  ;;  %v2383_v20 = vsub.f32 %v6597_v0, %v2120_v44  ;;  %v2874_v27 = vmul.f32 1.442695, %v2392_v17  ;;  %v2115_v15 = vpop.xlane.xlu0 %2114 }
 0x41a   : > { %3112 = vmatprep.subr.mxu0 %v7732_v49  ;;  %v7748_v34 = vpop.eup %5130  ;;  %5156 = vpow2.f32 %v2890_v52  ;;  %v2386_v52 = vsub.f32 %v6608_v26, %v2125_v28 }
 0x41b   : > { %3182 = vmatpush2.xpose.msra.mxu1 %v7736_v50  ;;  %v7752_v57 = vpop.eup %5132  ;;  %5158 = vpow2.f32 %v2884_v33  ;;  %v2388_v33 = vsub.f32 %v6612_v5, %v2125_v28  ;;  %v2856_v28 = vmul.f32 1.442695, %v2383_v20  ;;  %v2381_v20 = vsub.f32 %v9355_v32, %v2115_v15 }
 0x41c   : > { %3183 = vmatprep.subr.mxu1 %v7740_v29  ;;  %v7756_v56 = vpop.eup %5134  ;;  %5160 = vpow2.f32 %v2878_v12  ;;  %v2385_v12 = vsub.f32 %v6604_v21, %v2120_v44  ;;  %v2862_v17 = vmul.f32 1.442695, %v2386_v52 }
 0x41d   : > { %3113 = vmatpush2.xpose.msra.mxu0 %v7744_v61  ;;  %9603 = vst [vmem:[#allocation163_spill] sm:$0xff] %v7756_v56  ;;  %v7760_v7 = vpop.eup %5136  ;;  %5162 = vpow2.f32 %v2872_v1  ;;  %v2868_v1 = vmul.f32 1.442695, %v2389_v54  ;;  %v2866_v54 = vmul.f32 1.442695, %v2388_v33 }
 0x41e   : > { %3114 = vmatprep.subr.mxu0 %v7748_v34  ;;  %v7764_v39 = vpop.eup %5138  ;;  %5164 = vpow2.f32 %v2882_v55  ;;  %v2379_v55 = vsub.f32 %v6575_v8, %v2115_v15 }
 0x41f   : > { %3184 = vmatpush2.xpose.msra.mxu1 %v7752_v57  ;;  %v7768_v26 = vpop.eup %5140  ;;  %5166 = vpow2.f32 %v2876_v13  ;;  %v2384_v13 = vsub.f32 %v6592_v62, %v2120_v44 }
 0x420   : > { %3185 = vmatprep.subr.mxu1 %v7756_v56  ;;  %v7772_v0 = vpop.eup %5142  ;;  %5168 = vpow2.f32 %v2870_v41  ;;  %v2382_v56 = vsub.f32 %v9605_v59, %v2120_v44  ;;  %v2110_v41 = vpop.xlane.xlu1 %2109  ;;  %v2860_v59 = vmul.f32 1.442695, %v2385_v12  ;;  %v9612_v44 = vld [vmem:[#allocation83_spill] sm:$0xff] }
 0x421   : > { %3115 = vmatpush2.xpose.msra.mxu0 %v7760_v7  ;;  %9604 = vst [vmem:[#allocation161_spill] sm:$0xff] %v7772_v0  ;;  %v7776_v5 = vpop.eup %5144  ;;  %5170 = vpow2.f32 %v2864_v53  ;;  %v2375_v33 = vsub.f32 %v9612_v44, %v2110_v41  ;;  %v2858_v32 = vmul.f32 1.442695, %v2384_v13  ;;  %v9617_v44 = vld [vmem:[#allocation226_spill] sm:$0xff] }
 0x422   : > { %3116 = vmatprep.subr.mxu0 %v7764_v39  ;;  %9606 = vst [vmem:[#allocation164_spill] sm:$0xff] %v7776_v5  ;;  %v7780_v21 = vpop.eup %5146  ;;  %5172 = vpow2.f32 %v2874_v27  ;;  %v2854_v53 = vmul.f32 1.442695, %v2382_v56  ;;  %v2105_v56 = vpop.xlane.xlu0 %2104 }
 0x423   : > { %3186 = vmatpush2.xpose.msra.mxu1 %v7768_v26  ;;  %9607 = vst [vmem:[#allocation162_spill] sm:$0xff] %v7780_v21  ;;  %v7784_v52 = vpop.eup %5148  ;;  %5174 = vpow2.f32 %v2868_v1  ;;  %v9614_v1 = vld [vmem:[#allocation84_spill] sm:$0xff] }
 0x424   : > { %3187 = vmatprep.subr.mxu1 %v7772_v0  ;;  %9608 = vst [vmem:[#allocation160_spill] sm:$0xff] %v7784_v52  ;;  %v7788_v8 = vpop.eup %5150  ;;  %5176 = vpow2.f32 %v2862_v17  ;;  %v9610_v0 = vld [vmem:[#allocation37_spill] sm:$0xff] }
 0x425   : > { %3117 = vmatpush2.xpose.msra.mxu0 %v7776_v5  ;;  %9609 = vst [vmem:[#allocation157_spill] sm:$0xff] %v7788_v8  ;;  %v2378_v27 = vsub.f32 %v9610_v0, %v2115_v15  ;;  %v7792_v62 = vpop.eup %5152  ;;  %5178 = vpow2.f32 %v2856_v28  ;;  %v2848_v5 = vmul.f32 1.442695, %v2379_v55  ;;  %v9615_v17 = vld [vmem:[#allocation85_spill] sm:$0xff]  ;;  %v2852_v28 = vmul.f32 1.442695, %v2381_v20 }
 0x426   : > { %3118 = vmatprep.subr.mxu0 %v7780_v21  ;;  %9611 = vst [vmem:[#allocation151_spill] sm:$0xff] %v7792_v62  ;;  %v7796_v12 = vpop.eup %5154  ;;  %5180 = vpow2.f32 %v2866_v54  ;;  %v2380_v21 = vsub.f32 %v9614_v1, %v2115_v15  ;;  %v2840_v54 = vmul.f32 1.442695, %v2375_v33  ;;  %v9619_v1 = vld [vmem:[#allocation82_spill] sm:$0xff]  ;;  %v9621_v20 = vld [vmem:[#allocation227_spill] sm:$0xff]  ;;  %v2373_v33 = vsub.f32 %v9368_v46, %v2105_v56 }
 0x427   : > { %3188 = vmatpush2.xpose.msra.mxu1 %v7784_v52  ;;  %9613 = vst [vmem:[#allocation158_spill] sm:$0xff] %v7796_v12  ;;  %v7800_v0 = vpop.eup %5156  ;;  %5182 = vpow2.f32 %v2860_v59  ;;  %v2377_v52 = vsub.f32 %v9615_v17, %v2110_v41  ;;  %v2846_v13 = vmul.f32 1.442695, %v2378_v27  ;;  %v2376_v17 = vsub.f32 %v9621_v20, %v2110_v41 }
 0x428   : > { %3189 = vmatprep.subr.mxu1 %v7788_v8  ;;  %v7804_v55 = vpop.eup %5158  ;;  %5184 = vpow2.f32 %v2854_v53  ;;  %v2374_v8 = vsub.f32 %v9617_v44, %v2110_v41  ;;  %v2100_v53 = vpop.xlane.xlu1 %2099  ;;  %v9626_v41 = vld [vmem:[#allocation225_spill] sm:$0xff] }
 0x429   : > { %3119 = vmatpush2.xpose.msra.mxu0 %v7792_v62  ;;  %9616 = vst [vmem:[#allocation155_spill] sm:$0xff] %v7804_v55  ;;  %v7808_v15 = vpop.eup %5160  ;;  %5186 = vpow2.f32 %v2848_v5  ;;  %v2371_v62 = vsub.f32 %v9619_v1, %v2105_v56  ;;  %v2844_v44 = vmul.f32 1.442695, %v2377_v52  ;;  %v2367_v20 = vsub.f32 %v9626_v41, %v2100_v53  ;;  %v9631_v41 = vld [vmem:[#allocation223_spill] sm:$0xff] }
 0x42a   : > { %3120 = vmatprep.subr.mxu0 %v7796_v12  ;;  %9618 = vst [vmem:[#allocation153_spill] sm:$0xff] %v7808_v15  ;;  %v7812_v59 = vpop.eup %5162  ;;  %5188 = vpow2.f32 %v2858_v32  ;;  %v2850_v12 = vmul.f32 1.442695, %v2380_v21  ;;  %v2838_v1 = vmul.f32 1.442695, %v2374_v8  ;;  %v2095_v8 = vpop.xlane.xlu0 %2094 }
 0x42b   : > { %3190 = vmatpush2.xpose.msra.mxu1 %v7800_v0  ;;  %9620 = vst [vmem:[#allocation156_spill] sm:$0xff] %v7812_v59  ;;  %v7816_v27 = vpop.eup %5164  ;;  %5190 = vpow2.f32 %v2852_v28  ;;  %v2842_v46 = vmul.f32 1.442695, %v2376_v17  ;;  %v9628_v28 = vld [vmem:[#allocation80_spill] sm:$0xff] }
 0x42c   : > { %3191 = vmatprep.subr.mxu1 %v7804_v55  ;;  %9622 = vst [vmem:[#allocation152_spill] sm:$0xff] %v7816_v27  ;;  %v7820_v5 = vpop.eup %5166  ;;  %5192 = vpow2.f32 %v2846_v13  ;;  %v9624_v55 = vld [vmem:[#allocation81_spill] sm:$0xff]  ;;  %v9629_v13 = vld [vmem:[#allocation79_spill] sm:$0xff] }
 0x42d   : > { %3121 = vmatpush2.xpose.msra.mxu0 %v7808_v15  ;;  %9623 = vst [vmem:[#allocation154_spill] sm:$0xff] %v7820_v5  ;;  %v2370_v32 = vsub.f32 %v9624_v55, %v2105_v56  ;;  %v7824_v21 = vpop.eup %5168  ;;  %5194 = vpow2.f32 %v2840_v54  ;;  %v2832_v15 = vmul.f32 1.442695, %v2371_v62  ;;  %v2836_v54 = vmul.f32 1.442695, %v2373_v33  ;;  %v9634_v33 = vld [vmem:[#allocation224_spill] sm:$0xff] }
 0x42e   : > { %3122 = vmatprep.subr.mxu0 %v7812_v59  ;;  %9625 = vst [vmem:[#allocation28_spill] sm:$0xff] %v7824_v21  ;;  %v7828_v52 = vpop.eup %5170  ;;  %5196 = vpow2.f32 %v2850_v12  ;;  %v2372_v59 = vsub.f32 %v9628_v28, %v2105_v56  ;;  %v2824_v56 = vmul.f32 1.442695, %v2367_v20  ;;  %v9633_v28 = vld [vmem:[#allocation221_spill] sm:$0xff]  ;;  %v2365_v20 = vsub.f32 %v9378_v14, %v2095_v8 }
 0x42f   : > { %3192 = vmatpush2.xpose.msra.mxu1 %v7816_v27  ;;  %9627 = vst [vmem:[#allocation50_spill] sm:$0xff] %v7828_v52  ;;  %v7832_v55 = vpop.eup %5172  ;;  %5198 = vpow2.f32 %v2844_v44  ;;  %v2369_v27 = vsub.f32 %v9629_v13, %v2100_v53  ;;  %v2830_v17 = vmul.f32 1.442695, %v2370_v32  ;;  %v2368_v13 = vsub.f32 %v9634_v33, %v2100_v53 }
 0x430   : > { %3193 = vmatprep.subr.mxu1 %v7820_v5  ;;  %v7836_v62 = vpop.eup %5174  ;;  %5200 = vpow2.f32 %v2838_v1  ;;  %v2366_v5 = vsub.f32 %v9631_v41, %v2100_v53  ;;  %v2090_v1 = vpop.xlane.xlu1 %2089  ;;  %v9638_v53 = vld [vmem:[#allocation217_spill] sm:$0xff] }
 0x431   : > { %3123 = vmatpush2.xpose.msra.mxu0 %v7824_v21  ;;  %9630 = vst [vmem:[#allocation58_spill] sm:$0xff] %v7836_v62  ;;  %v7840_v12 = vpop.eup %5176  ;;  %5202 = vpow2.f32 %v2832_v15  ;;  %v2363_v21 = vsub.f32 %v9633_v28, %v2095_v8  ;;  %v2828_v41 = vmul.f32 1.442695, %v2369_v27  ;;  %v2359_v33 = vsub.f32 %v9638_v53, %v2090_v1 }
 0x432   : > { %3124 = vmatprep.subr.mxu0 %v7828_v52  ;;  %9632 = vst [vmem:[#allocation60_spill] sm:$0xff] %v7840_v12  ;;  %v7844_v44 = vpop.eup %5178  ;;  %5204 = vpow2.f32 %v2842_v46  ;;  %v2834_v52 = vmul.f32 1.442695, %v2372_v59  ;;  %v2822_v28 = vmul.f32 1.442695, %v2366_v5 }
 0x433   : > { %3194 = vmatpush2.xpose.msra.mxu1 %v7832_v55  ;;  %v7848_v32 = vpop.eup %5180  ;;  %5206 = vpow2.f32 %v2836_v54  ;;  %v2826_v14 = vmul.f32 1.442695, %v2368_v13  ;;  %v2364_v54 = vsub.f32 %v9365_v30, %v2095_v8  ;;  %v2808_v30 = vmul.f32 1.442695, %v2359_v33  ;;  %v9641_v13 = vld [vmem:[#allocation216_spill] sm:$0xff] }
 0x434   : > { %3195 = vmatprep.subr.mxu1 %v7836_v62  ;;  %9635 = vst [vmem:[#allocation65_spill] sm:$0xff] %v7848_v32  ;;  %v7852_v15 = vpop.eup %5182  ;;  %5208 = vpow2.f32 %v2830_v17  ;;  %v9637_v62 = vld [vmem:[#allocation219_spill] sm:$0xff] }
 0x435   : > { %3125 = vmatpush2.xpose.msra.mxu0 %v7840_v12  ;;  %9636 = vst [vmem:[#allocation67_spill] sm:$0xff] %v7852_v15  ;;  %v2362_v46 = vsub.f32 %v9637_v62, %v2095_v8  ;;  %v7856_v59 = vpop.eup %5184  ;;  %5210 = vpow2.f32 %v2824_v56  ;;  %v2816_v12 = vmul.f32 1.442695, %v2363_v21  ;;  %v9639_v62 = vld [vmem:[#allocation218_spill] sm:$0xff]  ;;  %v9640_v21 = vld [vmem:[#allocation215_spill] sm:$0xff] }
 0x436   : > { %3126 = vmatprep.subr.mxu0 %v7844_v44  ;;  %v7860_v27 = vpop.eup %5186  ;;  %5212 = vpow2.f32 %v2834_v52  ;;  %v2361_v17 = vsub.f32 %v9639_v62, %v2090_v1  ;;  %v2358_v53 = vsub.f32 %v9640_v21, %v2090_v1 }
 0x437   : > { %3196 = vmatpush2.xpose.msra.mxu1 %v7848_v32  ;;  %v7864_v5 = vpop.eup %5188  ;;  %5214 = vpow2.f32 %v2828_v41  ;;  %v2820_v32 = vmul.f32 1.442695, %v2365_v20  ;;  %v2360_v41 = vsub.f32 %v9641_v13, %v2090_v1  ;;  %v2818_v20 = vmul.f32 1.442695, %v2364_v54 }
 0x438   : > { %3197 = vmatprep.subr.mxu1 %v7852_v15  ;;  %v7868_v56 = vpop.eup %5190  ;;  %5216 = vpow2.f32 %v2822_v28  ;;  %v2814_v15 = vmul.f32 1.442695, %v2362_v46  ;;  %v2812_v62 = vmul.f32 1.442695, %v2361_v17  ;;  %v2806_v33 = vmul.f32 1.442695, %v2358_v53 }
 0x439   : > { %3127 = vmatpush2.xpose.msra.mxu0 %v7856_v59  ;;  %v7872_v52 = vpop.eup %5192  ;;  %5218 = vpow2.f32 %v2816_v12 }
 0x43a   : > { %3128 = vmatprep.subr.mxu0 %v7860_v27  ;;  %v7875_v8 = vpop.eup %5194  ;;  %5220 = vpow2.f32 %v2826_v14  ;;  %v2810_v14 = vmul.f32 1.442695, %v2360_v41 }
 0x43b   : > { %3198 = vmatpush2.xpose.msra.mxu1 %v7864_v5  ;;  %v7879_v28 = vpop.eup %5196  ;;  %5222 = vpow2.f32 %v2820_v32 }
 0x43c   : > { %3199 = vmatprep.subr.mxu1 %v7868_v56  ;;  %v7882_v46 = vpop.eup %5198  ;;  %5224 = vpow2.f32 %v2814_v15 }
 0x43d   : > { %3129 = vmatpush2.xpose.msra.mxu0 %v7872_v52  ;;  %v7885_v12 = vpop.eup %5200  ;;  %5226 = vpow2.f32 %v2808_v30 }
 0x43e   : > { %3130 = vmatprep.subr.mxu0 %v7875_v8  ;;  %v7888_v1 = vpop.eup %5202  ;;  %5228 = vpow2.f32 %v2818_v20 }
 0x43f   : > { %3200 = vmatpush2.xpose.msra.mxu1 %v7879_v28  ;;  %v7891_v32 = vpop.eup %5204  ;;  %5230 = vpow2.f32 %v2812_v62 }
 0x440   : > { %3201 = vmatprep.subr.mxu1 %v7882_v46  ;;  %9642 = vst [vmem:[#allocation75_spill] sm:$0xff] %v7891_v32  ;;  %v7894_v54 = vpop.eup %5206  ;;  %5232 = vpow2.f32 %v2806_v33 }
 0x441   : > { %3131 = vmatpush2.xpose.msra.mxu0 %v7885_v12  ;;  %9643 = vst [vmem:[#allocation36_spill] sm:$0xff] %v7894_v54  ;;  %v7897_v15 = vpop.eup %5208  ;;  %5234 = vpow2.f32 %v2810_v14 }
 0x442   : > { %3132 = vmatprep.subr.mxu0 %v7888_v1  ;;  %9644 = vst [vmem:[#allocation37_spill] sm:$0xff] %v7897_v15  ;;  %v7900_v17 = vpop.eup %5210 }
 0x443   : > { %3202 = vmatpush2.xpose.msra.mxu1 %v7891_v32  ;;  %9645 = vst [vmem:[#allocation83_spill] sm:$0xff] %v7900_v17  ;;  %v7903_v21 = vpop.eup %5212  ;;  %v9675_v32 = vld [vmem:[#allocation51_spill] sm:$0xff] }
 0x444   : > { %3203 = vmatprep.subr.mxu1 %v7894_v54  ;;  %9646 = vst [vmem:[#allocation84_spill] sm:$0xff] %v7903_v21  ;;  %v7906_v53 = vpop.eup %5214  ;;  %v9671_v54 = vld [vmem:[#allocation57_spill] sm:$0xff] }
 0x445   : > { %3133 = vmatpush2.xpose.msra.mxu0 %v7897_v15  ;;  %9647 = vst [vmem:[#allocation85_spill] sm:$0xff] %v7906_v53  ;;  %v7909_v30 = vpop.eup %5216  ;;  %v9669_v15 = vld [vmem:[#allocation59_spill] sm:$0xff] }
 0x446   : > { %3134 = vmatprep.subr.mxu0 %v7900_v17  ;;  %9648 = vst [vmem:[#allocation226_spill] sm:$0xff] %v7909_v30  ;;  %v7912_v13 = vpop.eup %5218 }
 0x447   : > { %3204 = vmatpush2.xpose.msra.mxu1 %v7903_v21  ;;  %9649 = vst [vmem:[#allocation82_spill] sm:$0xff] %v7912_v13  ;;  %v7915_v41 = vpop.eup %5220 }
 0x448   : > { %3205 = vmatprep.subr.mxu1 %v7906_v53  ;;  %9650 = vst [vmem:[#allocation227_spill] sm:$0xff] %v7915_v41  ;;  %v7918_v20 = vpop.eup %5222  ;;  %v7935_v53 = vpop.permute.xlu0 %448 }
 0x449   : > { %3135 = vmatpush2.xpose.msra.mxu0 %v7909_v30  ;;  %9651 = vst [vmem:[#allocation81_spill] sm:$0xff] %v7918_v20  ;;  %v7921_v62 = vpop.eup %5224 }
 0x44a   : > { %3136 = vmatprep.subr.mxu0 %v7912_v13  ;;  %9652 = vst [vmem:[#allocation225_spill] sm:$0xff] %v7921_v62  ;;  %v7924_v33 = vpop.eup %5226 }
 0x44b   : > { %3206 = vmatpush2.xpose.msra.mxu1 %v7915_v41  ;;  %9653 = vst [vmem:[#allocation80_spill] sm:$0xff] %v7924_v33  ;;  %v7927_v14 = vpop.eup %5228  ;;  %v9658_v41 = vld [vmem:[#allocation71_spill] sm:$0xff] }
 0x44c   : > { %3207 = vmatprep.subr.mxu1 %v7918_v20  ;;  %9654 = vst [vmem:[#allocation79_spill] sm:$0xff] %v7927_v14  ;;  %v7930_v30 = vpop.eup %5230 }
 0x44d   : > { %3137 = vmatpush2.xpose.msra.mxu0 %v7921_v62  ;;  %9655 = vst [vmem:[#allocation223_spill] sm:$0xff] %v7930_v30  ;;  %v7933_v13 = vpop.eup %5232  ;;  %v9659_v62 = vld [vmem:[#allocation22_spill] sm:$0xff] }
 0x44e   : > { %3138 = vmatprep.subr.mxu0 %v7924_v33  ;;  %9656 = vst [vmem:[#allocation221_spill] sm:$0xff] %v7933_v13  ;;  %v7939_v20 = vpop.eup %5234  ;;  %v7944_v21 = vadd.f32 %v9659_v62, %v7935_v53  ;;  %v9660_v33 = vld [vmem:[#allocation72_spill] sm:$0xff]  ;;  %v9664_v62 = vld [vmem:[#allocation74_spill] sm:$0xff] }
 0x44f   : > { %3208 = vmatpush2.xpose.msra.mxu1 %v7927_v14  ;;  %9657 = vst [vmem:[#allocation224_spill] sm:$0xff] %v7939_v20  ;;  %v9661_v14 = vld [vmem:[#allocation21_spill] sm:$0xff] }
 0x450   : > { %3209 = vmatprep.subr.mxu1 %v7930_v30  ;;  %v7951_v17 = vadd.f32 %v9661_v14, %v7935_v53  ;;  %v9662_v30 = vld [vmem:[#allocation73_spill] sm:$0xff] }
 0x451   : > { %3139 = vmatpush2.xpose.msra.mxu0 %v7933_v13  ;;  %v9667_v13 = vld [vmem:[#allocation64_spill] sm:$0xff]  ;;  %v9668_v14 = vld [vmem:[#allocation77_spill] sm:$0xff] }
 0x452   : > { %3218 = vmatprep.subr.mxu0 %v9658_v41  ;;  %v9663_v41 = vld [vmem:[#allocation29_spill] sm:$0xff] }
 0x453   : > { %3210 = vmatpush2.xpose.msra.mxu1 %v7939_v20  ;;  %v9665_v20 = vld [vmem:[#allocation78_spill] sm:$0xff] }
 0x454   : > { %3289 = vmatprep.subr.mxu1 %v9660_v33  ;;  %3141 = vmatmul.mubr.f32.vlgmr.msra.gmra.mxu0 %v9516_v24  ;;  %v9666_v33 = vld [vmem:[#allocation38_spill] sm:$0xff] }
 0x455   : > { %3219 = vmatpush1.xpose.msra.mxu0 %v9662_v30  ;;  %3282 = vmatprep.mubr.f32.mxu0 %v7944_v21  ;;  %v9670_v30 = vld [vmem:[#allocation61_spill] sm:$0xff] }
 0x456   : > { %3212 = vmatmul.mubr.f32.vlgmr.msra.gmra.mxu1 %v9516_v24  ;;  %3220 = vmatprep.subr.mxu0 %v9663_v41  ;;  %v9672_v24 = vld [vmem:[#allocation62_spill] sm:$0xff]  ;;  %v9673_v41 = vld [vmem:[#allocation56_spill] sm:$0xff] }
 0x457   : > { %3290 = vmatpush1.xpose.msra.mxu1 %v9664_v62  ;;  %3353 = vmatprep.mubr.f32.mxu1 %v7951_v17  ;;  %v9674_v62 = vld [vmem:[#allocation55_spill] sm:$0xff] }
 0x458   : > { %3291 = vmatprep.subr.mxu1 %v9665_v20  ;;  %v9676_v20 = vld [vmem:[#allocation53_spill] sm:$0xff] }
 0x459   : > { %3221 = vmatpush1.xpose.msra.mxu0 %v9666_v33  ;;  %v9677_v33 = vld [vmem:[#allocation52_spill] sm:$0xff] }
 0x45a   : > { %3222 = vmatprep.subr.mxu0 %v9667_v13  ;;  %v9678_v13 = vld [vmem:[#allocation54_spill] sm:$0xff] }
 0x45b   : > { %3292 = vmatpush1.xpose.msra.mxu1 %v9668_v14  ;;  %v9679_v14 = vld [vmem:[#allocation48_spill] sm:$0xff] }
 0x45c   : > { %3293 = vmatprep.subr.mxu1 %v9669_v15  ;;  %v9680_v15 = vld [vmem:[#allocation49_spill] sm:$0xff] }
 0x45d   : > { %3223 = vmatpush1.xpose.msra.mxu0 %v9670_v30  ;;  %v9681_v30 = vld [vmem:[#allocation46_spill] sm:$0xff] }
 0x45e   : > { %3224 = vmatprep.subr.mxu0 %v9671_v54  ;;  %v9682_v54 = vld [vmem:[#allocation43_spill] sm:$0xff] }
 0x45f   : > { %3294 = vmatpush1.xpose.msra.mxu1 %v9672_v24  ;;  %v9683_v24 = vld [vmem:[#allocation41_spill] sm:$0xff] }
 0x460   : > { %3295 = vmatprep.subr.mxu1 %v9673_v41  ;;  %v9684_v41 = vld [vmem:[#allocation44_spill] sm:$0xff] }
 0x461   : > { %3225 = vmatpush1.xpose.msra.mxu0 %v9674_v62  ;;  %v9685_v62 = vld [vmem:[#allocation42_spill] sm:$0xff] }
 0x462   : > { %3226 = vmatprep.subr.mxu0 %v9675_v32  ;;  %v9686_v32 = vld [vmem:[#allocation39_spill] sm:$0xff] }
 0x463   : > { %3296 = vmatpush1.xpose.msra.mxu1 %v9676_v20  ;;  %v9687_v20 = vld [vmem:[#allocation228_spill] sm:$0xff] }
 0x464   : > { %3297 = vmatprep.subr.mxu1 %v9677_v33  ;;  %v9688_v33 = vld [vmem:[#allocation40_spill] sm:$0xff] }
 0x465   : > { %3227 = vmatpush1.xpose.msra.mxu0 %v9678_v13  ;;  %v9689_v13 = vld [vmem:[#allocation33_spill] sm:$0xff] }
 0x466   : > { %3228 = vmatprep.subr.mxu0 %v9679_v14  ;;  %v9690_v14 = vld [vmem:[#allocation229_spill] sm:$0xff] }
 0x467   : > { %3298 = vmatpush1.xpose.msra.mxu1 %v9680_v15  ;;  %v9691_v15 = vld [vmem:[#allocation34_spill] sm:$0xff] }
 0x468   : > { %3299 = vmatprep.subr.mxu1 %v9681_v30  ;;  %v9692_v30 = vld [vmem:[#allocation230_spill] sm:$0xff] }
 0x469   : > { %3229 = vmatpush1.xpose.msra.mxu0 %v9682_v54  ;;  %v9693_v54 = vld [vmem:[#allocation30_spill] sm:$0xff] }
 0x46a   : > { %3230 = vmatprep.subr.mxu0 %v9683_v24  ;;  %v9694_v24 = vld [vmem:[#allocation31_spill] sm:$0xff] }
 0x46b   : > { %3300 = vmatpush1.xpose.msra.mxu1 %v9684_v41  ;;  %v9695_v41 = vld [vmem:[#allocation231_spill] sm:$0xff] }
 0x46c   : > { %3301 = vmatprep.subr.mxu1 %v9685_v62  ;;  %v9696_v62 = vld [vmem:[#allocation32_spill] sm:$0xff] }
 0x46d   : > { %3231 = vmatpush1.xpose.msra.mxu0 %v9686_v32  ;;  %v9697_v32 = vld [vmem:[#allocation25_spill] sm:$0xff] }
 0x46e   : > { %3232 = vmatprep.subr.mxu0 %v9687_v20  ;;  %v9698_v20 = vld [vmem:[#allocation23_spill] sm:$0xff] }
 0x46f   : > { %3302 = vmatpush1.xpose.msra.mxu1 %v9688_v33  ;;  %v9699_v33 = vld [vmem:[#allocation232_spill] sm:$0xff] }
 0x470   : > { %3303 = vmatprep.subr.mxu1 %v9689_v13  ;;  %v9700_v13 = vld [vmem:[#allocation26_spill] sm:$0xff] }
 0x471   : > { %3233 = vmatpush1.xpose.msra.mxu0 %v9690_v14  ;;  %v9701_v14 = vld [vmem:[#allocation233_spill] sm:$0xff] }
 0x472   : > { %3234 = vmatprep.subr.mxu0 %v9691_v15  ;;  %v9702_v15 = vld [vmem:[#allocation24_spill] sm:$0xff] }
 0x473   : > { %3304 = vmatpush1.xpose.msra.mxu1 %v9692_v30  ;;  %v9703_v30 = vld [vmem:[#allocation149_spill] sm:$0xff] }
 0x474   : > { %3305 = vmatprep.subr.mxu1 %v9693_v54  ;;  %v9704_v54 = vld [vmem:[#allocation147_spill] sm:$0xff] }
 0x475   : > { %3235 = vmatpush1.xpose.msra.mxu0 %v9694_v24  ;;  %v9705_v24 = vld [vmem:[#allocation150_spill] sm:$0xff] }
 0x476   : > { %3236 = vmatprep.subr.mxu0 %v9695_v41  ;;  %v9706_v41 = vld [vmem:[#allocation143_spill] sm:$0xff] }
 0x477   : > { %3306 = vmatpush1.xpose.msra.mxu1 %v9696_v62  ;;  %v9707_v62 = vld [vmem:[#allocation69_spill] sm:$0xff] }
 0x478   : > { %3307 = vmatprep.subr.mxu1 %v9697_v32  ;;  %v9708_v32 = vld [vmem:[#allocation148_spill] sm:$0xff] }
 0x479   : > { %3237 = vmatpush1.xpose.msra.mxu0 %v9698_v20  ;;  %v9709_v20 = vld [vmem:[#allocation68_spill] sm:$0xff] }
 0x47a   : > { %3238 = vmatprep.subr.mxu0 %v9699_v33  ;;  %v9710_v33 = vld [vmem:[#allocation76_spill] sm:$0xff] }
 0x47b   : > { %3308 = vmatpush1.xpose.msra.mxu1 %v9700_v13  ;;  %v9711_v13 = vld [vmem:[#allocation145_spill] sm:$0xff] }
 0x47c   : > { %3309 = vmatprep.subr.mxu1 %v9701_v14  ;;  %v9712_v14 = vld [vmem:[#allocation70_spill] sm:$0xff] }
 0x47d   : > { %3239 = vmatpush1.xpose.msra.mxu0 %v9702_v15  ;;  %v9713_v15 = vld [vmem:[#allocation146_spill] sm:$0xff] }
 0x47e   : > { %3240 = vmatprep.subr.mxu0 %v9703_v30  ;;  %v9714_v30 = vld [vmem:[#allocation27_spill] sm:$0xff] }
 0x47f   : > { %3310 = vmatpush1.xpose.msra.mxu1 %v9704_v54  ;;  %v9715_v54 = vld [vmem:[#allocation141_spill] sm:$0xff] }
 0x480   : > { %3311 = vmatprep.subr.mxu1 %v9705_v24  ;;  %v9716_v24 = vld [vmem:[#allocation135_spill] sm:$0xff] }
 0x481   : > { %3241 = vmatpush1.xpose.msra.mxu0 %v9706_v41  ;;  %v9717_v41 = vld [vmem:[#allocation63_spill] sm:$0xff] }
 0x482   : > { %3242 = vmatprep.subr.mxu0 %v9707_v62  ;;  %v9718_v62 = vld [vmem:[#allocation137_spill] sm:$0xff] }
 0x483   : > { %3312 = vmatpush1.xpose.msra.mxu1 %v9708_v32  ;;  %v9719_v32 = vld [vmem:[#allocation144_spill] sm:$0xff] }
 0x484   : > { %3313 = vmatprep.subr.mxu1 %v9709_v20  ;;  %v9720_v20 = vld [vmem:[#allocation142_spill] sm:$0xff] }
 0x485   : > { %3243 = vmatpush1.xpose.msra.mxu0 %v9710_v33  ;;  %v9721_v33 = vld [vmem:[#allocation45_spill] sm:$0xff] }
 0x486   : > { %3244 = vmatprep.subr.mxu0 %v9711_v13  ;;  %v9722_v13 = vld [vmem:[#allocation86_spill] sm:$0xff] }
 0x487   : > { %3314 = vmatpush1.xpose.msra.mxu1 %v9712_v14  ;;  %v9723_v14 = vld [vmem:[#allocation139_spill] sm:$0xff] }
 0x488   : > { %3315 = vmatprep.subr.mxu1 %v9713_v15  ;;  %v9724_v15 = vld [vmem:[#allocation136_spill] sm:$0xff] }
 0x489   : > { %3245 = vmatpush1.xpose.msra.mxu0 %v9714_v30  ;;  %v9726_v30 = vld [vmem:[#allocation138_spill] sm:$0xff] }
 0x48a   : > { %3246 = vmatprep.subr.mxu0 %v9367_v23  ;;  %v9725_v23 = vld [vmem:[#allocation47_spill] sm:$0xff] }
 0x48b   : > { %3316 = vmatpush1.xpose.msra.mxu1 %v9715_v54  ;;  %v9727_v54 = vld [vmem:[#allocation220_spill] sm:$0xff] }
 0x48c   : > { %3317 = vmatprep.subr.mxu1 %v9716_v24  ;;  %v9728_v24 = vld [vmem:[#allocation35_spill] sm:$0xff] }
 0x48d   : > { %3247 = vmatpush1.xpose.msra.mxu0 %v9717_v41  ;;  %v9729_v41 = vld [vmem:[#allocation140_spill] sm:$0xff] }
 0x48e   : > { %3248 = vmatprep.subr.mxu0 %v9718_v62  ;;  %v9730_v62 = vld [vmem:[#allocation133_spill] sm:$0xff] }
 0x48f   : > { %3318 = vmatpush1.xpose.msra.mxu1 %v9719_v32  ;;  %v9731_v32 = vld [vmem:[#allocation66_spill] sm:$0xff] }
 0x490   : > { %3319 = vmatprep.subr.mxu1 %v9720_v20  ;;  %v9732_v20 = vld [vmem:[#allocation134_spill] sm:$0xff] }
 0x491   : > { %3249 = vmatpush1.xpose.msra.mxu0 %v9721_v33  ;;  %v9733_v33 = vld [vmem:[#allocation222_spill] sm:$0xff] }
 0x492   : > { %3250 = vmatprep.subr.mxu0 %v9722_v13  ;;  %v9734_v13 = vld [vmem:[#allocation129_spill] sm:$0xff] }
 0x493   : > { %3320 = vmatpush1.xpose.msra.mxu1 %v9723_v14  ;;  %v9735_v14 = vld [vmem:[#allocation128_spill] sm:$0xff] }
 0x494   : > { %3321 = vmatprep.subr.mxu1 %v9724_v15  ;;  %v9736_v15 = vld [vmem:[#allocation132_spill] sm:$0xff] }
 0x495   : > { %3251 = vmatpush2.xpose.msra.mxu0 %v9725_v23  ;;  %v9737_v23 = vld [vmem:[#allocation127_spill] sm:$0xff] }
 0x496   : > { %3252 = vmatprep.subr.mxu0 %v9726_v30  ;;  %v9738_v30 = vld [vmem:[#allocation119_spill] sm:$0xff] }
 0x497   : > { %3322 = vmatpush2.xpose.msra.mxu1 %v9727_v54  ;;  %v9739_v54 = vld [vmem:[#allocation131_spill] sm:$0xff] }
 0x498   : > { %3323 = vmatprep.subr.mxu1 %v9728_v24  ;;  %v9740_v24 = vld [vmem:[#allocation121_spill] sm:$0xff] }
 0x499   : > { %3253 = vmatpush2.xpose.msra.mxu0 %v9729_v41  ;;  %v9741_v41 = vld [vmem:[#allocation126_spill] sm:$0xff] }
 0x49a   : > { %3254 = vmatprep.subr.mxu0 %v9730_v62  ;;  %v9742_v62 = vld [vmem:[#allocation125_spill] sm:$0xff] }
 0x49b   : > { %3324 = vmatpush2.xpose.msra.mxu1 %v9731_v32  ;;  %v9743_v32 = vld [vmem:[#allocation120_spill] sm:$0xff] }
 0x49c   : > { %3325 = vmatprep.subr.mxu1 %v9732_v20  ;;  %v9744_v20 = vld [vmem:[#allocation124_spill] sm:$0xff] }
 0x49d   : > { %3255 = vmatpush2.xpose.msra.mxu0 %v9733_v33  ;;  %v9745_v33 = vld [vmem:[#allocation130_spill] sm:$0xff] }
 0x49e   : > { %3256 = vmatprep.subr.mxu0 %v9734_v13  ;;  %v9746_v13 = vld [vmem:[#allocation111_spill] sm:$0xff] }
 0x49f   : > { %3326 = vmatpush2.xpose.msra.mxu1 %v9735_v14  ;;  %v9747_v14 = vld [vmem:[#allocation123_spill] sm:$0xff] }
 0x4a0   : > { %3327 = vmatprep.subr.mxu1 %v9736_v15  ;;  %v9748_v15 = vld [vmem:[#allocation113_spill] sm:$0xff] }
 0x4a1   : > { %3257 = vmatpush2.xpose.msra.mxu0 %v9737_v23  ;;  %v9749_v23 = vld [vmem:[#allocation118_spill] sm:$0xff] }
 0x4a2   : > { %3258 = vmatprep.subr.mxu0 %v9738_v30  ;;  %v9750_v30 = vld [vmem:[#allocation117_spill] sm:$0xff] }
 0x4a3   : > { %3328 = vmatpush2.xpose.msra.mxu1 %v9739_v54  ;;  %v9751_v54 = vld [vmem:[#allocation112_spill] sm:$0xff] }
 0x4a4   : > { %3329 = vmatprep.subr.mxu1 %v9740_v24  ;;  %v9752_v24 = vld [vmem:[#allocation116_spill] sm:$0xff] }
 0x4a5   : > { %3259 = vmatpush2.xpose.msra.mxu0 %v9741_v41  ;;  %v9753_v41 = vld [vmem:[#allocation122_spill] sm:$0xff] }
 0x4a6   : > { %3260 = vmatprep.subr.mxu0 %v9742_v62  ;;  %v9754_v62 = vld [vmem:[#allocation103_spill] sm:$0xff] }
 0x4a7   : > { %3330 = vmatpush2.xpose.msra.mxu1 %v9743_v32  ;;  %v9755_v32 = vld [vmem:[#allocation115_spill] sm:$0xff] }
 0x4a8   : > { %3331 = vmatprep.subr.mxu1 %v9744_v20  ;;  %v9756_v20 = vld [vmem:[#allocation105_spill] sm:$0xff] }
 0x4a9   : > { %3261 = vmatpush2.xpose.msra.mxu0 %v9745_v33  ;;  %v9757_v33 = vld [vmem:[#allocation110_spill] sm:$0xff] }
 0x4aa   : > { %3262 = vmatprep.subr.mxu0 %v9746_v13  ;;  %v9758_v13 = vld [vmem:[#allocation109_spill] sm:$0xff] }
 0x4ab   : > { %3332 = vmatpush2.xpose.msra.mxu1 %v9747_v14  ;;  %v9759_v14 = vld [vmem:[#allocation104_spill] sm:$0xff] }
 0x4ac   : > { %3333 = vmatprep.subr.mxu1 %v9748_v15  ;;  %v9760_v15 = vld [vmem:[#allocation108_spill] sm:$0xff] }
 0x4ad   : > { %3263 = vmatpush2.xpose.msra.mxu0 %v9749_v23  ;;  %v9761_v23 = vld [vmem:[#allocation114_spill] sm:$0xff] }
 0x4ae   : > { %3264 = vmatprep.subr.mxu0 %v9750_v30  ;;  %v9762_v30 = vld [vmem:[#allocation95_spill] sm:$0xff] }
 0x4af   : > { %3334 = vmatpush2.xpose.msra.mxu1 %v9751_v54  ;;  %v9763_v54 = vld [vmem:[#allocation107_spill] sm:$0xff] }
 0x4b0   : > { %3335 = vmatprep.subr.mxu1 %v9752_v24  ;;  %v9764_v24 = vld [vmem:[#allocation97_spill] sm:$0xff] }
 0x4b1   : > { %3265 = vmatpush2.xpose.msra.mxu0 %v9753_v41  ;;  %v9765_v41 = vld [vmem:[#allocation102_spill] sm:$0xff] }
 0x4b2   : > { %3266 = vmatprep.subr.mxu0 %v9754_v62  ;;  %v9766_v62 = vld [vmem:[#allocation101_spill] sm:$0xff] }
 0x4b3   : > { %3336 = vmatpush2.xpose.msra.mxu1 %v9755_v32  ;;  %v9767_v32 = vld [vmem:[#allocation96_spill] sm:$0xff] }
 0x4b4   : > { %3337 = vmatprep.subr.mxu1 %v9756_v20  ;;  %v9768_v20 = vld [vmem:[#allocation100_spill] sm:$0xff] }
 0x4b5   : > { %3267 = vmatpush2.xpose.msra.mxu0 %v9757_v33  ;;  %v9769_v33 = vld [vmem:[#allocation106_spill] sm:$0xff] }
 0x4b6   : > { %3268 = vmatprep.subr.mxu0 %v9758_v13  ;;  %v9770_v13 = vld [vmem:[#allocation87_spill] sm:$0xff] }
 0x4b7   : > { %3338 = vmatpush2.xpose.msra.mxu1 %v9759_v14  ;;  %v9771_v14 = vld [vmem:[#allocation99_spill] sm:$0xff] }
 0x4b8   : > { %3339 = vmatprep.subr.mxu1 %v9760_v15  ;;  %v9772_v15 = vld [vmem:[#allocation89_spill] sm:$0xff] }
 0x4b9   : > { %3269 = vmatpush2.xpose.msra.mxu0 %v9761_v23  ;;  %v9773_v23 = vld [vmem:[#allocation94_spill] sm:$0xff] }
 0x4ba   : > { %3270 = vmatprep.subr.mxu0 %v9762_v30  ;;  %v9774_v30 = vld [vmem:[#allocation93_spill] sm:$0xff] }
 0x4bb   : > { %3340 = vmatpush2.xpose.msra.mxu1 %v9763_v54  ;;  %v9775_v54 = vld [vmem:[#allocation90_spill] sm:$0xff] }
 0x4bc   : > { %3341 = vmatprep.subr.mxu1 %v9764_v24  ;;  %v9776_v24 = vld [vmem:[#allocation92_spill] sm:$0xff] }
 0x4bd   : > { %3271 = vmatpush2.xpose.msra.mxu0 %v9765_v41  ;;  %v9777_v41 = vld [vmem:[#allocation98_spill] sm:$0xff] }
 0x4be   : > { %3272 = vmatprep.subr.mxu0 %v9766_v62  ;;  %v9778_v62 = vld [vmem:[#allocation211_spill] sm:$0xff] }
 0x4bf   : > { %3342 = vmatpush2.xpose.msra.mxu1 %v9767_v32  ;;  %v9779_v32 = vld [vmem:[#allocation91_spill] sm:$0xff] }
 0x4c0   : > { %3343 = vmatprep.subr.mxu1 %v9768_v20  ;;  %v9780_v20 = vld [vmem:[#allocation214_spill] sm:$0xff] }
 0x4c1   : > { %3273 = vmatpush2.xpose.msra.mxu0 %v9769_v33  ;;  %v9781_v33 = vld [vmem:[#allocation212_spill] sm:$0xff] }
 0x4c2   : > { %3274 = vmatprep.subr.mxu0 %v9770_v13  ;;  %v9782_v13 = vld [vmem:[#allocation213_spill] sm:$0xff] }
 0x4c3   : > { %3344 = vmatpush2.xpose.msra.mxu1 %v9771_v14  ;;  %v9783_v14 = vld [vmem:[#allocation207_spill] sm:$0xff] }
 0x4c4   : > { %3345 = vmatprep.subr.mxu1 %v9772_v15  ;;  %v9784_v15 = vld [vmem:[#allocation209_spill] sm:$0xff] }
 0x4c5   : > { %3275 = vmatpush2.xpose.msra.mxu0 %v9773_v23  ;;  %v9785_v23 = vld [vmem:[#allocation88_spill] sm:$0xff] }
 0x4c6   : > { %3276 = vmatprep.subr.mxu0 %v9774_v30  ;;  %v9786_v30 = vld [vmem:[#allocation20_spill] sm:$0xff] }
 0x4c7   : > { %3346 = vmatpush2.xpose.msra.mxu1 %v9775_v54  ;;  %v8083_v54 = vadd.f32 %v9786_v30, %v7935_v53  ;;  %v9797_v30 = vld [vmem:[#allocation202_spill] sm:$0xff] }
 0x4c8   : > { %3347 = vmatprep.subr.mxu1 %v9776_v24  ;;  %v9787_v24 = vld [vmem:[#allocation210_spill] sm:$0xff] }
 0x4c9   : > { %3277 = vmatpush2.xpose.msra.mxu0 %v9777_v41  ;;  %v9788_v41 = vld [vmem:[#allocation208_spill] sm:$0xff] }
 0x4ca   : > { %3278 = vmatprep.subr.mxu0 %v9778_v62  ;;  %v9789_v62 = vld [vmem:[#allocation19_spill] sm:$0xff] }
 0x4cb   : > { %3348 = vmatpush2.xpose.msra.mxu1 %v9779_v32  ;;  %v8089_v32 = vadd.f32 %v9789_v62, %v7935_v53  ;;  %v9795_v53 = vld [vmem:[#allocation201_spill] sm:$0xff] }
 0x4cc   : > { %3349 = vmatprep.subr.mxu1 %v9780_v20  ;;  %v9790_v20 = vld [vmem:[#allocation205_spill] sm:$0xff] }
 0x4cd   : > { %3279 = vmatpush2.xpose.msra.mxu0 %v9781_v33  ;;  %v9791_v33 = vld [vmem:[#allocation199_spill] sm:$0xff]  ;;  %v9801_v62 = vld [vmem:[#allocation193_spill] sm:$0xff] }
 0x4ce   : > { %3280 = vmatprep.subr.mxu0 %v9782_v13  ;;  %v9792_v13 = vld [vmem:[#allocation203_spill] sm:$0xff] }
 0x4cf   : > { %3350 = vmatpush2.xpose.msra.mxu1 %v9783_v14  ;;  %v9793_v14 = vld [vmem:[#allocation206_spill] sm:$0xff] }
 0x4d0   : > { %3351 = vmatprep.subr.mxu1 %v9784_v15  ;;  %v9794_v15 = vld [vmem:[#allocation204_spill] sm:$0xff] }
 0x4d1   : > { %3281 = vmatpush2.xpose.msra.mxu0 %v9785_v23  ;;  %v9796_v23 = vld [vmem:[#allocation200_spill] sm:$0xff] }
 0x4d2   : > { %3360 = vmatprep.subr.mxu0 %v9787_v24  ;;  %v9798_v24 = vld [vmem:[#allocation191_spill] sm:$0xff] }
 0x4d3   : > { %3352 = vmatpush2.xpose.msra.mxu1 %v9788_v41  ;;  %v9799_v41 = vld [vmem:[#allocation198_spill] sm:$0xff] }
 0x4d4   : > { %3431 = vmatprep.subr.mxu1 %v9790_v20  ;;  %3283 = vmatmul.mubr.f32.vlgmr.msra.gmra.mxu0 %v8083_v54  ;;  %v9802_v20 = vld [vmem:[#allocation196_spill] sm:$0xff] }
 0x4d5   : > { %3361 = vmatpush1.xpose.msra.mxu0 %v9791_v33  ;;  %3424 = vmatprep.mubr.f32.mxu0 %v7944_v21  ;;  %v9800_v21 = vld [vmem:[#allocation195_spill] sm:$0xff]  ;;  %v9803_v33 = vld [vmem:[#allocation197_spill] sm:$0xff] }
 0x4d6   : > { %3354 = vmatmul.mubr.f32.vlgmr.msra.gmra.mxu1 %v8089_v32  ;;  %3362 = vmatprep.subr.mxu0 %v9792_v13  ;;  %v9805_v13 = vld [vmem:[#allocation194_spill] sm:$0xff] }
 0x4d7   : > { %3432 = vmatpush1.xpose.msra.mxu1 %v9793_v14  ;;  %3495 = vmatprep.mubr.f32.mxu1 %v7951_v17  ;;  %v9804_v17 = vld [vmem:[#allocation192_spill] sm:$0xff]  ;;  %v9806_v14 = vld [vmem:[#allocation183_spill] sm:$0xff] }
 0x4d8   : > { %3433 = vmatprep.subr.mxu1 %v9794_v15  ;;  %v9807_v15 = vld [vmem:[#allocation190_spill] sm:$0xff] }
 0x4d9   : > { %3363 = vmatpush1.xpose.msra.mxu0 %v9795_v53  ;;  %v9808_v53 = vld [vmem:[#allocation187_spill] sm:$0xff] }
 0x4da   : > { %3364 = vmatprep.subr.mxu0 %v9796_v23  ;;  %v9809_v23 = vld [vmem:[#allocation185_spill] sm:$0xff] }
 0x4db   : > { %3434 = vmatpush1.xpose.msra.mxu1 %v9797_v30  ;;  %v9810_v30 = vld [vmem:[#allocation188_spill] sm:$0xff] }
 0x4dc   : > { %3435 = vmatprep.subr.mxu1 %v9798_v24  ;;  %v9811_v24 = vld [vmem:[#allocation189_spill] sm:$0xff] }
 0x4dd   : > { %3365 = vmatpush1.xpose.msra.mxu0 %v9799_v41  ;;  %v9812_v41 = vld [vmem:[#allocation184_spill] sm:$0xff] }
 0x4de   : > { %3366 = vmatprep.subr.mxu0 %v9800_v21  ;;  %v9813_v21 = vld [vmem:[#allocation186_spill] sm:$0xff] }
 0x4df   : > { %3436 = vmatpush1.xpose.msra.mxu1 %v9801_v62  ;;  %v9814_v62 = vld [vmem:[#allocation175_spill] sm:$0xff] }
 0x4e0   : > { %3437 = vmatprep.subr.mxu1 %v9802_v20  ;;  %v9815_v20 = vld [vmem:[#allocation182_spill] sm:$0xff] }
 0x4e1   : > { %3367 = vmatpush1.xpose.msra.mxu0 %v9803_v33  ;;  %v9816_v33 = vld [vmem:[#allocation179_spill] sm:$0xff] }
 0x4e2   : > { %3368 = vmatprep.subr.mxu0 %v9804_v17  ;;  %v9817_v17 = vld [vmem:[#allocation177_spill] sm:$0xff] }
 0x4e3   : > { %3438 = vmatpush1.xpose.msra.mxu1 %v9805_v13  ;;  %v9818_v13 = vld [vmem:[#allocation180_spill] sm:$0xff] }
 0x4e4   : > { %3439 = vmatprep.subr.mxu1 %v9806_v14  ;;  %v9819_v14 = vld [vmem:[#allocation181_spill] sm:$0xff] }
 0x4e5   : > { %3369 = vmatpush1.xpose.msra.mxu0 %v9807_v15  ;;  %v9820_v15 = vld [vmem:[#allocation176_spill] sm:$0xff] }
 0x4e6   : > { %3370 = vmatprep.subr.mxu0 %v9808_v53  ;;  %v9821_v53 = vld [vmem:[#allocation178_spill] sm:$0xff] }
 0x4e7   : > { %3440 = vmatpush1.xpose.msra.mxu1 %v9809_v23  ;;  %v9822_v23 = vld [vmem:[#allocation173_spill] sm:$0xff] }
 0x4e8   : > { %3441 = vmatprep.subr.mxu1 %v9810_v30  ;;  %v9823_v30 = vld [vmem:[#allocation167_spill] sm:$0xff] }
 0x4e9   : > { %3371 = vmatpush1.xpose.msra.mxu0 %v9811_v24  ;;  %v9824_v24 = vld [vmem:[#allocation174_spill] sm:$0xff] }
 0x4ea   : > { %3372 = vmatprep.subr.mxu0 %v9812_v41  ;;  %v9825_v41 = vld [vmem:[#allocation171_spill] sm:$0xff] }
 0x4eb   : > { %3442 = vmatpush1.xpose.msra.mxu1 %v9813_v21  ;;  %v9826_v21 = vld [vmem:[#allocation169_spill] sm:$0xff] }
 0x4ec   : > { %3443 = vmatprep.subr.mxu1 %v9814_v62  ;;  %v9827_v62 = vld [vmem:[#allocation172_spill] sm:$0xff] }
 0x4ed   : > { %3373 = vmatpush1.xpose.msra.mxu0 %v9815_v20 }
 0x4ee   : > { %3374 = vmatprep.subr.mxu0 %v9816_v33  ;;  %v3506_v33 = vlaneseq }
 0x4ef   : > { %3444 = vmatpush1.xpose.msra.mxu1 %v9817_v17 }
 0x4f0   : > { %3445 = vmatprep.subr.mxu1 %v9818_v13  ;;  %v3507_v17 = vshrl.u32 %v3506_v33, 7 }
 0x4f1   : > { %3375 = vmatpush1.xpose.msra.mxu0 %v9819_v14 }
 0x4f2   : > { %3376 = vmatprep.subr.mxu0 %v9820_v15  ;;  %v8240_v15 = vsub.s32 0, %v3507_v17 }
 0x4f3   : > { %3446 = vmatpush1.xpose.msra.mxu1 %v9821_v53 }
 0x4f4   : > { %3447 = vmatprep.subr.mxu1 %v9822_v23 }
 0x4f5   : > { %3377 = vmatpush1.xpose.msra.mxu0 %v9823_v30 }
 0x4f6   : > { %3378 = vmatprep.subr.mxu0 %v9824_v24 }
 0x4f7   : > { %3448 = vmatpush1.xpose.msra.mxu1 %v9825_v41 }
 0x4f8   : > { %3449 = vmatprep.subr.mxu1 %v7599_v42  ;;  %v9829_v42 = vld [vmem:[#allocation168_spill] sm:$0xff] }
 0x4f9   : > { %3379 = vmatpush1.xpose.msra.mxu0 %v7577_v11  ;;  %v9828_v11 = vld [vmem:[#allocation170_spill] sm:$0xff] }
 0x4fa   : > { %3380 = vmatprep.subr.mxu0 %v7607_v47  ;;  %v9831_v47 = vld [vmem:[#allocation159_spill] sm:$0xff] }
 0x4fb   : > { %3450 = vmatpush1.xpose.msra.mxu1 %v7603_v36  ;;  %v9830_v36 = vld [vmem:[#allocation165_spill] sm:$0xff] }
 0x4fc   : > { %3451 = vmatprep.subr.mxu1 %v7616_v31  ;;  %v9832_v31 = vld [vmem:[#allocation166_spill] sm:$0xff] }
 0x4fd   : > { %3381 = vmatpush1.xpose.msra.mxu0 %v7619_v16  ;;  %v8158_v16 = vpop.f32.mrf.mxu1 }
 0x4fe   : > { %3382 = vmatprep.subr.mxu0 %v7622_v25 }
 0x4ff   : > { %3452 = vmatpush1.xpose.msra.mxu1 %v9826_v21 }
 0x500   : > { %3453 = vmatprep.subr.mxu1 %v9827_v62 }
 0x501   : > { %3383 = vmatpush1.xpose.msra.mxu0 %v7611_v35  ;;  %v8154_v35 = vpop.f32.mrf.mxu0 }
 0x502   : > { %3384 = vmatprep.subr.mxu0 %v7639_v9  ;;  %v3072_v20 = vadd.f32 %v8158_v16, %v8154_v35  ;;  %v3527_v35 = vld [vmem:[%s5601_s26 + $0x8] sm:$0xff]  ;;  %v3529_v16 = vld [vmem:[%s5601_s26 + $0x18] sm:$0xff] }
 0x503   : > { %3454 = vmatpush1.xpose.msra.mxu1 %v7634_v6  ;;  %v8161_v25 = vpop.f32.mrf.mxu0  ;;  %v8165_v6 = vpop.f32.mrf.mxu1 }
 0x504   : > { %3455 = vmatprep.subr.mxu1 %v7646_v38 }
 0x505   : > { %3385 = vmatpush1.xpose.msra.mxu0 %v9828_v11 }
 0x506   : > { %3386 = vmatprep.subr.mxu0 %v9829_v42 }
 0x507   : > { %3456 = vmatpush1.xpose.msra.mxu1 %v7658_v51  ;;  %v9833_v51 = vld [vmem:[#allocation163_spill] sm:$0xff] }
 0x508   : > { %3457 = vmatprep.subr.mxu1 %v9830_v36 }
 0x509   : > { %3387 = vmatpush1.xpose.msra.mxu0 %v7642_v45 }
 0x50a   : > { %3388 = vmatprep.subr.mxu0 %v7670_v3  ;;  %v9835_v3 = vld [vmem:[#allocation164_spill] sm:$0xff] }
 0x50b   : > { %3458 = vmatpush1.xpose.msra.mxu1 %v7666_v60  ;;  %v9834_v60 = vld [vmem:[#allocation161_spill] sm:$0xff] }
 0x50c   : > { %3459 = vmatprep.subr.mxu1 %v7678_v18  ;;  %v9837_v18 = vld [vmem:[#allocation160_spill] sm:$0xff] }
 0x50d   : > { %3389 = vmatpush1.xpose.msra.mxu0 %v9831_v47  ;;  %v3526_v47 = vld [vmem:[%s5601_s26] sm:$0xff] }
 0x50e   : > { %3390 = vmatprep.subr.mxu0 %v7686_v40  ;;  %v9838_v40 = vld [vmem:[#allocation157_spill] sm:$0xff] }
 0x50f   : > { %3460 = vmatpush1.xpose.msra.mxu1 %v7690_v58  ;;  %v9839_v58 = vld [vmem:[#allocation151_spill] sm:$0xff] }
 0x510   : > { %3461 = vmatprep.subr.mxu1 %v9832_v31  ;;  %v3528_v31 = vld [vmem:[%s5601_s26 + $0x10] sm:$0xff] }
 0x511   : > { %3391 = vmatpush1.xpose.msra.mxu0 %v7674_v10  ;;  %v9836_v10 = vld [vmem:[#allocation162_spill] sm:$0xff] }
 0x512   : > { %3392 = vmatprep.subr.mxu0 %v7702_v37  ;;  %v9841_v37 = vld [vmem:[#allocation155_spill] sm:$0xff] }
 0x513   : > { %3462 = vmatpush1.xpose.msra.mxu1 %v7698_v19  ;;  %v9840_v19 = vld [vmem:[#allocation158_spill] sm:$0xff] }
 0x514   : > { %3463 = vmatprep.subr.mxu1 %v7710_v48  ;;  %v3142_v9 = vpop.f32.mrf.mxu0  ;;  %v9843_v48 = vld [vmem:[#allocation156_spill] sm:$0xff] }
 0x515   : > { %3393 = vmatpush2.xpose.msra.mxu0 %v7706_v4  ;;  %v9842_v4 = vld [vmem:[#allocation153_spill] sm:$0xff] }
 0x516   : > { %3394 = vmatprep.subr.mxu0 %v7718_v43  ;;  %v3213_v45 = vpop.f32.mrf.mxu1  ;;  %v9845_v43 = vld [vmem:[#allocation154_spill] sm:$0xff]  ;;  %v3144_v13 = vpop.f32.mrf.mxu0 }
 0x517   : > { %3464 = vmatpush2.xpose.msra.mxu1 %v7714_v2  ;;  %v8171_v38 = vadd.f32 %v3213_v45, %v3142_v9  ;;  %v9844_v2 = vld [vmem:[#allocation152_spill] sm:$0xff] }
 0x518   : > { %3465 = vmatprep.subr.mxu1 %v7724_v22  ;;  %v9846_v22 = vld [vmem:[#allocation28_spill] sm:$0xff]  ;;  %v3215_v14 = vpop.f32.mrf.mxu1 }
 0x519   : > { %3395 = vmatpush2.xpose.msra.mxu0 %v7728_v63  ;;  %v9847_v63 = vld [vmem:[#allocation50_spill] sm:$0xff] }
 0x51a   : > { %3396 = vmatprep.subr.mxu0 %v7732_v49  ;;  %v9848_v49 = vld [vmem:[#allocation58_spill] sm:$0xff] }
 0x51b   : > { %3466 = vmatpush2.xpose.msra.mxu1 %v7736_v50  ;;  %v9849_v50 = vld [vmem:[#allocation60_spill] sm:$0xff] }
 0x51c   : > { %3467 = vmatprep.subr.mxu1 %v7740_v29  ;;  %v9850_v29 = vld [vmem:[#allocation65_spill] sm:$0xff] }
 0x51d   : > { %3397 = vmatpush2.xpose.msra.mxu0 %v7744_v61  ;;  %v9851_v61 = vld [vmem:[#allocation67_spill] sm:$0xff] }
 0x51e   : > { %3398 = vmatprep.subr.mxu0 %v7748_v34  ;;  %v9852_v34 = vld [vmem:[#allocation75_spill] sm:$0xff] }
 0x51f   : > { %3468 = vmatpush2.xpose.msra.mxu1 %v7752_v57  ;;  %v9853_v57 = vld [vmem:[#allocation36_spill] sm:$0xff] }
 0x520   : > { %3469 = vmatprep.subr.mxu1 %v9833_v51 }
 0x521   : > { %3399 = vmatpush2.xpose.msra.mxu0 %v7760_v7  ;;  %v9854_v7 = vld [vmem:[#allocation37_spill] sm:$0xff] }
 0x522   : > { %3400 = vmatprep.subr.mxu0 %v7764_v39  ;;  %v9855_v39 = vld [vmem:[#allocation83_spill] sm:$0xff] }
 0x523   : > { %3470 = vmatpush2.xpose.msra.mxu1 %v7768_v26  ;;  %v9856_v26 = vld [vmem:[#allocation84_spill] sm:$0xff] }
 0x524   : > { %3471 = vmatprep.subr.mxu1 %v9834_v60 }
 0x525   : > { %3401 = vmatpush2.xpose.msra.mxu0 %v9835_v3 }
 0x526   : > { %3402 = vmatprep.subr.mxu0 %v9836_v10 }
 0x527   : > { %3472 = vmatpush2.xpose.msra.mxu1 %v9837_v18 }
 0x528   : > { %3473 = vmatprep.subr.mxu1 %v9838_v40 }
 0x529   : > { %3403 = vmatpush2.xpose.msra.mxu0 %v9839_v58 }
 0x52a   : > { %3404 = vmatprep.subr.mxu0 %v9840_v19 }
 0x52b   : > { %3474 = vmatpush2.xpose.msra.mxu1 %v7800_v0  ;;  %v9857_v0 = vld [vmem:[#allocation85_spill] sm:$0xff] }
 0x52c   : > { %3475 = vmatprep.subr.mxu1 %v9841_v37 }
 0x52d   : > { %3405 = vmatpush2.xpose.msra.mxu0 %v9842_v4 }
 0x52e   : > { %3406 = vmatprep.subr.mxu0 %v9843_v48 }
 0x52f   : > { %3476 = vmatpush2.xpose.msra.mxu1 %v9844_v2  ;;  %v3531_v2 = vld [vmem:[#allocation3 + $0x68] sm:$0xff] }
 0x530   : > { %3477 = vmatprep.subr.mxu1 %v9845_v43 }
 0x531   : > { %3407 = vmatpush2.xpose.msra.mxu0 %v9846_v22 }
 0x532   : > { %3408 = vmatprep.subr.mxu0 %v9847_v63  ;;  %v3534_v63 = vld [vmem:[#allocation3 + $0x48] sm:$0xff] }
 0x533   : > { %3478 = vmatpush2.xpose.msra.mxu1 %v7832_v55  ;;  %v9858_v55 = vld [vmem:[#allocation226_spill] sm:$0xff] }
 0x534   : > { %3479 = vmatprep.subr.mxu1 %v9848_v49 }
 0x535   : > { %3409 = vmatpush2.xpose.msra.mxu0 %v9849_v50 }
 0x536   : > { %3410 = vmatprep.subr.mxu0 %v7844_v44  ;;  %v9859_v44 = vld [vmem:[#allocation82_spill] sm:$0xff] }
 0x537   : > { %3480 = vmatpush2.xpose.msra.mxu1 %v9850_v29  ;;  %v3535_v29 = vld [vmem:[#allocation3 + $0x30] sm:$0xff] }
 0x538   : > { %3481 = vmatprep.subr.mxu1 %v9851_v61 }
 0x539   : > { %3411 = vmatpush2.xpose.msra.mxu0 %v7856_v59  ;;  %v9860_v59 = vld [vmem:[#allocation227_spill] sm:$0xff] }
 0x53a   : > { %3412 = vmatprep.subr.mxu0 %v7860_v27  ;;  %v9861_v27 = vld [vmem:[#allocation81_spill] sm:$0xff] }
 0x53b   : > { %3482 = vmatpush2.xpose.msra.mxu1 %v7864_v5  ;;  %v9862_v5 = vld [vmem:[#allocation225_spill] sm:$0xff] }
 0x53c   : > { %3483 = vmatprep.subr.mxu1 %v7868_v56  ;;  %v9863_v56 = vld [vmem:[#allocation80_spill] sm:$0xff] }
 0x53d   : > { %3413 = vmatpush2.xpose.msra.mxu0 %v7872_v52  ;;  %v9864_v52 = vld [vmem:[#allocation79_spill] sm:$0xff] }
 0x53e   : > { %3414 = vmatprep.subr.mxu0 %v7875_v8  ;;  %v9865_v8 = vld [vmem:[#allocation223_spill] sm:$0xff] }
 0x53f   : > { %3484 = vmatpush2.xpose.msra.mxu1 %v7879_v28  ;;  %v9866_v28 = vld [vmem:[#allocation221_spill] sm:$0xff] }
 0x540   : > { %3485 = vmatprep.subr.mxu1 %v7882_v46  ;;  %v9867_v46 = vld [vmem:[#allocation224_spill] sm:$0xff] }
 0x541   : > { %3415 = vmatpush2.xpose.msra.mxu0 %v7885_v12  ;;  %v9868_v12 = vmov 0.0  }
 0x542   : > { %3416 = vmatprep.subr.mxu0 %v7888_v1  ;;  %v3074_v1 = vadd.f32 %v8165_v6, %v8161_v25  ;;  %v3216_v25 = vadd.f32 %v3215_v14, %v3144_v13  ;;  %v3537_v13 = vld [vmem:[#allocation3 + $0x38] sm:$0xff] }
 0x543   : > { %3486 = vmatpush2.xpose.msra.mxu1 %v9852_v34 }
 0x544   : > { %3487 = vmatprep.subr.mxu1 %v9853_v57  ;;  %5236 = vrcp.f32 %v3074_v1  ;;  %v3538_v57 = vld [vmem:[#allocation3 + $0x20] sm:$0xff] }
 0x545   : > { %3417 = vmatpush2.xpose.msra.mxu0 %v9854_v7  ;;  %5238 = vrcp.f32 %v3072_v20  ;;  %v3536_v20 = vld [vmem:[#allocation3 + $0x70] sm:$0xff] }
 0x546   : > { %3418 = vmatprep.subr.mxu0 %v9855_v39  ;;  %5240 = vrcp.f32 %v3216_v25 }
 0x547   : > { %3488 = vmatpush2.xpose.msra.mxu1 %v9856_v26  ;;  %5242 = vrcp.f32 %v8171_v38  ;;  %v3530_v38 = vld [vmem:[#allocation3 + $0x28] sm:$0xff]  ;;  %v3539_v26 = vld [vmem:[#allocation3 + $0x78] sm:$0xff] }
 0x548   : > { %3489 = vmatprep.subr.mxu1 %v9857_v0 }
 0x549   : > { %3419 = vmatpush2.xpose.msra.mxu0 %v9858_v55 }
 0x54a   : > { %3420 = vmatprep.subr.mxu0 %v9859_v44  ;;  %v3542_v44 = vld [vmem:[#allocation3] sm:$0xff] }
 0x54b   : > { %3490 = vmatpush2.xpose.msra.mxu1 %v9860_v59 }
 0x54c   : > { %3491 = vmatprep.subr.mxu1 %v9861_v27 }
 0x54d   : > { %3421 = vmatpush2.xpose.msra.mxu0 %v9862_v5  ;;  %v3543_v5 = vld [vmem:[#allocation3 + $0x8] sm:$0xff] }
 0x54e   : > { %3422 = vmatprep.subr.mxu0 %v9863_v56 }
 0x54f   : > { %3492 = vmatpush2.xpose.msra.mxu1 %v9864_v52 }
 0x550   : > { %3493 = vmatprep.subr.mxu1 %v9865_v8  ;;  %v3532_v8 = vld [vmem:[#allocation3 + $0x10] sm:$0xff] }
 0x551   : > { %3423 = vmatpush2.xpose.msra.mxu0 %v9866_v28  ;;  %v5237_v53 = vpop.eup %5236 }
 0x552   : > { %v5239_v30 = vpop.eup %5238  ;;  %v3513_v62 = vrot.slane %v5237_v53, %v8240_v15  ;;  %v3540_v53 = vld [vmem:[#allocation3 + $0x18] sm:$0xff] }
 0x553   : > { %3494 = vmatpush2.xpose.msra.mxu1 %v9867_v46  ;;  %v3509_v11 = vrot.slane %v5239_v30, %v8240_v15  ;;  %v5241_v9 = vpop.eup %5240  ;;  %v3533_v46 = vld [vmem:[#allocation3 + $0x40] sm:$0xff]  ;;  %v3541_v30 = vld [vmem:[#allocation3 + $0x58] sm:$0xff] }
 0x554   : > { %3425 = vmatmul.mubr.f32.vlgmr.msra.gmra.mxu0 %v8083_v54  ;;  %v5243_v60 = vpop.eup %5242  ;;  %v3521_v40 = vrot.slane %v5241_v9, %v8240_v15 }
 0x555   : > { %3622 = vmatprep.mubr.f32.mxu0 %v9868_v12  ;;  %v3517_v58 = vrot.slane %v5243_v60, %v8240_v15 }
 0x556   : > { %3496 = vmatmul.mubr.f32.vlgmr.msra.gmra.mxu1 %v8089_v32 }
 0x557   : > { %3711 = vmatprep.mubr.f32.mxu1 %v9868_v12 }
 0x594   : > { %v3284_v54 = vpop.f32.mrf.mxu0 }
 0x596   : > { %v3355_v32 = vpop.f32.mrf.mxu1  ;;  %v3286_v23 = vpop.f32.mrf.mxu0 }
 0x597   : > { %v3356_v24 = vadd.f32 %v3355_v32, %v3284_v54 }
 0x598   : > { %v3357_v41 = vpop.f32.mrf.mxu1 }
 0x599   : > { %v3358_v21 = vadd.f32 %v3357_v41, %v3286_v23  ;;  %v3522_v36 = vmul.f32 %v3509_v11, %v3356_v24 }
 0x59b   : > { %v3523_v42 = vmul.f32 %v3513_v62, %v3358_v21  ;;  %v3544_v21 = vld [vmem:[#allocation3 + $0x60] sm:$0xff] }
 0x59d   : > { %3588 = vmatprep.subr.mxu0 %v3523_v42  ;;  %v3545_v42 = vld [vmem:[#allocation3 + $0x50] sm:$0xff] }
 0x59e   : > { %3589 = vmatpush1.msra.mxu0 %v3522_v36 }
 0x59f   : > { %4582 = vmatmul.mubr.msk.f32.vlgmr.msra.gmra.mxu0 %vm755_vm1, %v3526_v47 }
 0x5a0   : > { %3628 = vmatprep.mubr.f32.mxu0 %v9868_v12 }
 0x5a3   : > { %4583 = vmatmul.mubr.msk.f32.gmra.mxu0 %vm755_vm1, %v3527_v35 }
 0x5a4   : > { %3634 = vmatprep.mubr.f32.mxu0 %v9868_v12 }
 0x5a7   : > { %4584 = vmatmul.mubr.msk.f32.gmra.mxu0 %vm755_vm1, %v3528_v31 }
 0x5a8   : > { %3640 = vmatprep.mubr.f32.mxu0 %v9868_v12 }
 0x5ab   : > { %4585 = vmatmul.mubr.msk.f32.gmra.mxu0 %vm755_vm1, %v3529_v16 }
 0x614   : > { %v3426_v6 = vpop.f32.mrf.mxu0 }
 0x616   : > { %v3497_v45 = vpop.f32.mrf.mxu1  ;;  %v3428_v51 = vpop.f32.mrf.mxu0 }
 0x617   : > { %v3498_v3 = vadd.f32 %v3497_v45, %v3426_v6 }
 0x618   : > { %v3499_v10 = vpop.f32.mrf.mxu1 }
 0x619   : > { %v3500_v18 = vadd.f32 %v3499_v10, %v3428_v51  ;;  %v3524_v37 = vmul.f32 %v3517_v58, %v3498_v3 }
 0x61b   : > { %v3525_v19 = vmul.f32 %v3521_v40, %v3500_v18 }
 0x61d   : > { %3677 = vmatprep.subr.mxu1 %v3525_v19 }
 0x61e   : > { %3678 = vmatpush1.msra.mxu1 %v3524_v37 }
 0x61f   : > { %4586 = vmatmul.mubr.msk.f32.vlgmr.msra.gmra.mxu1 %vm755_vm1, %v3526_v47 }
 0x620   : > { %3717 = vmatprep.mubr.f32.mxu1 %v9868_v12 }
 0x623   : > { %4587 = vmatmul.mubr.msk.f32.gmra.mxu1 %vm755_vm1, %v3527_v35 }
 0x624   : > { %3723 = vmatprep.mubr.f32.mxu1 %v9868_v12 }
 0x627   : > { %4588 = vmatmul.mubr.msk.f32.gmra.mxu1 %vm755_vm1, %v3528_v31 }
 0x628   : > { %3729 = vmatprep.mubr.f32.mxu1 %v9868_v12 }
 0x62b   : > { %4589 = vmatmul.mubr.msk.f32.gmra.mxu1 %vm755_vm1, %v3529_v16 }
 0x65f   : > { %v3624_v4 = vpop.f32.mrf.mxu0 }
 0x660   : > { %v3736_v48 = vadd.f32 %v3624_v4, %v3530_v38 }
 0x661   : > { %v3626_v43 = vpop.f32.mrf.mxu0 }
 0x662   : > { %3752 = vst [vmem:[#allocation3 + $0x28] sm:$0xff] %v3736_v48  ;;  %v3737_v22 = vadd.f32 %v3626_v43, %v3531_v2 }
 0x663   : > { %v3630_v49 = vpop.f32.mrf.mxu0 }
 0x664   : > { %3753 = vst [vmem:[#allocation3 + $0x68] sm:$0xff] %v3737_v22  ;;  %v3740_v50 = vadd.f32 %v3630_v49, %v3534_v63 }
 0x665   : > { %v3632_v61 = vpop.f32.mrf.mxu0 }
 0x666   : > { %3756 = vst [vmem:[#allocation3 + $0x48] sm:$0xff] %v3740_v50  ;;  %v3741_v34 = vadd.f32 %v3632_v61, %v3535_v29 }
 0x667   : > { %v3636_v7 = vpop.f32.mrf.mxu0 }
 0x668   : > { %3757 = vst [vmem:[#allocation3 + $0x30] sm:$0xff] %v3741_v34  ;;  %v3744_v39 = vadd.f32 %v3636_v7, %v3538_v57 }
 0x669   : > { %v3638_v0 = vpop.f32.mrf.mxu0 }
 0x66a   : > { %3760 = vst [vmem:[#allocation3 + $0x20] sm:$0xff] %v3744_v39  ;;  %v3745_v55 = vadd.f32 %v3638_v0, %v3539_v26 }
 0x66b   : > { %v3642_v59 = vpop.f32.mrf.mxu0 }
 0x66c   : > { %3761 = vst [vmem:[#allocation3 + $0x78] sm:$0xff] %v3745_v55  ;;  %v3748_v27 = vadd.f32 %v3642_v59, %v3542_v44 }
 0x66d   : > { %v3644_v56 = vpop.f32.mrf.mxu0 }
 0x66e   : > { %3764 = vst [vmem:[#allocation3] sm:$0xff] %v3748_v27  ;;  %v3749_v52 = vadd.f32 %v3644_v56, %v3543_v5 }
 0x670   : > { %3765 = vst [vmem:[#allocation3 + $0x8] sm:$0xff] %v3749_v52 }
 0x6df   : > { %v3713_v28 = vpop.f32.mrf.mxu1 }
 0x6e0   : > { %v3738_v12 = vadd.f32 %v3713_v28, %v3532_v8 }
 0x6e1   : > { %v3715_v1 = vpop.f32.mrf.mxu1 }
 0x6e2   : > { %3754 = vst [vmem:[#allocation3 + $0x10] sm:$0xff] %v3738_v12  ;;  %v3739_v33 = vadd.f32 %v3715_v1, %v3533_v46 }
 0x6e3   : > { %v3719_v17 = vpop.f32.mrf.mxu1 }
 0x6e4   : > { %3755 = vst [vmem:[#allocation3 + $0x40] sm:$0xff] %v3739_v33  ;;  %v3742_v14 = vadd.f32 %v3719_v17, %v3536_v20 }
 0x6e5   : > { %v3721_v54 = vpop.f32.mrf.mxu1 }
 0x6e6   : > { %3758 = vst [vmem:[#allocation3 + $0x70] sm:$0xff] %v3742_v14  ;;  %v3743_v32 = vadd.f32 %v3721_v54, %v3537_v13 }
 0x6e7   : > { %v3725_v23 = vpop.f32.mrf.mxu1 }
 0x6e8   : > { %3759 = vst [vmem:[#allocation3 + $0x38] sm:$0xff] %v3743_v32  ;;  %v3746_v24 = vadd.f32 %v3725_v23, %v3540_v53 }
 0x6e9   : > { %v3727_v41 = vpop.f32.mrf.mxu1 }
 0x6ea   : > { %3762 = vst [vmem:[#allocation3 + $0x18] sm:$0xff] %v3746_v24  ;;  %v3747_v62 = vadd.f32 %v3727_v41, %v3541_v30 }
 0x6eb   : > { %v3731_v11 = vpop.f32.mrf.mxu1 }
 0x6ec   : > { %3763 = vst [vmem:[#allocation3 + $0x58] sm:$0xff] %v3747_v62  ;;  %v3750_v36 = vadd.f32 %v3731_v11, %v3544_v21  ;;  %3771 = sbr.rel (%p4590_p7) target bundleno = 2358 (0x936), region = 56 }
 0x6ed   : > { %v3733_v47 = vpop.f32.mrf.mxu1 }
 0x6ee   : > { %3766 = vst [vmem:[#allocation3 + $0x60] sm:$0xff] %v3750_v36  ;;  %v3751_v35 = vadd.f32 %v3733_v47, %v3545_v42 }
 0x6f0   : > { %3767 = vst [vmem:[#allocation3 + $0x50] sm:$0xff] %v3751_v35 }
 0x6f1   : > { %v8269_v31 = vld [vmem:[%s8503_s5 + $0x18] sm:$0xff]  ;;  %v8274_v16 = vld [vmem:[%s8503_s5 + $0x8] sm:$0xff]  ;;  %v5415_v25 = vmov 0   ;;  %v8281_v6 = vld [vmem:[%s8503_s5 + $0x10] sm:$0xff]  ;;  %v5416_v45 = vmov 0.0   ;;  %v5417_v12 = vmov 0.03125  }
 0x6f2   : > { %5245 = vset.pattern.permute.xlu1 %v5415_v25  ;;  %5244 = vset.pattern.permute.xlu0 %v5415_v25  ;;  %v8286_v9 = vld [vmem:[%s8503_s5] sm:$0xff]  ;;  %v3789_v51 = vld [vmem:[#allocation3 + $0x8] sm:$0xff]  ;;  %v3785_v4 = vld [vmem:[#allocation3 + $0x78] sm:$0xff]  ;;  %v5418_v1 = vmov 1   ;;  %v5419_v20 = vmov 2  }
 0x6f3   : > { %3809 = vperm.xlu0 %5244, %v8269_v31   ;;  %3799 = vperm.xlu1 %5245, %v8274_v16   ;;  %v3788_v3 = vld [vmem:[#allocation3] sm:$0xff]  ;;  %v3787_v48 = vld [vmem:[#allocation3 + $0x58] sm:$0xff]  ;;  %v3781_v63 = vld [vmem:[#allocation3 + $0x30] sm:$0xff] }
 0x6f4   : > { %3895 = vmatprep.mubr.f32.mxu0 %v5416_v45  ;;  %3966 = vmatprep.mubr.f32.mxu1 %v5416_v45  ;;  %v3784_v2 = vld [vmem:[#allocation3 + $0x20] sm:$0xff]  ;;  %v3786_v43 = vld [vmem:[#allocation3 + $0x18] sm:$0xff]  ;;  %v3780_v57 = vld [vmem:[#allocation3 + $0x48] sm:$0xff] }
 0x6f5   : > { %v3790_v10 = vld [vmem:[#allocation3 + $0x60] sm:$0xff]  ;;  %v3783_v49 = vld [vmem:[#allocation3 + $0x38] sm:$0xff]  ;;  %v3782_v7 = vld [vmem:[#allocation3 + $0x70] sm:$0xff] }
 0x6f6   : > { %v3777_v26 = vld [vmem:[#allocation3 + $0x68] sm:$0xff]  ;;  %v3779_v0 = vld [vmem:[#allocation3 + $0x40] sm:$0xff]  ;;  %v3778_v27 = vld [vmem:[#allocation3 + $0x10] sm:$0xff] }
 0x6f7   : > { %3804 = vperm.xlu0 %5244, %v8281_v6   ;;  %3794 = vperm.xlu1 %5245, %v8286_v9   ;;  %v3791_v60 = vld [vmem:[#allocation3 + $0x50] sm:$0xff]  ;;  %v3776_v59 = vld [vmem:[#allocation3 + $0x28] sm:$0xff] }
 0x6fb   : > { %5247 = vset.pattern.permute.xlu1 %v5418_v1  ;;  %5246 = vset.pattern.permute.xlu0 %v5418_v1 }
 0x6fc   : > { %4204 = vperm.xlu1 %5247, %v8274_v16   ;;  %4200 = vperm.xlu0 %5246, %v8286_v9  }
 0x700   : > { %4208 = vperm.xlu1 %5247, %v8281_v6   ;;  %4212 = vperm.xlu0 %5246, %v8269_v31  }
 0x704   : > { %5248 = vset.pattern.permute.xlu1 %v5419_v20  ;;  %5249 = vset.pattern.permute.xlu0 %v5419_v20 }
 0x705   : > { %4232 = vperm.xlu1 %5248, %v8286_v9   ;;  %4236 = vperm.xlu0 %5249, %v8274_v16  }
 0x709   : > { %4240 = vperm.xlu1 %5248, %v8281_v6  }
 0x70d   : > { %4244 = vperm.xlu1 %5248, %v8269_v31  }
 0x76e   : > { %v3810_v18 = vpop.permute.xlu0 %3809  ;;  %v3800_v40 = vpop.permute.xlu1 %3799 }
 0x76f   : > { %v8290_v58 = vadd.f32 %v3810_v18, %v3789_v51  ;;  %v8292_v19 = vadd.f32 %v3810_v18, %v3791_v60  ;;  %v8294_v37 = vadd.f32 %v3810_v18, %v3788_v3  ;;  %v8296_v38 = vadd.f32 %v3810_v18, %v3790_v10 }
 0x770   : > { %v3817_v55 = vadd.f32 %v3800_v40, %v3781_v63  ;;  %v3819_v44 = vadd.f32 %v3800_v40, %v3783_v49  ;;  %v3816_v5 = vadd.f32 %v3800_v40, %v3780_v57  ;;  %v3818_v56 = vadd.f32 %v3800_v40, %v3782_v7 }
 0x771   : > { %3855 = vmatprep.subr.mxu0 %v8290_v58  ;;  %3926 = vmatprep.subr.mxu1 %v8292_v19 }
 0x772   : > { %3856 = vmatpush1.msra.mxu0 %v8294_v37  ;;  %3927 = vmatpush1.msra.mxu1 %v8296_v38  ;;  %v3805_v22 = vpop.permute.xlu0 %3804  ;;  %v3795_v39 = vpop.permute.xlu1 %3794 }
 0x773   : > { %v3821_v50 = vadd.f32 %v3805_v22, %v3785_v4  ;;  %v3823_v29 = vadd.f32 %v3805_v22, %v3787_v48  ;;  %v8302_v61 = vadd.f32 %v3805_v22, %v3784_v2  ;;  %v8304_v34 = vadd.f32 %v3805_v22, %v3786_v43 }
 0x774   : > { %v3813_v52 = vadd.f32 %v3795_v39, %v3777_v26  ;;  %v3815_v8 = vadd.f32 %v3795_v39, %v3779_v0  ;;  %v3812_v28 = vadd.f32 %v3795_v39, %v3776_v59  ;;  %v3814_v46 = vadd.f32 %v3795_v39, %v3778_v27 }
 0x775   : > { %3857 = vmatprep.subr.mxu0 %v3821_v50  ;;  %3928 = vmatprep.subr.mxu1 %v3823_v29 }
 0x776   : > { %3858 = vmatpush1.msra.mxu0 %v8302_v61  ;;  %3929 = vmatpush1.msra.mxu1 %v8304_v34 }
 0x777   : > { %3859 = vmatprep.subr.mxu0 %v3817_v55  ;;  %3930 = vmatprep.subr.mxu1 %v3819_v44  ;;  %v8394_v26 = vpop.permute.xlu1 %4204 }
 0x778   : > { %3860 = vmatpush1.msra.mxu0 %v3816_v5  ;;  %3931 = vmatpush1.msra.mxu1 %v3818_v56 }
 0x779   : > { %3861 = vmatprep.subr.mxu0 %v3813_v52  ;;  %3932 = vmatprep.subr.mxu1 %v3815_v8 }
 0x77a   : > { %3862 = vmatpush1.msra.mxu0 %v3812_v28  ;;  %3933 = vmatpush1.msra.mxu1 %v3814_v46 }
 0x77b   : > { %4591 = vmatmul.mubr.msk.f32.vlgmr.msra.gmra.mxu0 %vm451_vm0, %v5417_v12  ;;  %4592 = vmatmul.mubr.msk.f32.vlgmr.msra.gmra.mxu1 %vm451_vm0, %v5417_v12  ;;  %v4209_v0 = vpop.permute.xlu1 %4208 }
 0x77c   : > { %4085 = vmatprep.mubr.f32.mxu0 %v5416_v45  ;;  %4156 = vmatprep.mubr.f32.mxu1 %v5416_v45 }
 0x83b   : > { %v3897_v33 = vpop.f32.mrf.mxu0  ;;  %v3968_v17 = vpop.f32.mrf.mxu1 }
 0x83c   : > { %v3976_v13 = vrot.slane %v3897_v33, %v8240_v15  ;;  %v3984_v14 = vrot.slane %v3968_v17, %v8240_v15  ;;  %v4201_v33 = vpop.permute.xlu0 %4200 }
 0x83d   : > { %v3899_v54 = vpop.f32.mrf.mxu0  ;;  %v3970_v53 = vpop.f32.mrf.mxu1 }
 0x83e   : > { %v3980_v32 = vrot.slane %v3899_v54, %v8240_v15  ;;  %v3988_v23 = vrot.slane %v3970_v53, %v8240_v15  ;;  %v8325_v30 = vsub.f32 %v8294_v37, %v3976_v13  ;;  %v8328_v24 = vsub.f32 %v8296_v38, %v3984_v14 }
 0x83f   : > { %v8340_v42 = vsub.f32 %v3812_v28, %v3976_v13  ;;  %v8342_v36 = vsub.f32 %v3816_v5, %v3976_v13  ;;  %v8345_v47 = vsub.f32 %v8302_v61, %v3976_v13  ;;  %v8348_v35 = vsub.f32 %v8304_v34, %v3984_v14 }
 0x840   : > { %v8331_v41 = vsub.f32 %v8290_v58, %v3980_v32  ;;  %v8334_v21 = vsub.f32 %v8292_v19, %v3988_v23  ;;  %v8336_v62 = vsub.f32 %v3821_v50, %v3980_v32  ;;  %v8338_v11 = vsub.f32 %v3823_v29, %v3988_v23 }
 0x841   : > { %v8354_v25 = vsub.f32 %v3817_v55, %v3980_v32  ;;  %v8356_v6 = vsub.f32 %v3819_v44, %v3988_v23  ;;  %v8358_v9 = vsub.f32 %v3818_v56, %v3984_v14  ;;  %v4017_v45 = vmul.f32 %v8325_v30, %v8325_v30  ;;  %v4233_v44 = vpop.permute.xlu1 %4232 }
 0x842   : > { %v4018_v31 = vmul.f32 %v8331_v41, %v8331_v41  ;;  %v4020_v16 = vmul.f32 %v8334_v21, %v8334_v21  ;;  %v4019_v51 = vmul.f32 %v8328_v24, %v8328_v24  ;;  %v8364_v60 = vsub.f32 %v3813_v52, %v3980_v32 }
 0x843   : > { %v4014_v3 = vmul.f32 %v8336_v62, %v8336_v62  ;;  %v4016_v10 = vmul.f32 %v8338_v11, %v8338_v11  ;;  %v8370_v18 = vsub.f32 %v3815_v8, %v3988_v23  ;;  %v3991_v40 = vsub.f32 %v3814_v46, %v3984_v14 }
 0x844   : > { %4045 = vmatprep.subr.mxu0 %v4018_v31  ;;  %4116 = vmatprep.subr.mxu1 %v4020_v16  ;;  %v4013_v58 = vmul.f32 %v8345_v47, %v8345_v47  ;;  %v4015_v19 = vmul.f32 %v8348_v35, %v8348_v35  ;;  %v4010_v37 = vmul.f32 %v8354_v25, %v8354_v25 }
 0x845   : > { %4046 = vmatpush1.msra.mxu0 %v4017_v45  ;;  %4117 = vmatpush1.msra.mxu1 %v4019_v51  ;;  %v4012_v38 = vmul.f32 %v8356_v6, %v8356_v6  ;;  %v4009_v4 = vmul.f32 %v8342_v36, %v8342_v36  ;;  %v4011_v48 = vmul.f32 %v8358_v9, %v8358_v9  ;;  %v4241_v31 = vpop.permute.xlu1 %4240 }
 0x846   : > { %4047 = vmatprep.subr.mxu0 %v4014_v3  ;;  %4118 = vmatprep.subr.mxu1 %v4016_v10  ;;  %v4006_v2 = vmul.f32 %v8364_v60, %v8364_v60  ;;  %v4008_v43 = vmul.f32 %v8370_v18, %v8370_v18  ;;  %v4005_v22 = vmul.f32 %v8340_v42, %v8340_v42 }
 0x847   : > { %4048 = vmatpush1.msra.mxu0 %v4013_v58  ;;  %4119 = vmatpush1.msra.mxu1 %v4015_v19  ;;  %v4007_v63 = vmul.f32 %v3991_v40, %v3991_v40 }
 0x848   : > { %4049 = vmatprep.subr.mxu0 %v4010_v37  ;;  %4120 = vmatprep.subr.mxu1 %v4012_v38  ;;  %v4213_v38 = vpop.permute.xlu0 %4212 }
 0x849   : > { %4050 = vmatpush1.msra.mxu0 %v4009_v4  ;;  %4121 = vmatpush1.msra.mxu1 %v4011_v48 }
 0x84a   : > { %4051 = vmatprep.subr.mxu0 %v4006_v2  ;;  %4122 = vmatprep.subr.mxu1 %v4008_v43 }
 0x84b   : > { %4052 = vmatpush1.msra.mxu0 %v4005_v22  ;;  %4123 = vmatpush1.msra.mxu1 %v4007_v63 }
 0x84c   : > { %4593 = vmatmul.mubr.msk.f32.vlgmr.msra.gmra.mxu0 %vm451_vm0, %v5417_v12  ;;  %4594 = vmatmul.mubr.msk.f32.vlgmr.msra.gmra.mxu1 %vm451_vm0, %v5417_v12 }
 0x90c   : > { %v4087_v49 = vpop.f32.mrf.mxu0  ;;  %v4158_v50 = vpop.f32.mrf.mxu1 }
 0x90d   : > { %v4088_v29 = vadd.f32 1e-05, %v4087_v49  ;;  %v4159_v61 = vadd.f32 1e-05, %v4158_v50 }
 0x90e   : > { %v4089_v34 = vpop.f32.mrf.mxu0  ;;  %v4160_v57 = vpop.f32.mrf.mxu1 }
 0x90f   : > { %5250 = vrsqrt.f32 %v4088_v29  ;;  %v4090_v7 = vadd.f32 1e-05, %v4089_v34  ;;  %v4161_v39 = vadd.f32 1e-05, %v4160_v57  ;;  %v4245_v29 = vpop.permute.xlu1 %4244 }
 0x910   : > { %5252 = vrsqrt.f32 %v4159_v61 }
 0x911   : > { %5254 = vrsqrt.f32 %v4090_v7 }
 0x912   : > { %5256 = vrsqrt.f32 %v4161_v39 }
 0x91c   : > { %v5251_v55 = vpop.eup %5250 }
 0x91d   : > { %v5253_v59 = vpop.eup %5252  ;;  %v4170_v27 = vrot.slane %v5251_v55, %v8240_v15 }
 0x91e   : > { %v5255_v5 = vpop.eup %5254  ;;  %v4178_v56 = vrot.slane %v5253_v59, %v8240_v15  ;;  %v4237_v59 = vpop.permute.xlu0 %4236 }
 0x91f   : > { %v5257_v52 = vpop.eup %5256  ;;  %v4174_v8 = vrot.slane %v5255_v5, %v8240_v15  ;;  %v4191_v28 = vmul.f32 %v4170_v27, %v8345_v47  ;;  %v4183_v46 = vmul.f32 %v4170_v27, %v8340_v42  ;;  %v4195_v12 = vmul.f32 %v4170_v27, %v8325_v30 }
 0x920   : > { %v4182_v1 = vrot.slane %v5257_v52, %v8240_v15  ;;  %v4193_v20 = vmul.f32 %v4178_v56, %v8348_v35  ;;  %v4185_v17 = vmul.f32 %v4178_v56, %v3991_v40  ;;  %v4197_v13 = vmul.f32 %v4178_v56, %v8328_v24 }
 0x921   : > { %v4192_v14 = vmul.f32 %v4174_v8, %v8336_v62  ;;  %v4223_v54 = vmul.f32 %v4209_v0, %v4191_v28  ;;  %v4184_v53 = vmul.f32 %v4174_v8, %v8364_v60  ;;  %v4215_v32 = vmul.f32 %v4201_v33, %v4183_v46 }
 0x922   : > { %v4194_v23 = vmul.f32 %v4182_v1, %v8338_v11  ;;  %v4225_v47 = vmul.f32 %v4209_v0, %v4193_v20  ;;  %v4186_v42 = vmul.f32 %v4182_v1, %v8370_v18  ;;  %v4217_v30 = vmul.f32 %v4201_v33, %v4185_v17 }
 0x923   : > { %v4224_v15 = vmul.f32 %v4209_v0, %v4192_v14  ;;  %v4216_v16 = vmul.f32 %v4201_v33, %v4184_v53  ;;  %v4247_v35 = vadd.f32 %v4233_v44, %v4215_v32  ;;  %v4255_v45 = vadd.f32 %v4241_v31, %v4223_v54 }
 0x924   : > { %v4226_v51 = vmul.f32 %v4209_v0, %v4194_v23  ;;  %v4218_v3 = vmul.f32 %v4201_v33, %v4186_v42  ;;  %v4249_v24 = vadd.f32 %v4233_v44, %v4217_v30  ;;  %v4257_v10 = vadd.f32 %v4241_v31, %v4225_v47 }
 0x925   : > { %v4248_v62 = vadd.f32 %v4233_v44, %v4216_v16  ;;  %v4256_v40 = vadd.f32 %v4241_v31, %v4224_v15  ;;  %v4196_v60 = vmul.f32 %v4174_v8, %v8331_v41  ;;  %v4198_v58 = vmul.f32 %v4182_v1, %v8334_v21 }
 0x926   : > { %v4250_v11 = vadd.f32 %v4233_v44, %v4218_v3  ;;  %v4263_v19 = vadd.f32 %v4249_v24, %v4247_v35  ;;  %v4258_v37 = vadd.f32 %v4241_v31, %v4226_v51  ;;  %v4267_v18 = vadd.f32 %v4257_v10, %v4255_v45 }
 0x927   : > { %v4227_v4 = vmul.f32 %v4213_v38, %v4195_v12  ;;  %v4228_v48 = vmul.f32 %v4213_v38, %v4196_v60  ;;  %v4229_v2 = vmul.f32 %v4213_v38, %v4197_v13  ;;  %v4230_v43 = vmul.f32 %v4213_v38, %v4198_v58 }
 0x928   : > { %v4264_v22 = vadd.f32 %v4250_v11, %v4248_v62  ;;  %v4271_v63 = vmul.f32 0.5, %v4263_v19  ;;  %v4268_v49 = vadd.f32 %v4258_v37, %v4256_v40  ;;  %v4275_v50 = vmul.f32 0.5, %v4267_v18 }
 0x929   : > { %v4259_v41 = vadd.f32 %v4245_v29, %v4227_v4  ;;  %v4260_v21 = vadd.f32 %v4245_v29, %v4228_v48  ;;  %v4261_v61 = vadd.f32 %v4245_v29, %v4229_v2  ;;  %v4262_v34 = vadd.f32 %v4245_v29, %v4230_v43 }
 0x92a   : > { %v4272_v57 = vmul.f32 0.5, %v4264_v22  ;;  %4279 = vst [vmem:[%s5608_s18] sm:$0xff] %v4271_v63  ;;  %v4276_v7 = vmul.f32 0.5, %v4268_v49  ;;  %4283 = vst [vmem:[%s5608_s18 + $0x20] sm:$0xff] %v4275_v50  ;;  %v4187_v39 = vmul.f32 %v4170_v27, %v8342_v36  ;;  %v4188_v0 = vmul.f32 %v4174_v8, %v8354_v25 }
 0x92b   : > { %v4269_v55 = vadd.f32 %v4261_v61, %v4259_v41  ;;  %v4270_v44 = vadd.f32 %v4262_v34, %v4260_v21  ;;  %v4189_v5 = vmul.f32 %v4178_v56, %v8358_v9  ;;  %v4190_v52 = vmul.f32 %v4182_v1, %v8356_v6 }
 0x92c   : > { %4280 = vst [vmem:[%s5608_s18 + $0x8] sm:$0xff] %v4272_v57  ;;  %4284 = vst [vmem:[%s5608_s18 + $0x28] sm:$0xff] %v4276_v7  ;;  %v4219_v28 = vmul.f32 %v8394_v26, %v4187_v39  ;;  %v4220_v46 = vmul.f32 %v8394_v26, %v4188_v0 }
 0x92d   : > { %v4277_v36 = vmul.f32 0.5, %v4269_v55  ;;  %v4278_v27 = vmul.f32 0.5, %v4270_v44  ;;  %v4221_v25 = vmul.f32 %v8394_v26, %v4189_v5  ;;  %v4222_v8 = vmul.f32 %v8394_v26, %v4190_v52 }
 0x92e   : > { %v4251_v12 = vadd.f32 %v4237_v59, %v4219_v28  ;;  %v4252_v20 = vadd.f32 %v4237_v59, %v4220_v46 }
 0x92f   : > { %4285 = vst [vmem:[%s5608_s18 + $0x30] sm:$0xff] %v4277_v36  ;;  %4286 = vst [vmem:[%s5608_s18 + $0x38] sm:$0xff] %v4278_v27  ;;  %v4253_v9 = vadd.f32 %v4237_v59, %v4221_v25  ;;  %v4254_v6 = vadd.f32 %v4237_v59, %v4222_v8 }
 0x931   : > { %v4265_v56 = vadd.f32 %v4253_v9, %v4251_v12  ;;  %v4266_v1 = vadd.f32 %v4254_v6, %v4252_v20 }
 0x933   : > { %v4273_v33 = vmul.f32 0.5, %v4265_v56  ;;  %v4274_v17 = vmul.f32 0.5, %v4266_v1 }
 0x935   : > { %4281 = vst [vmem:[%s5608_s18 + $0x10] sm:$0xff] %v4273_v33  ;;  %4282 = vst [vmem:[%s5608_s18 + $0x18] sm:$0xff] %v4274_v17 }
 0x936 PF: > { %s4603_s8 = sshll.u32 %s5394_s28, 10  ;;  %s4301_s11 = sshll.u32 %s5608_s18, 4  ;;  %s8434_s11 = int_to_ptr.vmem [resolvable:$true] %s4301_s11 }
 0x937   : > { %s8431_s16 = scalar_lea.hbm %s8504_s6, %s4603_s8  ;;  %s9869_s30 = sand.u32 1, %s5370_s22  }
 0x938   : > { %s8438_s24 = scalar_lea.sflag [#allocation6], %s9869_s30  ;;  %s5286_s13 = scalar_lea.vmem %s8434_s11, 1024 }
 0x939   : > { %p5287_p9 = scmp.ne.s32.totalorder %s8434_s11, %s5286_s13  ;;  %s5420_s28 = smov [#allocation7]  }
 0x93a   : > { %s5290_s19 = sshll.u32 %s5420_s28, 4  ;;  %s5291_s19 = int_to_ptr.vmem [resolvable:$false] %s5290_s19 }
 0x93b   : > { %p5288_p3 = pnand %p5287_p9, %p5546_p12  ;;  %s5292_s15 = scalar_lea.vmem %s5291_s19, 2048 }
 0x93c   : > { %p5293_p11 = scmp.lt.s32.totalorder %s8434_s11, %s5291_s19  ;;  %p5294_p13 = scmp.lt.s32.totalorder %s5292_s15, %s5286_s13 }
 0x93d   : > { %p5289_p10 = pneg %p5288_p3 }
 0x93e   : > { %p5295_p0 = por %p5294_p13, %p5293_p11 }
 0x940   : > { %p5296_p1 = pnand %p5295_p0, %p5289_p10 }
 0x942   : > { %5299 = shalt.err (!%p5296_p1)
}
 0x943   : > { %s5300_s18 = scalar_lea.hbm %s8431_s16, 1024  ;;  %s5304_s29 = scalar_lea.hbm %s8504_s6, 2048 }
 0x944   : > { %p5301_p5 = scmp.ne.s32.totalorder %s8431_s16, %s5300_s18  ;;  %p5305_p8 = scmp.lt.s32.totalorder %s8431_s16, %s8504_s6 }
 0x945   : > { %p5306_p7 = scmp.lt.s32.totalorder %s5304_s29, %s5300_s18 }
 0x946   : > { %p5302_p4 = pnand %p5301_p5, %p5546_p12 }
 0x947   : > { %p5307_p9 = por %p5306_p7, %p5305_p8 }
 0x948   : > { %p5303_p6 = pneg %p5302_p4 }
 0x94a   : > { %p5308_p3 = pnand %p5307_p9, %p5303_p6 }
 0x94c   : > { %5311 = shalt.err (!%p5308_p3)
}
 0x94d   : > { %s5421_s27 = smov 256   ;;  %s5422_s10 = smov 16  }
 0x94e   : > { %4610 = dma.vmem_to_hbm [thread:$0]  (%p5546_p12), %s8434_s11, 1024, %s8431_s16, %s8438_s24, %s5421_s27, %s5421_s27, %s5422_s10  }
 0x94f PF: > { %p4621_p10 = scmp.ge.s32.totalorder %s5406_s7, 2  ;;  %s4316_s17 = sand.u32 1, %s5366_s21  }
 0x950   : > { %s4317_s8 = scalar_lea.sflag [#allocation6], %s4316_s17 }
 0x951   : > { %p4617_p11 = pnand %p4621_p10, %p5554_p2 }
 0x953   : > { %p4618_p13 = pneg %p4617_p11 }
 0x955   : > { %5361 = dma.done.wait (%p4618_p13), %s4317_s8, 1024  }
 0x956   : > { %5363 = vsyncadd (%p4618_p13), %s4317_s8, 4294966272  ;;  %s22_s7 = sadd.s32 1, %s5406_s7   ;;  %s9870_s9 = sld [smem:[#allocation10_spill]] }
 0x957   : > { %p19_p0 = scmp.ge.s32.totalorder %s22_s7, 10   ;;  %s9871_s23 = sld [smem:[#allocation18_spill]] }
 0x958   : > { %s9872_s24 = sld [smem:[#allocation11_spill]]  ;;  %s9879_s21 = smov %s5370_s22 }
 0x959   : > { %s9873_s25 = sld [smem:[#allocation12_spill]] }
 0x95a   : > { %s9874_s26 = sld [smem:[#allocation17_spill]]  ;;  %21 = sbr.rel (!%p19_p0) target bundleno = 11 (0xb), region = 109 }
 0x95b   : > { %s9875_s27 = sld [smem:[#allocation13_spill]] }
 0x95c   : > { %s9876_s28 = sld [smem:[#allocation14_spill]]  ;;  %s9880_s22 = smov %s9870_s9 }
 0x95d   : > { %s9877_s29 = sld [smem:[#allocation15_spill]] }
 0x95e   : > { %s9878_s30 = sld [smem:[#allocation16_spill]] }
 0x95f   :  { %4322 = vsyncpa [#allocation5], 1 }
 0x960   :  { %4324 = vsyncpa [#allocation5 + $0x1], 1 }
 0x961   :  { %4325 = vsyncpa [#allocation6], 1 }
 0x962   :  { %4327 = vsyncpa [#allocation6 + $0x1], 1 }

</bundles_post_ra>
